<compile_context>
chip_gen: v7x
topology: tpu7x:2x2x1
jax: 0.10.0
libtpu: 0.0.40
codegen_flags: <defaults>
</compile_context>

<pallas_src>
import math

import jax
import jax.numpy as jnp
from jax import lax
from jax.experimental import pallas as pl
from jax.experimental.pallas import tpu as pltpu  # noqa: F401

# ----------------------------- model config ---------------------------------
VOCAB = 300
VOCAB_PAD = 384                      # 3 * 128 lanes -> lane-dense lm_head output
D_MODEL = 32
N_LAYER = 2
D_STATE = 16
EXPAND = 2
D_INNER = EXPAND * D_MODEL           # 64
DT_RANK = math.ceil(D_MODEL / 16)    # 2
D_CONV = 4
BATCH = 2                            # kernel is specialised for B == 2


# ----------------------------- fused Pallas kernel ---------------------------
def _fused_forward_kernel(
    x_ref,        # (L, 2*D)              lane-batched embeddings [b0 | b1]
    norm_w_ref,   # (NL, 1, 2*D)
    w_in_ref,     # (NL, 2*D, 4*d_in)     block-diag in_proj -> [x_lb | res_lb]
    conv_w_ref,   # (NL, K, 2*d_in)
    conv_b_ref,   # (NL, 1, 2*d_in)
    w_dt_ref,     # (NL, 2*d_in, 2*d_in)  block-diag (x_proj_dt @ dt_proj)
    dt_b_ref,     # (NL, 1, 2*d_in)
    w_bt_ref,     # (NL, 2*n, 2*d_in)     block-diag x_proj_B^T
    w_c0_ref,     # (NL, 2*d_in, L*n)     batch-0 C weights tiled over steps
    w_c1_ref,     # (NL, 2*d_in, L*n)     batch-1 C weights tiled over steps
    a_ref,        # (NL, L*n, 2*d_in)     (-exp(A_log))^T tiled over batch & steps
    d_ref,        # (NL, 1, 2*d_in)
    w_out_ref,    # (NL, 2*d_in, 2*D)     block-diag out_proj
    norm_f_ref,   # (1, 2*D)
    w_lm_ref,     # (2*D, 2*Vpad)         block-diag tied lm_head (padded)
    rep_ref,      # (L*n, L)              0/1 row-repeat selector (row l*n+r -> l)
    exp0_ref,     # (L, L*2*d_in)         step->lane-group expander, batch-0 lanes
    exp1_ref,     # (L, L*2*d_in)         step->lane-group expander, batch-1 lanes
    blk_ref,      # (L, L*n)              0/1 block-diagonal step mask
    pmask_ref,    # (L, Vpad)             positional 0/1 mask rows (precomputed)
    out_ref,      # (B, L, Vpad)
):
    seq_len = x_ref.shape[0]
    d_model2 = x_ref.shape[1]            # 2 * d_model  (64)
    n_layer = norm_w_ref.shape[0]
    k_conv = conv_w_ref.shape[1]
    d2 = conv_w_ref.shape[2]             # 2 * d_inner  (128)
    n_state = w_bt_ref.shape[1] // 2     # 16
    vpad = pmask_ref.shape[1]
    neg = jnp.float32(-1000000000.0)

    lane128 = lax.broadcasted_iota(jnp.int32, (1, d2), 1)
    half0_128 = lane128 < (d2 // 2)                   # batch-0 lanes of width-128 rows
    laneD = lax.broadcasted_iota(jnp.int32, (1, d_model2), 1)
    half0_D = laneD < (d_model2 // 2)                 # batch-0 lanes of width-64 rows

    rep_mat = rep_ref[...]
    blkmask = blk_ref[...]
    exp0 = exp0_ref[...]
    exp1 = exp1_ref[...]

    def rmsnorm(v, w):
        # per-batch mean over each 32-lane half (exact f32 lane reductions)
        v2 = v * v
        s0 = jnp.sum(jnp.where(half0_D, v2, 0.0), axis=-1, keepdims=True)
        s1 = jnp.sum(jnp.where(half0_D, 0.0, v2), axis=-1, keepdims=True)
        ms = jnp.where(half0_D, s0, s1) * (1.0 / (d_model2 // 2))
        return v * lax.rsqrt(ms + 1e-5) * w

    h = x_ref[...]                                    # (L, 2*D) lane-batched residual

    for layer in range(n_layer):                      # static unroll (2 layers)
        # ---- RMSNorm ------------------------------------------------------
        hn = rmsnorm(h, norm_w_ref[layer])
        # ---- in_proj: one matmul, lane-aligned splits -----------------------
        xz = jnp.dot(hn, w_in_ref[layer], preferred_element_type=jnp.float32)  # (L, 256)
        xs = xz[:, :d2]                               # (L, 128)  lane-batched x
        res = xz[:, d2:]                              # (L, 128)  lane-batched gate input
        # ---- causal depthwise conv1d + SiLU (register shifts, no scratch) ---
        wk = conv_w_ref[layer]                        # (K, 128)
        acc = conv_b_ref[layer] + xs * wk[k_conv - 1:k_conv, :]
        for k in range(k_conv - 1):                   # taps needing a causal shift
            s = k_conv - 1 - k
            shifted = jnp.concatenate(
                [jnp.zeros((s, d2), jnp.float32), xs[:seq_len - s, :]], axis=0)
            acc = acc + shifted * wk[k:k + 1, :]
        xc = acc * jax.nn.sigmoid(acc)                # (L, 128)
        # ---- delta = softplus(xc @ (x_proj_dt @ dt_proj) + dt_bias) ---------
        dpre = jnp.dot(xc, w_dt_ref[layer],
                       preferred_element_type=jnp.float32) + dt_b_ref[layer]
        delta = jax.nn.softplus(dpre)                 # (L, 128)
        du = delta * xc                               # (L, 128)
        # ---- vectorised scan pre-compute (all off the recurrence path) ------
        # delta repeated per state row -> (L*n, 128); single exp push for dA.
        delta_rep = jnp.dot(rep_mat, delta, preferred_element_type=jnp.float32)
        dA = jnp.exp(delta_rep * a_ref[layer])        # (L*n, 128)
        # B^T per batch (2n, L), then expanded so step l occupies lane group l.
        b_t = lax.dot_general(w_bt_ref[layer], xc, (((1,), (1,)), ((), ())),
                              preferred_element_type=jnp.float32)     # (2n, L)
        b_sel = (jnp.dot(b_t[:n_state, :], exp0, preferred_element_type=jnp.float32)
                 + jnp.dot(b_t[n_state:, :], exp1,
                           preferred_element_type=jnp.float32))        # (n, L*128)
        # ---- selective scan: pure FMA on a (n, 128) state --------------------
        state = jnp.zeros((n_state, d2), jnp.float32)
        states_list = []
        for l in range(seq_len):                      # L dependent FMA steps
            r0 = l * n_state
            dbu = du[l:l + 1, :] * b_sel[:, l * d2:(l + 1) * d2]
            state = dA[r0:r0 + n_state, :] * state + dbu
            states_list.append(state)
        states = jnp.concatenate(states_list, axis=0)  # (L*n, 128)
        # ---- y = C . state via block-diagonal C matmuls (per batch half) -----
        cblk0 = blkmask * jnp.dot(xc, w_c0_ref[layer],
                                  preferred_element_type=jnp.float32)  # (L, L*n)
        cblk1 = blkmask * jnp.dot(xc, w_c1_ref[layer],
                                  preferred_element_type=jnp.float32)
        y0 = jnp.dot(cblk0, states, preferred_element_type=jnp.float32)  # (L, 128)
        y1 = jnp.dot(cblk1, states, preferred_element_type=jnp.float32)
        y = jnp.where(half0_128, y0, y1)              # (L, 128)
        # ---- D skip, SiLU gate, out_proj, residual ---------------------------
        y = y + xc * d_ref[layer]
        y = y * (res * jax.nn.sigmoid(res))
        h = h + jnp.dot(y, w_out_ref[layer], preferred_element_type=jnp.float32)

    # ---- final RMSNorm + tied lm_head + positional mask ----------------------
    hf = rmsnorm(h, norm_f_ref[...])
    logits = jnp.dot(hf, w_lm_ref[...], preferred_element_type=jnp.float32)  # (L, 2*Vpad)
    pm = pmask_ref[...]
    out_ref[0] = jnp.where(pm > 0.5, logits[:, :vpad], neg)
    out_ref[1] = jnp.where(pm > 0.5, logits[:, vpad:], neg)


# ----------------------------- model forward ---------------------------------
def forward(params, tokens, features):
    bsz, seq_len = tokens.shape
    assert bsz == BATCH and seq_len % 3 == 0
    emb = params["embedding"]
    n, din, d2 = D_STATE, D_INNER, 2 * D_INNER
    L, NL = seq_len, N_LAYER
    hi = jax.lax.Precision.HIGHEST

    # glue in plain JAX: embedding gather, feature projection, repeat_interleave(3)
    x_emb = emb[tokens]                                               # (B, L, D)
    f = features.reshape(bsz * (seq_len // 3), 2)
    pf = (f @ params["feat_w"] + params["feat_b"]).reshape(bsz, seq_len // 3, D_MODEL)
    x0 = x_emb + jnp.repeat(pf, 3, axis=1)                            # (B, L, D)
    x_lb = jnp.concatenate([x0[0], x0[1]], axis=-1)                   # (L, 2*D)

    def bd(w):   # duplicate a weight as a 2x2 block-diagonal (batch-lane) matrix
        z = jnp.zeros_like(w)
        return jnp.concatenate([jnp.concatenate([w, z], axis=1),
                                jnp.concatenate([z, w], axis=1)], axis=0)

    in_w = params["in_proj_w"]                                        # (NL, D, 2*d_in)
    w_in_blk = jnp.stack([jnp.concatenate(
        [bd(in_w[i][:, :din]), bd(in_w[i][:, din:])], axis=1) for i in range(NL)])
    conv_w_lb = jnp.tile(params["conv_w"], (1, 1, 2))                 # (NL, K, 128)
    conv_b_lb = jnp.tile(params["conv_b"], (1, 1, 2))
    xp = params["x_proj_w"]                                           # (NL, d_in, 2+2n)
    w_dt_blk = jnp.stack([bd(jax.lax.dot(xp[i][:, :DT_RANK], params["dt_w"][i],
                                         precision=hi)) for i in range(NL)])
    dt_b_lb = jnp.tile(params["dt_b"], (1, 1, 2))
    w_bt_blk = jnp.stack([bd(xp[i][:, DT_RANK:DT_RANK + n].T) for i in range(NL)])
    wc = [xp[i][:, DT_RANK + n:DT_RANK + 2 * n] for i in range(NL)]   # (d_in, n)
    zeros_c = jnp.zeros((din, L * n), jnp.float32)
    w_c0 = jnp.stack([jnp.concatenate([jnp.tile(wc[i], (1, L)), zeros_c], axis=0)
                      for i in range(NL)])
    w_c1 = jnp.stack([jnp.concatenate([zeros_c, jnp.tile(wc[i], (1, L))], axis=0)
                      for i in range(NL)])
    a_t = -jnp.exp(jnp.swapaxes(params["A_log"], 1, 2))               # (NL, n, d_in)
    a_rep = jnp.tile(jnp.tile(a_t, (1, 1, 2)), (1, L, 1))             # (NL, L*n, 128)
    d_lb = jnp.tile(params["D"], (1, 1, 2))
    w_out_blk = jnp.stack([bd(params["out_proj_w"][i]) for i in range(NL)])
    norm_w_lb = jnp.tile(params["norm_w"], (1, 1, 2))
    norm_f_lb = jnp.tile(params["norm_f_w"], (1, 2))
    emb_t_pad = jnp.pad(emb, ((0, VOCAB_PAD - VOCAB), (0, 0))).T      # (D, Vpad)
    w_lm_blk = bd(emb_t_pad)                                          # (2D, 2*Vpad)

    # constant selectors / masks (0/1, built once per call; exact)
    rep_mat = (jnp.arange(L * n)[:, None] // n ==
               jnp.arange(L)[None, :]).astype(jnp.float32)            # (L*n, L)
    col = jnp.arange(L * d2)
    eye_l = (jnp.arange(L)[:, None] == (col[None, :] // d2)).astype(jnp.float32)
    half_first = ((col % d2) < din).astype(jnp.float32)
    exp0 = eye_l * half_first[None, :]                                # (L, L*128)
    exp1 = eye_l * (1.0 - half_first)[None, :]
    blkmask = (jnp.arange(L)[:, None] ==
               (jnp.arange(L * n)[None, :] // n)).astype(jnp.float32)  # (L, L*n)
    pmask_pad = jnp.pad(params["pos_masks"], ((0, 0), (0, VOCAB_PAD - VOCAB)))
    pmask_lb = pmask_pad[jnp.arange(L) % 3]                           # (L, Vpad)

    logits_pad = pl.pallas_call(
        _fused_forward_kernel,
        out_shape=jax.ShapeDtypeStruct((bsz, L, VOCAB_PAD), jnp.float32),
    )(x_lb, norm_w_lb, w_in_blk, conv_w_lb, conv_b_lb, w_dt_blk, dt_b_lb,
      w_bt_blk, w_c0, w_c1, a_rep, d_lb, w_out_blk, norm_f_lb, w_lm_blk,
      rep_mat, exp0, exp1, blkmask, pmask_lb)
    return logits_pad[:, :, :VOCAB]


# ----------------------------- pure-JAX reference -----------------------------
def _reference_forward(params, tokens, features):
    bsz, seq_len = tokens.shape
    emb = params["embedding"]
    x = emb[tokens]
    f = features.reshape(bsz * (seq_len // 3), 2)
    pf = (f @ params["feat_w"] + params["feat_b"]).reshape(bsz, seq_len // 3, D_MODEL)
    x = x + jnp.repeat(pf, 3, axis=1)

    def rms(v, w):
        return v * lax.rsqrt(jnp.mean(v * v, axis=-1, keepdims=True) + 1e-5) * w

    for i in range(N_LAYER):
        hn = rms(x, params["norm_w"][i])
        xz = hn @ params["in_proj_w"][i]
        xs, res = xz[..., :D_INNER], xz[..., D_INNER:]
        xpd = jnp.pad(xs, ((0, 0), (D_CONV - 1, 0), (0, 0)))
        conv = params["conv_b"][i]
        for k in range(D_CONV):
            conv = conv + xpd[:, k:k + seq_len, :] * params["conv_w"][i][k]
        xc = conv * jax.nn.sigmoid(conv)
        x_dbl = xc @ params["x_proj_w"][i]
        dt = x_dbl[..., :DT_RANK]
        Bm = x_dbl[..., DT_RANK:DT_RANK + D_STATE]
        Cm = x_dbl[..., DT_RANK + D_STATE:]
        delta = jax.nn.softplus(dt @ params["dt_w"][i] + params["dt_b"][i])
        A = -jnp.exp(params["A_log"][i])
        dA = jnp.exp(jnp.einsum("bld,dn->bldn", delta, A))
        dBu = jnp.einsum("bld,bln,bld->bldn", delta, Bm, xc)
        state = jnp.zeros((bsz, D_INNER, D_STATE), jnp.float32)
        ys = []
        for l in range(seq_len):
            state = dA[:, l] * state + dBu[:, l]
            ys.append(jnp.einsum("bdn,bn->bd", state, Cm[:, l]))
        y = jnp.stack(ys, axis=1)
        y = y + xc * params["D"][i]
        y = y * (res * jax.nn.sigmoid(res))
        x = x + y @ params["out_proj_w"][i]
    x = rms(x, params["norm_f_w"])
    logits = x @ emb.T
    posm = params["pos_masks"][jnp.arange(seq_len) % 3]
    return jnp.where(posm[None] > 0, logits, jnp.float32(-1000000000.0))


# ----------------------------- parameter init --------------------------------
def init_params(key):
    keys = jax.random.split(key, 2 + N_LAYER)

    def nrm(k, shape, scale):
        return scale * jax.random.normal(k, shape, jnp.float32)

    pos_masks = jnp.zeros((3, VOCAB), jnp.float32)
    pos_masks = pos_masks.at[0, 1:10].set(1.0)      # position 0: tokens 1..9
    pos_masks = pos_masks.at[1, 100:200].set(1.0)   # position 1: tokens 100..199
    pos_masks = pos_masks.at[2, 200:300].set(1.0)   # position 2: tokens 200..299

    params = {
        "embedding": nrm(keys[0], (VOCAB, D_MODEL), 0.02),
        "feat_w": nrm(keys[1], (2, D_MODEL), 0.5),
        "feat_b": jnp.zeros((1, D_MODEL), jnp.float32),
        "norm_f_w": jnp.ones((1, D_MODEL), jnp.float32),
        "pos_masks": pos_masks,
    }

    stacks = {name: [] for name in
              ("norm_w", "in_proj_w", "conv_w", "conv_b", "x_proj_w",
               "dt_w", "dt_b", "A_log", "D", "out_proj_w")}
    for i in range(N_LAYER):
        lk = jax.random.split(keys[2 + i], 7)
        stacks["norm_w"].append(jnp.ones((1, D_MODEL), jnp.float32))
        stacks["in_proj_w"].append(nrm(lk[0], (D_MODEL, 2 * D_INNER), 0.1))
        stacks["conv_w"].append(nrm(lk[1], (D_CONV, D_INNER), 0.2))
        stacks["conv_b"].append(nrm(lk[2], (1, D_INNER), 0.1))
        stacks["x_proj_w"].append(nrm(lk[3], (D_INNER, DT_RANK + 2 * D_STATE), 0.1))
        stacks["dt_w"].append(nrm(lk[4], (DT_RANK, D_INNER), 0.3))
        stacks["dt_b"].append(nrm(lk[5], (1, D_INNER), 0.1))
        # mamba-minimal init: A = repeat(arange(1, d_state+1)), D = ones
        stacks["A_log"].append(jnp.log(jnp.broadcast_to(
            jnp.arange(1, D_STATE + 1, dtype=jnp.float32), (D_INNER, D_STATE))))
        stacks["D"].append(jnp.ones((1, D_INNER), jnp.float32))
        stacks["out_proj_w"].append(nrm(lk[6], (D_INNER, D_MODEL), 0.1))
    for name, vals in stacks.items():
        params[name] = jnp.stack(vals, axis=0)
    return params


# ----------------------------------- main -------------------------------------
if __name__ == "__main__":
    key = jax.random.PRNGKey(0)
    kp, kx, kf = jax.random.split(key, 3)
    params = init_params(kp)

    B, L = 2, 9                                   # seq length must be a multiple of 3
    tokens = jax.random.randint(kx, (B, L), 0, VOCAB, dtype=jnp.int32)
    features = jax.random.normal(kf, (B, L // 3, 2), jnp.float32)

    logits = jax.jit(forward)(params, tokens, features)
    jax.block_until_ready(logits)

    assert logits.shape == (B, L, VOCAB)
    assert bool(jnp.all(jnp.isfinite(logits)))
    # disallowed token 0 at position-in-message 0 must be masked to exactly -1e9
    assert bool(logits[0, 0, 0] == jnp.float32(-1000000000.0))

    # cross-check the fused kernel against a pure-JAX (XLA) reference
    ref = jax.jit(_reference_forward)(params, tokens, features)
    assert bool(jnp.allclose(logits, ref, rtol=2e-3, atol=2e-3))

    print("KERNEL_OK")
</pallas_src>

<mosaic_0001>
module attributes {stable_mosaic.version = 11 : i64} {
  func.func @_fused_forward_kernel(%arg0: memref<9x64xf32, #tpu.memory_space<vmem>>, %arg1: memref<2x1x64xf32, #tpu.memory_space<vmem>>, %arg2: memref<2x64x256xf32, #tpu.memory_space<vmem>>, %arg3: memref<2x4x128xf32, #tpu.memory_space<vmem>>, %arg4: memref<2x1x128xf32, #tpu.memory_space<vmem>>, %arg5: memref<2x128x128xf32, #tpu.memory_space<vmem>>, %arg6: memref<2x1x128xf32, #tpu.memory_space<vmem>>, %arg7: memref<2x32x128xf32, #tpu.memory_space<vmem>>, %arg8: memref<2x128x144xf32, #tpu.memory_space<vmem>>, %arg9: memref<2x128x144xf32, #tpu.memory_space<vmem>>, %arg10: memref<2x144x128xf32, #tpu.memory_space<vmem>>, %arg11: memref<2x1x128xf32, #tpu.memory_space<vmem>>, %arg12: memref<2x128x64xf32, #tpu.memory_space<vmem>>, %arg13: memref<1x64xf32, #tpu.memory_space<vmem>>, %arg14: memref<64x768xf32, #tpu.memory_space<vmem>>, %arg15: memref<144x9xf32, #tpu.memory_space<vmem>>, %arg16: memref<9x1152xf32, #tpu.memory_space<vmem>>, %arg17: memref<9x1152xf32, #tpu.memory_space<vmem>>, %arg18: memref<9x144xf32, #tpu.memory_space<vmem>>, %arg19: memref<9x384xf32, #tpu.memory_space<vmem>>, %arg20: memref<2x9x384xf32, #tpu.memory_space<vmem>>) attributes {dimension_semantics = [], scalar_prefetch = 0 : i64, scratch_operands = 0 : i64, tpu.core_type = #tpu.core_type<tc>} {
    %0 = tpu.iota {dimensions = array<i32: 1>} : vector<1x128xi32>
    %c64_i32 = arith.constant 64 : i32
    %1 = vector.broadcast %c64_i32 : i32 to vector<1x128xi32>
    %2 = arith.cmpi slt, %0, %1 : vector<1x128xi32>
    %3 = tpu.iota {dimensions = array<i32: 1>} : vector<1x64xi32>
    %c32_i32 = arith.constant 32 : i32
    %4 = vector.broadcast %c32_i32 : i32 to vector<1x64xi32>
    %5 = arith.cmpi slt, %3, %4 : vector<1x64xi32>
    %c0 = arith.constant 0 : index
    %c0_0 = arith.constant 0 : index
    %6 = vector.load %arg15[%c0, %c0_0] : memref<144x9xf32, #tpu.memory_space<vmem>>, vector<144x9xf32>
    %c0_1 = arith.constant 0 : index
    %c0_2 = arith.constant 0 : index
    %7 = vector.load %arg18[%c0_1, %c0_2] : memref<9x144xf32, #tpu.memory_space<vmem>>, vector<9x144xf32>
    %c0_3 = arith.constant 0 : index
    %c0_4 = arith.constant 0 : index
    %8 = vector.load %arg16[%c0_3, %c0_4] : memref<9x1152xf32, #tpu.memory_space<vmem>>, vector<9x1152xf32>
    %c0_5 = arith.constant 0 : index
    %c0_6 = arith.constant 0 : index
    %9 = vector.load %arg17[%c0_5, %c0_6] : memref<9x1152xf32, #tpu.memory_space<vmem>>, vector<9x1152xf32>
    %c0_7 = arith.constant 0 : index
    %c0_8 = arith.constant 0 : index
    %10 = vector.load %arg0[%c0_7, %c0_8] : memref<9x64xf32, #tpu.memory_space<vmem>>, vector<9x64xf32>
    %c0_9 = arith.constant 0 : index
    %c0_10 = arith.constant 0 : index
    %c0_11 = arith.constant 0 : index
    %11 = vector.load %arg1[%c0_9, %c0_10, %c0_11] : memref<2x1x64xf32, #tpu.memory_space<vmem>>, vector<1x1x64xf32>
    %12 = vector.shape_cast %11 : vector<1x1x64xf32> to vector<1x64xf32>
    %13 = arith.mulf %10, %10 : vector<9x64xf32>
    %cst = arith.constant 0.000000e+00 : f32
    %14 = vector.shape_cast %5 : vector<1x64xi1> to vector<1x64xi1>
    %15 = vector.broadcast %14 : vector<1x64xi1> to vector<9x64xi1>
    %16 = vector.broadcast %cst : f32 to vector<9x64xf32>
    %17 = arith.select %15, %13, %16 : vector<9x64xi1>, vector<9x64xf32>
    %cst_12 = arith.constant dense<0.000000e+00> : vector<9xf32>
    %18 = vector.multi_reduction <add>, %17, %cst_12 [1] : vector<9x64xf32> to vector<9xf32>
    %19 = vector.shape_cast %18 : vector<9xf32> to vector<9x1xf32>
    %cst_13 = arith.constant 0.000000e+00 : f32
    %20 = vector.shape_cast %5 : vector<1x64xi1> to vector<1x64xi1>
    %21 = vector.broadcast %20 : vector<1x64xi1> to vector<9x64xi1>
    %22 = vector.broadcast %cst_13 : f32 to vector<9x64xf32>
    %23 = arith.select %21, %22, %13 : vector<9x64xi1>, vector<9x64xf32>
    %cst_14 = arith.constant dense<0.000000e+00> : vector<9xf32>
    %24 = vector.multi_reduction <add>, %23, %cst_14 [1] : vector<9x64xf32> to vector<9xf32>
    %25 = vector.shape_cast %24 : vector<9xf32> to vector<9x1xf32>
    %26 = vector.shape_cast %5 : vector<1x64xi1> to vector<1x64xi1>
    %27 = vector.broadcast %26 : vector<1x64xi1> to vector<9x64xi1>
    %28 = vector.shape_cast %19 : vector<9x1xf32> to vector<9x1xf32>
    %29 = vector.broadcast %28 : vector<9x1xf32> to vector<9x64xf32>
    %30 = vector.shape_cast %25 : vector<9x1xf32> to vector<9x1xf32>
    %31 = vector.broadcast %30 : vector<9x1xf32> to vector<9x64xf32>
    %32 = arith.select %27, %29, %31 : vector<9x64xi1>, vector<9x64xf32>
    %cst_15 = arith.constant 3.125000e-02 : f32
    %33 = vector.broadcast %cst_15 : f32 to vector<9x64xf32>
    %34 = arith.mulf %32, %33 : vector<9x64xf32>
    %cst_16 = arith.constant 9.99999974E-6 : f32
    %35 = vector.broadcast %cst_16 : f32 to vector<9x64xf32>
    %36 = arith.addf %34, %35 : vector<9x64xf32>
    %37 = math.rsqrt %36 : vector<9x64xf32>
    %38 = arith.mulf %10, %37 : vector<9x64xf32>
    %39 = vector.broadcast %12 : vector<1x64xf32> to vector<9x64xf32>
    %40 = arith.mulf %38, %39 : vector<9x64xf32>
    %c0_17 = arith.constant 0 : index
    %c0_18 = arith.constant 0 : index
    %c0_19 = arith.constant 0 : index
    %41 = vector.load %arg2[%c0_17, %c0_18, %c0_19] : memref<2x64x256xf32, #tpu.memory_space<vmem>>, vector<1x64x256xf32>
    %42 = vector.shape_cast %41 : vector<1x64x256xf32> to vector<64x256xf32>
    %cst_20 = arith.constant dense<0.000000e+00> : vector<9x256xf32>
    %43 = tpu.matmul %40, %42, %cst_20 {dimension_numbers = #tpu.dot_dimension_numbers<[1], [0], [0], [1], [0, 0, 1, 1], [], []>} : vector<9x64xf32>, vector<64x256xf32>, vector<9x256xf32> -> vector<9x256xf32>
    %44 = vector.extract_strided_slice %43 {offsets = [0, 0], sizes = [9, 128], strides = [1, 1]} : vector<9x256xf32> to vector<9x128xf32>
    %45 = vector.extract_strided_slice %43 {offsets = [0, 128], sizes = [9, 128], strides = [1, 1]} : vector<9x256xf32> to vector<9x128xf32>
    %c0_21 = arith.constant 0 : index
    %c0_22 = arith.constant 0 : index
    %c0_23 = arith.constant 0 : index
    %46 = vector.load %arg3[%c0_21, %c0_22, %c0_23] : memref<2x4x128xf32, #tpu.memory_space<vmem>>, vector<1x4x128xf32>
    %47 = vector.shape_cast %46 : vector<1x4x128xf32> to vector<4x128xf32>
    %c0_24 = arith.constant 0 : index
    %c0_25 = arith.constant 0 : index
    %c0_26 = arith.constant 0 : index
    %48 = vector.load %arg4[%c0_24, %c0_25, %c0_26] : memref<2x1x128xf32, #tpu.memory_space<vmem>>, vector<1x1x128xf32>
    %49 = vector.shape_cast %48 : vector<1x1x128xf32> to vector<1x128xf32>
    %50 = vector.extract_strided_slice %47 {offsets = [3, 0], sizes = [1, 128], strides = [1, 1]} : vector<4x128xf32> to vector<1x128xf32>
    %51 = vector.broadcast %50 : vector<1x128xf32> to vector<9x128xf32>
    %52 = arith.mulf %44, %51 : vector<9x128xf32>
    %53 = vector.broadcast %49 : vector<1x128xf32> to vector<9x128xf32>
    %54 = arith.addf %53, %52 : vector<9x128xf32>
    %cst_27 = arith.constant 0.000000e+00 : f32
    %55 = vector.broadcast %cst_27 : f32 to vector<3x128xf32>
    %56 = vector.extract_strided_slice %44 {offsets = [0, 0], sizes = [6, 128], strides = [1, 1]} : vector<9x128xf32> to vector<6x128xf32>
    %57 = tpu.concatenate %55, %56 in 0 : vector<3x128xf32>, vector<6x128xf32> -> vector<9x128xf32>
    %58 = vector.extract_strided_slice %47 {offsets = [0, 0], sizes = [1, 128], strides = [1, 1]} : vector<4x128xf32> to vector<1x128xf32>
    %59 = vector.broadcast %58 : vector<1x128xf32> to vector<9x128xf32>
    %60 = arith.mulf %57, %59 : vector<9x128xf32>
    %61 = arith.addf %54, %60 : vector<9x128xf32>
    %cst_28 = arith.constant 0.000000e+00 : f32
    %62 = vector.broadcast %cst_28 : f32 to vector<2x128xf32>
    %63 = vector.extract_strided_slice %44 {offsets = [0, 0], sizes = [7, 128], strides = [1, 1]} : vector<9x128xf32> to vector<7x128xf32>
    %64 = tpu.concatenate %62, %63 in 0 : vector<2x128xf32>, vector<7x128xf32> -> vector<9x128xf32>
    %65 = vector.extract_strided_slice %47 {offsets = [1, 0], sizes = [1, 128], strides = [1, 1]} : vector<4x128xf32> to vector<1x128xf32>
    %66 = vector.broadcast %65 : vector<1x128xf32> to vector<9x128xf32>
    %67 = arith.mulf %64, %66 : vector<9x128xf32>
    %68 = arith.addf %61, %67 : vector<9x128xf32>
    %cst_29 = arith.constant 0.000000e+00 : f32
    %69 = vector.broadcast %cst_29 : f32 to vector<1x128xf32>
    %70 = vector.extract_strided_slice %44 {offsets = [0, 0], sizes = [8, 128], strides = [1, 1]} : vector<9x128xf32> to vector<8x128xf32>
    %71 = tpu.concatenate %69, %70 in 0 : vector<1x128xf32>, vector<8x128xf32> -> vector<9x128xf32>
    %72 = vector.extract_strided_slice %47 {offsets = [2, 0], sizes = [1, 128], strides = [1, 1]} : vector<4x128xf32> to vector<1x128xf32>
    %73 = vector.broadcast %72 : vector<1x128xf32> to vector<9x128xf32>
    %74 = arith.mulf %71, %73 : vector<9x128xf32>
    %75 = arith.addf %68, %74 : vector<9x128xf32>
    %76 = arith.negf %75 : vector<9x128xf32>
    %77 = math.exp %76 : vector<9x128xf32>
    %cst_30 = arith.constant 1.000000e+00 : f32
    %78 = vector.broadcast %cst_30 : f32 to vector<9x128xf32>
    %79 = arith.addf %78, %77 : vector<9x128xf32>
    %80 = arith.divf %78, %79 : vector<9x128xf32>
    %81 = arith.mulf %75, %80 : vector<9x128xf32>
    %c0_31 = arith.constant 0 : index
    %c0_32 = arith.constant 0 : index
    %c0_33 = arith.constant 0 : index
    %82 = vector.load %arg5[%c0_31, %c0_32, %c0_33] : memref<2x128x128xf32, #tpu.memory_space<vmem>>, vector<1x128x128xf32>
    %83 = vector.shape_cast %82 : vector<1x128x128xf32> to vector<128x128xf32>
    %cst_34 = arith.constant dense<0.000000e+00> : vector<9x128xf32>
    %84 = tpu.matmul %81, %83, %cst_34 {dimension_numbers = #tpu.dot_dimension_numbers<[1], [0], [0], [1], [0, 0, 1, 1], [], []>} : vector<9x128xf32>, vector<128x128xf32>, vector<9x128xf32> -> vector<9x128xf32>
    %c0_35 = arith.constant 0 : index
    %c0_36 = arith.constant 0 : index
    %c0_37 = arith.constant 0 : index
    %85 = vector.load %arg6[%c0_35, %c0_36, %c0_37] : memref<2x1x128xf32, #tpu.memory_space<vmem>>, vector<1x1x128xf32>
    %86 = vector.shape_cast %85 : vector<1x1x128xf32> to vector<1x128xf32>
    %87 = vector.broadcast %86 : vector<1x128xf32> to vector<9x128xf32>
    %88 = arith.addf %84, %87 : vector<9x128xf32>
    %cst_38 = arith.constant 0.000000e+00 : f32
    %89 = vector.broadcast %cst_38 : f32 to vector<9x128xf32>
    %90 = arith.maximumf %88, %89 : vector<9x128xf32>
    %91 = vector.broadcast %cst_38 : f32 to vector<9x128xf32>
    %92 = arith.subf %88, %91 : vector<9x128xf32>
    %93 = arith.cmpf one, %92, %92 : vector<9x128xf32>
    %94 = vector.broadcast %cst_38 : f32 to vector<9x128xf32>
    %95 = arith.addf %88, %94 : vector<9x128xf32>
    %96 = math.absf %92 : vector<9x128xf32>
    %cst_39 = arith.constant 0.000000e+00 : f32
    %97 = vector.broadcast %cst_39 : f32 to vector<9x128xf32>
    %98 = arith.subf %97, %96 : vector<9x128xf32>
    %99 = math.exp %98 : vector<9x128xf32>
    %100 = math.log1p %99 : vector<9x128xf32>
    %101 = arith.addf %90, %100 : vector<9x128xf32>
    %102 = arith.select %93, %95, %101 : vector<9x128xi1>, vector<9x128xf32>
    %103 = arith.mulf %102, %81 : vector<9x128xf32>
    %cst_40 = arith.constant dense<0.000000e+00> : vector<144x128xf32>
    %104 = tpu.matmul %6, %102, %cst_40 {dimension_numbers = #tpu.dot_dimension_numbers<[1], [0], [0], [1], [0, 0, 1, 1], [], []>} : vector<144x9xf32>, vector<9x128xf32>, vector<144x128xf32> -> vector<144x128xf32>
    %c0_41 = arith.constant 0 : index
    %c0_42 = arith.constant 0 : index
    %c0_43 = arith.constant 0 : index
    %105 = vector.load %arg10[%c0_41, %c0_42, %c0_43] : memref<2x144x128xf32, #tpu.memory_space<vmem>>, vector<1x144x128xf32>
    %106 = vector.shape_cast %105 : vector<1x144x128xf32> to vector<144x128xf32>
    %107 = arith.mulf %104, %106 : vector<144x128xf32>
    %108 = math.exp %107 : vector<144x128xf32>
    %c0_44 = arith.constant 0 : index
    %c0_45 = arith.constant 0 : index
    %c0_46 = arith.constant 0 : index
    %109 = vector.load %arg7[%c0_44, %c0_45, %c0_46] : memref<2x32x128xf32, #tpu.memory_space<vmem>>, vector<1x32x128xf32>
    %110 = vector.shape_cast %109 : vector<1x32x128xf32> to vector<32x128xf32>
    %cst_47 = arith.constant dense<0.000000e+00> : vector<32x9xf32>
    %111 = tpu.matmul %110, %81, %cst_47 {dimension_numbers = #tpu.dot_dimension_numbers<[1], [1], [0], [0], [0, 0, 1, 0], [], []>} : vector<32x128xf32>, vector<9x128xf32>, vector<32x9xf32> -> vector<32x9xf32>
    %112 = vector.extract_strided_slice %111 {offsets = [0, 0], sizes = [16, 9], strides = [1, 1]} : vector<32x9xf32> to vector<16x9xf32>
    %cst_48 = arith.constant dense<0.000000e+00> : vector<16x1152xf32>
    %113 = tpu.matmul %112, %8, %cst_48 {dimension_numbers = #tpu.dot_dimension_numbers<[1], [0], [0], [1], [0, 0, 1, 1], [], []>} : vector<16x9xf32>, vector<9x1152xf32>, vector<16x1152xf32> -> vector<16x1152xf32>
    %114 = vector.extract_strided_slice %111 {offsets = [16, 0], sizes = [16, 9], strides = [1, 1]} : vector<32x9xf32> to vector<16x9xf32>
    %cst_49 = arith.constant dense<0.000000e+00> : vector<16x1152xf32>
    %115 = tpu.matmul %114, %9, %cst_49 {dimension_numbers = #tpu.dot_dimension_numbers<[1], [0], [0], [1], [0, 0, 1, 1], [], []>} : vector<16x9xf32>, vector<9x1152xf32>, vector<16x1152xf32> -> vector<16x1152xf32>
    %116 = arith.addf %113, %115 : vector<16x1152xf32>
    %cst_50 = arith.constant 0.000000e+00 : f32
    %117 = vector.broadcast %cst_50 : f32 to vector<16x128xf32>
    %118 = vector.extract_strided_slice %103 {offsets = [0, 0], sizes = [1, 128], strides = [1, 1]} : vector<9x128xf32> to vector<1x128xf32>
    %119 = vector.extract_strided_slice %116 {offsets = [0, 0], sizes = [16, 128], strides = [1, 1]} : vector<16x1152xf32> to vector<16x128xf32>
    %120 = vector.broadcast %118 : vector<1x128xf32> to vector<16x128xf32>
    %121 = arith.mulf %120, %119 : vector<16x128xf32>
    %122 = vector.extract_strided_slice %108 {offsets = [0, 0], sizes = [16, 128], strides = [1, 1]} : vector<144x128xf32> to vector<16x128xf32>
    %123 = arith.mulf %122, %117 : vector<16x128xf32>
    %124 = arith.addf %123, %121 : vector<16x128xf32>
    %125 = vector.extract_strided_slice %103 {offsets = [1, 0], sizes = [1, 128], strides = [1, 1]} : vector<9x128xf32> to vector<1x128xf32>
    %126 = vector.extract_strided_slice %116 {offsets = [0, 128], sizes = [16, 128], strides = [1, 1]} : vector<16x1152xf32> to vector<16x128xf32>
    %127 = vector.broadcast %125 : vector<1x128xf32> to vector<16x128xf32>
    %128 = arith.mulf %127, %126 : vector<16x128xf32>
    %129 = vector.extract_strided_slice %108 {offsets = [16, 0], sizes = [16, 128], strides = [1, 1]} : vector<144x128xf32> to vector<16x128xf32>
    %130 = arith.mulf %129, %124 : vector<16x128xf32>
    %131 = arith.addf %130, %128 : vector<16x128xf32>
    %132 = vector.extract_strided_slice %103 {offsets = [2, 0], sizes = [1, 128], strides = [1, 1]} : vector<9x128xf32> to vector<1x128xf32>
    %133 = vector.extract_strided_slice %116 {offsets = [0, 256], sizes = [16, 128], strides = [1, 1]} : vector<16x1152xf32> to vector<16x128xf32>
    %134 = vector.broadcast %132 : vector<1x128xf32> to vector<16x128xf32>
    %135 = arith.mulf %134, %133 : vector<16x128xf32>
    %136 = vector.extract_strided_slice %108 {offsets = [32, 0], sizes = [16, 128], strides = [1, 1]} : vector<144x128xf32> to vector<16x128xf32>
    %137 = arith.mulf %136, %131 : vector<16x128xf32>
    %138 = arith.addf %137, %135 : vector<16x128xf32>
    %139 = vector.extract_strided_slice %103 {offsets = [3, 0], sizes = [1, 128], strides = [1, 1]} : vector<9x128xf32> to vector<1x128xf32>
    %140 = vector.extract_strided_slice %116 {offsets = [0, 384], sizes = [16, 128], strides = [1, 1]} : vector<16x1152xf32> to vector<16x128xf32>
    %141 = vector.broadcast %139 : vector<1x128xf32> to vector<16x128xf32>
    %142 = arith.mulf %141, %140 : vector<16x128xf32>
    %143 = vector.extract_strided_slice %108 {offsets = [48, 0], sizes = [16, 128], strides = [1, 1]} : vector<144x128xf32> to vector<16x128xf32>
    %144 = arith.mulf %143, %138 : vector<16x128xf32>
    %145 = arith.addf %144, %142 : vector<16x128xf32>
    %146 = vector.extract_strided_slice %103 {offsets = [4, 0], sizes = [1, 128], strides = [1, 1]} : vector<9x128xf32> to vector<1x128xf32>
    %147 = vector.extract_strided_slice %116 {offsets = [0, 512], sizes = [16, 128], strides = [1, 1]} : vector<16x1152xf32> to vector<16x128xf32>
    %148 = vector.broadcast %146 : vector<1x128xf32> to vector<16x128xf32>
    %149 = arith.mulf %148, %147 : vector<16x128xf32>
    %150 = vector.extract_strided_slice %108 {offsets = [64, 0], sizes = [16, 128], strides = [1, 1]} : vector<144x128xf32> to vector<16x128xf32>
    %151 = arith.mulf %150, %145 : vector<16x128xf32>
    %152 = arith.addf %151, %149 : vector<16x128xf32>
    %153 = vector.extract_strided_slice %103 {offsets = [5, 0], sizes = [1, 128], strides = [1, 1]} : vector<9x128xf32> to vector<1x128xf32>
    %154 = vector.extract_strided_slice %116 {offsets = [0, 640], sizes = [16, 128], strides = [1, 1]} : vector<16x1152xf32> to vector<16x128xf32>
    %155 = vector.broadcast %153 : vector<1x128xf32> to vector<16x128xf32>
    %156 = arith.mulf %155, %154 : vector<16x128xf32>
    %157 = vector.extract_strided_slice %108 {offsets = [80, 0], sizes = [16, 128], strides = [1, 1]} : vector<144x128xf32> to vector<16x128xf32>
    %158 = arith.mulf %157, %152 : vector<16x128xf32>
    %159 = arith.addf %158, %156 : vector<16x128xf32>
    %160 = vector.extract_strided_slice %103 {offsets = [6, 0], sizes = [1, 128], strides = [1, 1]} : vector<9x128xf32> to vector<1x128xf32>
    %161 = vector.extract_strided_slice %116 {offsets = [0, 768], sizes = [16, 128], strides = [1, 1]} : vector<16x1152xf32> to vector<16x128xf32>
    %162 = vector.broadcast %160 : vector<1x128xf32> to vector<16x128xf32>
    %163 = arith.mulf %162, %161 : vector<16x128xf32>
    %164 = vector.extract_strided_slice %108 {offsets = [96, 0], sizes = [16, 128], strides = [1, 1]} : vector<144x128xf32> to vector<16x128xf32>
    %165 = arith.mulf %164, %159 : vector<16x128xf32>
    %166 = arith.addf %165, %163 : vector<16x128xf32>
    %167 = vector.extract_strided_slice %103 {offsets = [7, 0], sizes = [1, 128], strides = [1, 1]} : vector<9x128xf32> to vector<1x128xf32>
    %168 = vector.extract_strided_slice %116 {offsets = [0, 896], sizes = [16, 128], strides = [1, 1]} : vector<16x1152xf32> to vector<16x128xf32>
    %169 = vector.broadcast %167 : vector<1x128xf32> to vector<16x128xf32>
    %170 = arith.mulf %169, %168 : vector<16x128xf32>
    %171 = vector.extract_strided_slice %108 {offsets = [112, 0], sizes = [16, 128], strides = [1, 1]} : vector<144x128xf32> to vector<16x128xf32>
    %172 = arith.mulf %171, %166 : vector<16x128xf32>
    %173 = arith.addf %172, %170 : vector<16x128xf32>
    %174 = vector.extract_strided_slice %103 {offsets = [8, 0], sizes = [1, 128], strides = [1, 1]} : vector<9x128xf32> to vector<1x128xf32>
    %175 = vector.extract_strided_slice %116 {offsets = [0, 1024], sizes = [16, 128], strides = [1, 1]} : vector<16x1152xf32> to vector<16x128xf32>
    %176 = vector.broadcast %174 : vector<1x128xf32> to vector<16x128xf32>
    %177 = arith.mulf %176, %175 : vector<16x128xf32>
    %178 = vector.extract_strided_slice %108 {offsets = [128, 0], sizes = [16, 128], strides = [1, 1]} : vector<144x128xf32> to vector<16x128xf32>
    %179 = arith.mulf %178, %173 : vector<16x128xf32>
    %180 = arith.addf %179, %177 : vector<16x128xf32>
    %181 = tpu.concatenate %124, %131, %138, %145, %152, %159, %166, %173, %180 in 0 : vector<16x128xf32>, vector<16x128xf32>, vector<16x128xf32>, vector<16x128xf32>, vector<16x128xf32>, vector<16x128xf32>, vector<16x128xf32>, vector<16x128xf32>, vector<16x128xf32> -> vector<144x128xf32>
    %c0_51 = arith.constant 0 : index
    %c0_52 = arith.constant 0 : index
    %c0_53 = arith.constant 0 : index
    %182 = vector.load %arg8[%c0_51, %c0_52, %c0_53] : memref<2x128x144xf32, #tpu.memory_space<vmem>>, vector<1x128x144xf32>
    %183 = vector.shape_cast %182 : vector<1x128x144xf32> to vector<128x144xf32>
    %cst_54 = arith.constant dense<0.000000e+00> : vector<9x144xf32>
    %184 = tpu.matmul %81, %183, %cst_54 {dimension_numbers = #tpu.dot_dimension_numbers<[1], [0], [0], [1], [0, 0, 1, 1], [], []>} : vector<9x128xf32>, vector<128x144xf32>, vector<9x144xf32> -> vector<9x144xf32>
    %185 = arith.mulf %7, %184 : vector<9x144xf32>
    %c0_55 = arith.constant 0 : index
    %c0_56 = arith.constant 0 : index
    %c0_57 = arith.constant 0 : index
    %186 = vector.load %arg9[%c0_55, %c0_56, %c0_57] : memref<2x128x144xf32, #tpu.memory_space<vmem>>, vector<1x128x144xf32>
    %187 = vector.shape_cast %186 : vector<1x128x144xf32> to vector<128x144xf32>
    %cst_58 = arith.constant dense<0.000000e+00> : vector<9x144xf32>
    %188 = tpu.matmul %81, %187, %cst_58 {dimension_numbers = #tpu.dot_dimension_numbers<[1], [0], [0], [1], [0, 0, 1, 1], [], []>} : vector<9x128xf32>, vector<128x144xf32>, vector<9x144xf32> -> vector<9x144xf32>
    %189 = arith.mulf %7, %188 : vector<9x144xf32>
    %cst_59 = arith.constant dense<0.000000e+00> : vector<9x128xf32>
    %190 = tpu.matmul %185, %181, %cst_59 {dimension_numbers = #tpu.dot_dimension_numbers<[1], [0], [0], [1], [0, 0, 1, 1], [], []>} : vector<9x144xf32>, vector<144x128xf32>, vector<9x128xf32> -> vector<9x128xf32>
    %cst_60 = arith.constant dense<0.000000e+00> : vector<9x128xf32>
    %191 = tpu.matmul %189, %181, %cst_60 {dimension_numbers = #tpu.dot_dimension_numbers<[1], [0], [0], [1], [0, 0, 1, 1], [], []>} : vector<9x144xf32>, vector<144x128xf32>, vector<9x128xf32> -> vector<9x128xf32>
    %192 = vector.shape_cast %2 : vector<1x128xi1> to vector<1x128xi1>
    %193 = vector.broadcast %192 : vector<1x128xi1> to vector<9x128xi1>
    %194 = arith.select %193, %190, %191 : vector<9x128xi1>, vector<9x128xf32>
    %c0_61 = arith.constant 0 : index
    %c0_62 = arith.constant 0 : index
    %c0_63 = arith.constant 0 : index
    %195 = vector.load %arg11[%c0_61, %c0_62, %c0_63] : memref<2x1x128xf32, #tpu.memory_space<vmem>>, vector<1x1x128xf32>
    %196 = vector.shape_cast %195 : vector<1x1x128xf32> to vector<1x128xf32>
    %197 = vector.broadcast %196 : vector<1x128xf32> to vector<9x128xf32>
    %198 = arith.mulf %81, %197 : vector<9x128xf32>
    %199 = arith.addf %194, %198 : vector<9x128xf32>
    %200 = arith.negf %45 : vector<9x128xf32>
    %201 = math.exp %200 : vector<9x128xf32>
    %cst_64 = arith.constant 1.000000e+00 : f32
    %202 = vector.broadcast %cst_64 : f32 to vector<9x128xf32>
    %203 = arith.addf %202, %201 : vector<9x128xf32>
    %204 = arith.divf %202, %203 : vector<9x128xf32>
    %205 = arith.mulf %45, %204 : vector<9x128xf32>
    %206 = arith.mulf %199, %205 : vector<9x128xf32>
    %c0_65 = arith.constant 0 : index
    %c0_66 = arith.constant 0 : index
    %c0_67 = arith.constant 0 : index
    %207 = vector.load %arg12[%c0_65, %c0_66, %c0_67] : memref<2x128x64xf32, #tpu.memory_space<vmem>>, vector<1x128x64xf32>
    %208 = vector.shape_cast %207 : vector<1x128x64xf32> to vector<128x64xf32>
    %cst_68 = arith.constant dense<0.000000e+00> : vector<9x64xf32>
    %209 = tpu.matmul %206, %208, %cst_68 {dimension_numbers = #tpu.dot_dimension_numbers<[1], [0], [0], [1], [0, 0, 1, 1], [], []>} : vector<9x128xf32>, vector<128x64xf32>, vector<9x64xf32> -> vector<9x64xf32>
    %210 = arith.addf %10, %209 : vector<9x64xf32>
    %c1 = arith.constant 1 : index
    %c0_69 = arith.constant 0 : index
    %c0_70 = arith.constant 0 : index
    %211 = vector.load %arg1[%c1, %c0_69, %c0_70] : memref<2x1x64xf32, #tpu.memory_space<vmem>>, vector<1x1x64xf32>
    %212 = vector.shape_cast %211 : vector<1x1x64xf32> to vector<1x64xf32>
    %213 = arith.mulf %210, %210 : vector<9x64xf32>
    %cst_71 = arith.constant 0.000000e+00 : f32
    %214 = vector.shape_cast %5 : vector<1x64xi1> to vector<1x64xi1>
    %215 = vector.broadcast %214 : vector<1x64xi1> to vector<9x64xi1>
    %216 = vector.broadcast %cst_71 : f32 to vector<9x64xf32>
    %217 = arith.select %215, %213, %216 : vector<9x64xi1>, vector<9x64xf32>
    %cst_72 = arith.constant dense<0.000000e+00> : vector<9xf32>
    %218 = vector.multi_reduction <add>, %217, %cst_72 [1] : vector<9x64xf32> to vector<9xf32>
    %219 = vector.shape_cast %218 : vector<9xf32> to vector<9x1xf32>
    %cst_73 = arith.constant 0.000000e+00 : f32
    %220 = vector.shape_cast %5 : vector<1x64xi1> to vector<1x64xi1>
    %221 = vector.broadcast %220 : vector<1x64xi1> to vector<9x64xi1>
    %222 = vector.broadcast %cst_73 : f32 to vector<9x64xf32>
    %223 = arith.select %221, %222, %213 : vector<9x64xi1>, vector<9x64xf32>
    %cst_74 = arith.constant dense<0.000000e+00> : vector<9xf32>
    %224 = vector.multi_reduction <add>, %223, %cst_74 [1] : vector<9x64xf32> to vector<9xf32>
    %225 = vector.shape_cast %224 : vector<9xf32> to vector<9x1xf32>
    %226 = vector.shape_cast %5 : vector<1x64xi1> to vector<1x64xi1>
    %227 = vector.broadcast %226 : vector<1x64xi1> to vector<9x64xi1>
    %228 = vector.shape_cast %219 : vector<9x1xf32> to vector<9x1xf32>
    %229 = vector.broadcast %228 : vector<9x1xf32> to vector<9x64xf32>
    %230 = vector.shape_cast %225 : vector<9x1xf32> to vector<9x1xf32>
    %231 = vector.broadcast %230 : vector<9x1xf32> to vector<9x64xf32>
    %232 = arith.select %227, %229, %231 : vector<9x64xi1>, vector<9x64xf32>
    %cst_75 = arith.constant 3.125000e-02 : f32
    %233 = vector.broadcast %cst_75 : f32 to vector<9x64xf32>
    %234 = arith.mulf %232, %233 : vector<9x64xf32>
    %cst_76 = arith.constant 9.99999974E-6 : f32
    %235 = vector.broadcast %cst_76 : f32 to vector<9x64xf32>
    %236 = arith.addf %234, %235 : vector<9x64xf32>
    %237 = math.rsqrt %236 : vector<9x64xf32>
    %238 = arith.mulf %210, %237 : vector<9x64xf32>
    %239 = vector.broadcast %212 : vector<1x64xf32> to vector<9x64xf32>
    %240 = arith.mulf %238, %239 : vector<9x64xf32>
    %c1_77 = arith.constant 1 : index
    %c0_78 = arith.constant 0 : index
    %c0_79 = arith.constant 0 : index
    %241 = vector.load %arg2[%c1_77, %c0_78, %c0_79] : memref<2x64x256xf32, #tpu.memory_space<vmem>>, vector<1x64x256xf32>
    %242 = vector.shape_cast %241 : vector<1x64x256xf32> to vector<64x256xf32>
    %cst_80 = arith.constant dense<0.000000e+00> : vector<9x256xf32>
    %243 = tpu.matmul %240, %242, %cst_80 {dimension_numbers = #tpu.dot_dimension_numbers<[1], [0], [0], [1], [0, 0, 1, 1], [], []>} : vector<9x64xf32>, vector<64x256xf32>, vector<9x256xf32> -> vector<9x256xf32>
    %244 = vector.extract_strided_slice %243 {offsets = [0, 0], sizes = [9, 128], strides = [1, 1]} : vector<9x256xf32> to vector<9x128xf32>
    %245 = vector.extract_strided_slice %243 {offsets = [0, 128], sizes = [9, 128], strides = [1, 1]} : vector<9x256xf32> to vector<9x128xf32>
    %c1_81 = arith.constant 1 : index
    %c0_82 = arith.constant 0 : index
    %c0_83 = arith.constant 0 : index
    %246 = vector.load %arg3[%c1_81, %c0_82, %c0_83] : memref<2x4x128xf32, #tpu.memory_space<vmem>>, vector<1x4x128xf32>
    %247 = vector.shape_cast %246 : vector<1x4x128xf32> to vector<4x128xf32>
    %c1_84 = arith.constant 1 : index
    %c0_85 = arith.constant 0 : index
    %c0_86 = arith.constant 0 : index
    %248 = vector.load %arg4[%c1_84, %c0_85, %c0_86] : memref<2x1x128xf32, #tpu.memory_space<vmem>>, vector<1x1x128xf32>
    %249 = vector.shape_cast %248 : vector<1x1x128xf32> to vector<1x128xf32>
    %250 = vector.extract_strided_slice %247 {offsets = [3, 0], sizes = [1, 128], strides = [1, 1]} : vector<4x128xf32> to vector<1x128xf32>
    %251 = vector.broadcast %250 : vector<1x128xf32> to vector<9x128xf32>
    %252 = arith.mulf %244, %251 : vector<9x128xf32>
    %253 = vector.broadcast %249 : vector<1x128xf32> to vector<9x128xf32>
    %254 = arith.addf %253, %252 : vector<9x128xf32>
    %cst_87 = arith.constant 0.000000e+00 : f32
    %255 = vector.broadcast %cst_87 : f32 to vector<3x128xf32>
    %256 = vector.extract_strided_slice %244 {offsets = [0, 0], sizes = [6, 128], strides = [1, 1]} : vector<9x128xf32> to vector<6x128xf32>
    %257 = tpu.concatenate %255, %256 in 0 : vector<3x128xf32>, vector<6x128xf32> -> vector<9x128xf32>
    %258 = vector.extract_strided_slice %247 {offsets = [0, 0], sizes = [1, 128], strides = [1, 1]} : vector<4x128xf32> to vector<1x128xf32>
    %259 = vector.broadcast %258 : vector<1x128xf32> to vector<9x128xf32>
    %260 = arith.mulf %257, %259 : vector<9x128xf32>
    %261 = arith.addf %254, %260 : vector<9x128xf32>
    %cst_88 = arith.constant 0.000000e+00 : f32
    %262 = vector.broadcast %cst_88 : f32 to vector<2x128xf32>
    %263 = vector.extract_strided_slice %244 {offsets = [0, 0], sizes = [7, 128], strides = [1, 1]} : vector<9x128xf32> to vector<7x128xf32>
    %264 = tpu.concatenate %262, %263 in 0 : vector<2x128xf32>, vector<7x128xf32> -> vector<9x128xf32>
    %265 = vector.extract_strided_slice %247 {offsets = [1, 0], sizes = [1, 128], strides = [1, 1]} : vector<4x128xf32> to vector<1x128xf32>
    %266 = vector.broadcast %265 : vector<1x128xf32> to vector<9x128xf32>
    %267 = arith.mulf %264, %266 : vector<9x128xf32>
    %268 = arith.addf %261, %267 : vector<9x128xf32>
    %cst_89 = arith.constant 0.000000e+00 : f32
    %269 = vector.broadcast %cst_89 : f32 to vector<1x128xf32>
    %270 = vector.extract_strided_slice %244 {offsets = [0, 0], sizes = [8, 128], strides = [1, 1]} : vector<9x128xf32> to vector<8x128xf32>
    %271 = tpu.concatenate %269, %270 in 0 : vector<1x128xf32>, vector<8x128xf32> -> vector<9x128xf32>
    %272 = vector.extract_strided_slice %247 {offsets = [2, 0], sizes = [1, 128], strides = [1, 1]} : vector<4x128xf32> to vector<1x128xf32>
    %273 = vector.broadcast %272 : vector<1x128xf32> to vector<9x128xf32>
    %274 = arith.mulf %271, %273 : vector<9x128xf32>
    %275 = arith.addf %268, %274 : vector<9x128xf32>
    %276 = arith.negf %275 : vector<9x128xf32>
    %277 = math.exp %276 : vector<9x128xf32>
    %cst_90 = arith.constant 1.000000e+00 : f32
    %278 = vector.broadcast %cst_90 : f32 to vector<9x128xf32>
    %279 = arith.addf %278, %277 : vector<9x128xf32>
    %280 = arith.divf %278, %279 : vector<9x128xf32>
    %281 = arith.mulf %275, %280 : vector<9x128xf32>
    %c1_91 = arith.constant 1 : index
    %c0_92 = arith.constant 0 : index
    %c0_93 = arith.constant 0 : index
    %282 = vector.load %arg5[%c1_91, %c0_92, %c0_93] : memref<2x128x128xf32, #tpu.memory_space<vmem>>, vector<1x128x128xf32>
    %283 = vector.shape_cast %282 : vector<1x128x128xf32> to vector<128x128xf32>
    %cst_94 = arith.constant dense<0.000000e+00> : vector<9x128xf32>
    %284 = tpu.matmul %281, %283, %cst_94 {dimension_numbers = #tpu.dot_dimension_numbers<[1], [0], [0], [1], [0, 0, 1, 1], [], []>} : vector<9x128xf32>, vector<128x128xf32>, vector<9x128xf32> -> vector<9x128xf32>
    %c1_95 = arith.constant 1 : index
    %c0_96 = arith.constant 0 : index
    %c0_97 = arith.constant 0 : index
    %285 = vector.load %arg6[%c1_95, %c0_96, %c0_97] : memref<2x1x128xf32, #tpu.memory_space<vmem>>, vector<1x1x128xf32>
    %286 = vector.shape_cast %285 : vector<1x1x128xf32> to vector<1x128xf32>
    %287 = vector.broadcast %286 : vector<1x128xf32> to vector<9x128xf32>
    %288 = arith.addf %284, %287 : vector<9x128xf32>
    %cst_98 = arith.constant 0.000000e+00 : f32
    %289 = vector.broadcast %cst_98 : f32 to vector<9x128xf32>
    %290 = arith.maximumf %288, %289 : vector<9x128xf32>
    %291 = vector.broadcast %cst_98 : f32 to vector<9x128xf32>
    %292 = arith.subf %288, %291 : vector<9x128xf32>
    %293 = arith.cmpf one, %292, %292 : vector<9x128xf32>
    %294 = vector.broadcast %cst_98 : f32 to vector<9x128xf32>
    %295 = arith.addf %288, %294 : vector<9x128xf32>
    %296 = math.absf %292 : vector<9x128xf32>
    %cst_99 = arith.constant 0.000000e+00 : f32
    %297 = vector.broadcast %cst_99 : f32 to vector<9x128xf32>
    %298 = arith.subf %297, %296 : vector<9x128xf32>
    %299 = math.exp %298 : vector<9x128xf32>
    %300 = math.log1p %299 : vector<9x128xf32>
    %301 = arith.addf %290, %300 : vector<9x128xf32>
    %302 = arith.select %293, %295, %301 : vector<9x128xi1>, vector<9x128xf32>
    %303 = arith.mulf %302, %281 : vector<9x128xf32>
    %cst_100 = arith.constant dense<0.000000e+00> : vector<144x128xf32>
    %304 = tpu.matmul %6, %302, %cst_100 {dimension_numbers = #tpu.dot_dimension_numbers<[1], [0], [0], [1], [0, 0, 1, 1], [], []>} : vector<144x9xf32>, vector<9x128xf32>, vector<144x128xf32> -> vector<144x128xf32>
    %c1_101 = arith.constant 1 : index
    %c0_102 = arith.constant 0 : index
    %c0_103 = arith.constant 0 : index
    %305 = vector.load %arg10[%c1_101, %c0_102, %c0_103] : memref<2x144x128xf32, #tpu.memory_space<vmem>>, vector<1x144x128xf32>
    %306 = vector.shape_cast %305 : vector<1x144x128xf32> to vector<144x128xf32>
    %307 = arith.mulf %304, %306 : vector<144x128xf32>
    %308 = math.exp %307 : vector<144x128xf32>
    %c1_104 = arith.constant 1 : index
    %c0_105 = arith.constant 0 : index
    %c0_106 = arith.constant 0 : index
    %309 = vector.load %arg7[%c1_104, %c0_105, %c0_106] : memref<2x32x128xf32, #tpu.memory_space<vmem>>, vector<1x32x128xf32>
    %310 = vector.shape_cast %309 : vector<1x32x128xf32> to vector<32x128xf32>
    %cst_107 = arith.constant dense<0.000000e+00> : vector<32x9xf32>
    %311 = tpu.matmul %310, %281, %cst_107 {dimension_numbers = #tpu.dot_dimension_numbers<[1], [1], [0], [0], [0, 0, 1, 0], [], []>} : vector<32x128xf32>, vector<9x128xf32>, vector<32x9xf32> -> vector<32x9xf32>
    %312 = vector.extract_strided_slice %311 {offsets = [0, 0], sizes = [16, 9], strides = [1, 1]} : vector<32x9xf32> to vector<16x9xf32>
    %cst_108 = arith.constant dense<0.000000e+00> : vector<16x1152xf32>
    %313 = tpu.matmul %312, %8, %cst_108 {dimension_numbers = #tpu.dot_dimension_numbers<[1], [0], [0], [1], [0, 0, 1, 1], [], []>} : vector<16x9xf32>, vector<9x1152xf32>, vector<16x1152xf32> -> vector<16x1152xf32>
    %314 = vector.extract_strided_slice %311 {offsets = [16, 0], sizes = [16, 9], strides = [1, 1]} : vector<32x9xf32> to vector<16x9xf32>
    %cst_109 = arith.constant dense<0.000000e+00> : vector<16x1152xf32>
    %315 = tpu.matmul %314, %9, %cst_109 {dimension_numbers = #tpu.dot_dimension_numbers<[1], [0], [0], [1], [0, 0, 1, 1], [], []>} : vector<16x9xf32>, vector<9x1152xf32>, vector<16x1152xf32> -> vector<16x1152xf32>
    %316 = arith.addf %313, %315 : vector<16x1152xf32>
    %cst_110 = arith.constant 0.000000e+00 : f32
    %317 = vector.broadcast %cst_110 : f32 to vector<16x128xf32>
    %318 = vector.extract_strided_slice %303 {offsets = [0, 0], sizes = [1, 128], strides = [1, 1]} : vector<9x128xf32> to vector<1x128xf32>
    %319 = vector.extract_strided_slice %316 {offsets = [0, 0], sizes = [16, 128], strides = [1, 1]} : vector<16x1152xf32> to vector<16x128xf32>
    %320 = vector.broadcast %318 : vector<1x128xf32> to vector<16x128xf32>
    %321 = arith.mulf %320, %319 : vector<16x128xf32>
    %322 = vector.extract_strided_slice %308 {offsets = [0, 0], sizes = [16, 128], strides = [1, 1]} : vector<144x128xf32> to vector<16x128xf32>
    %323 = arith.mulf %322, %317 : vector<16x128xf32>
    %324 = arith.addf %323, %321 : vector<16x128xf32>
    %325 = vector.extract_strided_slice %303 {offsets = [1, 0], sizes = [1, 128], strides = [1, 1]} : vector<9x128xf32> to vector<1x128xf32>
    %326 = vector.extract_strided_slice %316 {offsets = [0, 128], sizes = [16, 128], strides = [1, 1]} : vector<16x1152xf32> to vector<16x128xf32>
    %327 = vector.broadcast %325 : vector<1x128xf32> to vector<16x128xf32>
    %328 = arith.mulf %327, %326 : vector<16x128xf32>
    %329 = vector.extract_strided_slice %308 {offsets = [16, 0], sizes = [16, 128], strides = [1, 1]} : vector<144x128xf32> to vector<16x128xf32>
    %330 = arith.mulf %329, %324 : vector<16x128xf32>
    %331 = arith.addf %330, %328 : vector<16x128xf32>
    %332 = vector.extract_strided_slice %303 {offsets = [2, 0], sizes = [1, 128], strides = [1, 1]} : vector<9x128xf32> to vector<1x128xf32>
    %333 = vector.extract_strided_slice %316 {offsets = [0, 256], sizes = [16, 128], strides = [1, 1]} : vector<16x1152xf32> to vector<16x128xf32>
    %334 = vector.broadcast %332 : vector<1x128xf32> to vector<16x128xf32>
    %335 = arith.mulf %334, %333 : vector<16x128xf32>
    %336 = vector.extract_strided_slice %308 {offsets = [32, 0], sizes = [16, 128], strides = [1, 1]} : vector<144x128xf32> to vector<16x128xf32>
    %337 = arith.mulf %336, %331 : vector<16x128xf32>
    %338 = arith.addf %337, %335 : vector<16x128xf32>
    %339 = vector.extract_strided_slice %303 {offsets = [3, 0], sizes = [1, 128], strides = [1, 1]} : vector<9x128xf32> to vector<1x128xf32>
    %340 = vector.extract_strided_slice %316 {offsets = [0, 384], sizes = [16, 128], strides = [1, 1]} : vector<16x1152xf32> to vector<16x128xf32>
    %341 = vector.broadcast %339 : vector<1x128xf32> to vector<16x128xf32>
    %342 = arith.mulf %341, %340 : vector<16x128xf32>
    %343 = vector.extract_strided_slice %308 {offsets = [48, 0], sizes = [16, 128], strides = [1, 1]} : vector<144x128xf32> to vector<16x128xf32>
    %344 = arith.mulf %343, %338 : vector<16x128xf32>
    %345 = arith.addf %344, %342 : vector<16x128xf32>
    %346 = vector.extract_strided_slice %303 {offsets = [4, 0], sizes = [1, 128], strides = [1, 1]} : vector<9x128xf32> to vector<1x128xf32>
    %347 = vector.extract_strided_slice %316 {offsets = [0, 512], sizes = [16, 128], strides = [1, 1]} : vector<16x1152xf32> to vector<16x128xf32>
    %348 = vector.broadcast %346 : vector<1x128xf32> to vector<16x128xf32>
    %349 = arith.mulf %348, %347 : vector<16x128xf32>
    %350 = vector.extract_strided_slice %308 {offsets = [64, 0], sizes = [16, 128], strides = [1, 1]} : vector<144x128xf32> to vector<16x128xf32>
    %351 = arith.mulf %350, %345 : vector<16x128xf32>
    %352 = arith.addf %351, %349 : vector<16x128xf32>
    %353 = vector.extract_strided_slice %303 {offsets = [5, 0], sizes = [1, 128], strides = [1, 1]} : vector<9x128xf32> to vector<1x128xf32>
    %354 = vector.extract_strided_slice %316 {offsets = [0, 640], sizes = [16, 128], strides = [1, 1]} : vector<16x1152xf32> to vector<16x128xf32>
    %355 = vector.broadcast %353 : vector<1x128xf32> to vector<16x128xf32>
    %356 = arith.mulf %355, %354 : vector<16x128xf32>
    %357 = vector.extract_strided_slice %308 {offsets = [80, 0], sizes = [16, 128], strides = [1, 1]} : vector<144x128xf32> to vector<16x128xf32>
    %358 = arith.mulf %357, %352 : vector<16x128xf32>
    %359 = arith.addf %358, %356 : vector<16x128xf32>
    %360 = vector.extract_strided_slice %303 {offsets = [6, 0], sizes = [1, 128], strides = [1, 1]} : vector<9x128xf32> to vector<1x128xf32>
    %361 = vector.extract_strided_slice %316 {offsets = [0, 768], sizes = [16, 128], strides = [1, 1]} : vector<16x1152xf32> to vector<16x128xf32>
    %362 = vector.broadcast %360 : vector<1x128xf32> to vector<16x128xf32>
    %363 = arith.mulf %362, %361 : vector<16x128xf32>
    %364 = vector.extract_strided_slice %308 {offsets = [96, 0], sizes = [16, 128], strides = [1, 1]} : vector<144x128xf32> to vector<16x128xf32>
    %365 = arith.mulf %364, %359 : vector<16x128xf32>
    %366 = arith.addf %365, %363 : vector<16x128xf32>
    %367 = vector.extract_strided_slice %303 {offsets = [7, 0], sizes = [1, 128], strides = [1, 1]} : vector<9x128xf32> to vector<1x128xf32>
    %368 = vector.extract_strided_slice %316 {offsets = [0, 896], sizes = [16, 128], strides = [1, 1]} : vector<16x1152xf32> to vector<16x128xf32>
    %369 = vector.broadcast %367 : vector<1x128xf32> to vector<16x128xf32>
    %370 = arith.mulf %369, %368 : vector<16x128xf32>
    %371 = vector.extract_strided_slice %308 {offsets = [112, 0], sizes = [16, 128], strides = [1, 1]} : vector<144x128xf32> to vector<16x128xf32>
    %372 = arith.mulf %371, %366 : vector<16x128xf32>
    %373 = arith.addf %372, %370 : vector<16x128xf32>
    %374 = vector.extract_strided_slice %303 {offsets = [8, 0], sizes = [1, 128], strides = [1, 1]} : vector<9x128xf32> to vector<1x128xf32>
    %375 = vector.extract_strided_slice %316 {offsets = [0, 1024], sizes = [16, 128], strides = [1, 1]} : vector<16x1152xf32> to vector<16x128xf32>
    %376 = vector.broadcast %374 : vector<1x128xf32> to vector<16x128xf32>
    %377 = arith.mulf %376, %375 : vector<16x128xf32>
    %378 = vector.extract_strided_slice %308 {offsets = [128, 0], sizes = [16, 128], strides = [1, 1]} : vector<144x128xf32> to vector<16x128xf32>
    %379 = arith.mulf %378, %373 : vector<16x128xf32>
    %380 = arith.addf %379, %377 : vector<16x128xf32>
    %381 = tpu.concatenate %324, %331, %338, %345, %352, %359, %366, %373, %380 in 0 : vector<16x128xf32>, vector<16x128xf32>, vector<16x128xf32>, vector<16x128xf32>, vector<16x128xf32>, vector<16x128xf32>, vector<16x128xf32>, vector<16x128xf32>, vector<16x128xf32> -> vector<144x128xf32>
    %c1_111 = arith.constant 1 : index
    %c0_112 = arith.constant 0 : index
    %c0_113 = arith.constant 0 : index
    %382 = vector.load %arg8[%c1_111, %c0_112, %c0_113] : memref<2x128x144xf32, #tpu.memory_space<vmem>>, vector<1x128x144xf32>
    %383 = vector.shape_cast %382 : vector<1x128x144xf32> to vector<128x144xf32>
    %cst_114 = arith.constant dense<0.000000e+00> : vector<9x144xf32>
    %384 = tpu.matmul %281, %383, %cst_114 {dimension_numbers = #tpu.dot_dimension_numbers<[1], [0], [0], [1], [0, 0, 1, 1], [], []>} : vector<9x128xf32>, vector<128x144xf32>, vector<9x144xf32> -> vector<9x144xf32>
    %385 = arith.mulf %7, %384 : vector<9x144xf32>
    %c1_115 = arith.constant 1 : index
    %c0_116 = arith.constant 0 : index
    %c0_117 = arith.constant 0 : index
    %386 = vector.load %arg9[%c1_115, %c0_116, %c0_117] : memref<2x128x144xf32, #tpu.memory_space<vmem>>, vector<1x128x144xf32>
    %387 = vector.shape_cast %386 : vector<1x128x144xf32> to vector<128x144xf32>
    %cst_118 = arith.constant dense<0.000000e+00> : vector<9x144xf32>
    %388 = tpu.matmul %281, %387, %cst_118 {dimension_numbers = #tpu.dot_dimension_numbers<[1], [0], [0], [1], [0, 0, 1, 1], [], []>} : vector<9x128xf32>, vector<128x144xf32>, vector<9x144xf32> -> vector<9x144xf32>
    %389 = arith.mulf %7, %388 : vector<9x144xf32>
    %cst_119 = arith.constant dense<0.000000e+00> : vector<9x128xf32>
    %390 = tpu.matmul %385, %381, %cst_119 {dimension_numbers = #tpu.dot_dimension_numbers<[1], [0], [0], [1], [0, 0, 1, 1], [], []>} : vector<9x144xf32>, vector<144x128xf32>, vector<9x128xf32> -> vector<9x128xf32>
    %cst_120 = arith.constant dense<0.000000e+00> : vector<9x128xf32>
    %391 = tpu.matmul %389, %381, %cst_120 {dimension_numbers = #tpu.dot_dimension_numbers<[1], [0], [0], [1], [0, 0, 1, 1], [], []>} : vector<9x144xf32>, vector<144x128xf32>, vector<9x128xf32> -> vector<9x128xf32>
    %392 = vector.shape_cast %2 : vector<1x128xi1> to vector<1x128xi1>
    %393 = vector.broadcast %392 : vector<1x128xi1> to vector<9x128xi1>
    %394 = arith.select %393, %390, %391 : vector<9x128xi1>, vector<9x128xf32>
    %c1_121 = arith.constant 1 : index
    %c0_122 = arith.constant 0 : index
    %c0_123 = arith.constant 0 : index
    %395 = vector.load %arg11[%c1_121, %c0_122, %c0_123] : memref<2x1x128xf32, #tpu.memory_space<vmem>>, vector<1x1x128xf32>
    %396 = vector.shape_cast %395 : vector<1x1x128xf32> to vector<1x128xf32>
    %397 = vector.broadcast %396 : vector<1x128xf32> to vector<9x128xf32>
    %398 = arith.mulf %281, %397 : vector<9x128xf32>
    %399 = arith.addf %394, %398 : vector<9x128xf32>
    %400 = arith.negf %245 : vector<9x128xf32>
    %401 = math.exp %400 : vector<9x128xf32>
    %cst_124 = arith.constant 1.000000e+00 : f32
    %402 = vector.broadcast %cst_124 : f32 to vector<9x128xf32>
    %403 = arith.addf %402, %401 : vector<9x128xf32>
    %404 = arith.divf %402, %403 : vector<9x128xf32>
    %405 = arith.mulf %245, %404 : vector<9x128xf32>
    %406 = arith.mulf %399, %405 : vector<9x128xf32>
    %c1_125 = arith.constant 1 : index
    %c0_126 = arith.constant 0 : index
    %c0_127 = arith.constant 0 : index
    %407 = vector.load %arg12[%c1_125, %c0_126, %c0_127] : memref<2x128x64xf32, #tpu.memory_space<vmem>>, vector<1x128x64xf32>
    %408 = vector.shape_cast %407 : vector<1x128x64xf32> to vector<128x64xf32>
    %cst_128 = arith.constant dense<0.000000e+00> : vector<9x64xf32>
    %409 = tpu.matmul %406, %408, %cst_128 {dimension_numbers = #tpu.dot_dimension_numbers<[1], [0], [0], [1], [0, 0, 1, 1], [], []>} : vector<9x128xf32>, vector<128x64xf32>, vector<9x64xf32> -> vector<9x64xf32>
    %410 = arith.addf %210, %409 : vector<9x64xf32>
    %c0_129 = arith.constant 0 : index
    %c0_130 = arith.constant 0 : index
    %411 = vector.load %arg13[%c0_129, %c0_130] : memref<1x64xf32, #tpu.memory_space<vmem>>, vector<1x64xf32>
    %412 = arith.mulf %410, %410 : vector<9x64xf32>
    %cst_131 = arith.constant 0.000000e+00 : f32
    %413 = vector.shape_cast %5 : vector<1x64xi1> to vector<1x64xi1>
    %414 = vector.broadcast %413 : vector<1x64xi1> to vector<9x64xi1>
    %415 = vector.broadcast %cst_131 : f32 to vector<9x64xf32>
    %416 = arith.select %414, %412, %415 : vector<9x64xi1>, vector<9x64xf32>
    %cst_132 = arith.constant dense<0.000000e+00> : vector<9xf32>
    %417 = vector.multi_reduction <add>, %416, %cst_132 [1] : vector<9x64xf32> to vector<9xf32>
    %418 = vector.shape_cast %417 : vector<9xf32> to vector<9x1xf32>
    %cst_133 = arith.constant 0.000000e+00 : f32
    %419 = vector.shape_cast %5 : vector<1x64xi1> to vector<1x64xi1>
    %420 = vector.broadcast %419 : vector<1x64xi1> to vector<9x64xi1>
    %421 = vector.broadcast %cst_133 : f32 to vector<9x64xf32>
    %422 = arith.select %420, %421, %412 : vector<9x64xi1>, vector<9x64xf32>
    %cst_134 = arith.constant dense<0.000000e+00> : vector<9xf32>
    %423 = vector.multi_reduction <add>, %422, %cst_134 [1] : vector<9x64xf32> to vector<9xf32>
    %424 = vector.shape_cast %423 : vector<9xf32> to vector<9x1xf32>
    %425 = vector.shape_cast %5 : vector<1x64xi1> to vector<1x64xi1>
    %426 = vector.broadcast %425 : vector<1x64xi1> to vector<9x64xi1>
    %427 = vector.shape_cast %418 : vector<9x1xf32> to vector<9x1xf32>
    %428 = vector.broadcast %427 : vector<9x1xf32> to vector<9x64xf32>
    %429 = vector.shape_cast %424 : vector<9x1xf32> to vector<9x1xf32>
    %430 = vector.broadcast %429 : vector<9x1xf32> to vector<9x64xf32>
    %431 = arith.select %426, %428, %430 : vector<9x64xi1>, vector<9x64xf32>
    %cst_135 = arith.constant 3.125000e-02 : f32
    %432 = vector.broadcast %cst_135 : f32 to vector<9x64xf32>
    %433 = arith.mulf %431, %432 : vector<9x64xf32>
    %cst_136 = arith.constant 9.99999974E-6 : f32
    %434 = vector.broadcast %cst_136 : f32 to vector<9x64xf32>
    %435 = arith.addf %433, %434 : vector<9x64xf32>
    %436 = math.rsqrt %435 : vector<9x64xf32>
    %437 = arith.mulf %410, %436 : vector<9x64xf32>
    %438 = vector.broadcast %411 : vector<1x64xf32> to vector<9x64xf32>
    %439 = arith.mulf %437, %438 : vector<9x64xf32>
    %c0_137 = arith.constant 0 : index
    %c0_138 = arith.constant 0 : index
    %440 = vector.load %arg14[%c0_137, %c0_138] : memref<64x768xf32, #tpu.memory_space<vmem>>, vector<64x768xf32>
    %cst_139 = arith.constant dense<0.000000e+00> : vector<9x768xf32>
    %441 = tpu.matmul %439, %440, %cst_139 {dimension_numbers = #tpu.dot_dimension_numbers<[1], [0], [0], [1], [0, 0, 1, 1], [], []>} : vector<9x64xf32>, vector<64x768xf32>, vector<9x768xf32> -> vector<9x768xf32>
    %c0_140 = arith.constant 0 : index
    %c0_141 = arith.constant 0 : index
    %442 = vector.load %arg19[%c0_140, %c0_141] : memref<9x384xf32, #tpu.memory_space<vmem>>, vector<9x384xf32>
    %cst_142 = arith.constant 5.000000e-01 : f32
    %443 = vector.broadcast %cst_142 : f32 to vector<9x384xf32>
    %444 = arith.cmpf ogt, %442, %443 : vector<9x384xf32>
    %445 = vector.extract_strided_slice %441 {offsets = [0, 0], sizes = [9, 384], strides = [1, 1]} : vector<9x768xf32> to vector<9x384xf32>
    %cst_143 = arith.constant -1.000000e+09 : f32
    %446 = vector.broadcast %cst_143 : f32 to vector<9x384xf32>
    %447 = arith.select %444, %445, %446 : vector<9x384xi1>, vector<9x384xf32>
    %c0_144 = arith.constant 0 : index
    %c0_145 = arith.constant 0 : index
    %c0_146 = arith.constant 0 : index
    %448 = vector.load %arg20[%c0_144, %c0_145, %c0_146] : memref<2x9x384xf32, #tpu.memory_space<vmem>>, vector<1x9x384xf32>
    %449 = vector.shape_cast %448 : vector<1x9x384xf32> to vector<9x384xf32>
    %450 = vector.shape_cast %447 : vector<9x384xf32> to vector<1x9x384xf32>
    tpu.vector_store %arg20[%c0_144, %c0_145, %c0_146], %450 {strides = array<i32>} : memref<2x9x384xf32, #tpu.memory_space<vmem>>, vector<1x9x384xf32>,
    %cst_147 = arith.constant 5.000000e-01 : f32
    %451 = vector.broadcast %cst_147 : f32 to vector<9x384xf32>
    %452 = arith.cmpf ogt, %442, %451 : vector<9x384xf32>
    %453 = vector.extract_strided_slice %441 {offsets = [0, 384], sizes = [9, 384], strides = [1, 1]} : vector<9x768xf32> to vector<9x384xf32>
    %cst_148 = arith.constant -1.000000e+09 : f32
    %454 = vector.broadcast %cst_148 : f32 to vector<9x384xf32>
    %455 = arith.select %452, %453, %454 : vector<9x384xi1>, vector<9x384xf32>
    %c1_149 = arith.constant 1 : index
    %c0_150 = arith.constant 0 : index
    %c0_151 = arith.constant 0 : index
    %456 = vector.load %arg20[%c1_149, %c0_150, %c0_151] : memref<2x9x384xf32, #tpu.memory_space<vmem>>, vector<1x9x384xf32>
    %457 = vector.shape_cast %456 : vector<1x9x384xf32> to vector<9x384xf32>
    %458 = vector.shape_cast %455 : vector<9x384xf32> to vector<1x9x384xf32>
    tpu.vector_store %arg20[%c1_149, %c0_150, %c0_151], %458 {strides = array<i32>} : memref<2x9x384xf32, #tpu.memory_space<vmem>>, vector<1x9x384xf32>,
    return
  }
}

</mosaic_0001>

<bundles_post_ra>
// kernel: tile.63
= control target key start
LH: loop header
LB: loop body
LE: loop exit
PB: predicated region body
PF: predicated region fallthrough
CT: control target
= control target key end

     0   :  { %vm42_vm0 = vcmask 1047556   ;;  %vm44_vm1 = vcmask 523264   ;;  %vm56_vm2 = vcmask 1048064   ;;  %s127_s0 = inlined_call_operand.vmem [shape: f32[2,4,2,64], index: 0, kind: input, shape index: {}]   ;;  %s128_s1 = inlined_call_operand.vmem [shape: f32[2,4,128], index: 1, kind: output, shape index: {}]  }
   0x1   :  { %v77_v0 = vld [vmem:[%s127_s0 + $0xe] sm:$0x3]  ;;  %v78_v1 = vld [vmem:[%s127_s0 + $0xc] sm:$0x3]  ;;  %v79_v2 = vld [vmem:[%s127_s0 + $0xa] sm:$0x3] }
   0x2   :  { %8 = vst [vmem:[#allocation1 + $0x38] sm:$0x3] %v77_v0  ;;  %13 = vst [vmem:[#allocation1 + $0x30] sm:$0x3] %v78_v1  ;;  %v80_v3 = vld [vmem:[%s127_s0 + $0x8] sm:$0x3] }
   0x3   :  { %18 = vst [vmem:[#allocation1 + $0x28] sm:$0x3] %v79_v2  ;;  %v81_v4 = vld [vmem:[%s127_s0 + $0x6] sm:$0x3]  ;;  %v82_v5 = vld [vmem:[%s127_s0 + $0x4] sm:$0x3] }
   0x4   :  { %23 = vst [vmem:[#allocation1 + $0x20] sm:$0x3] %v80_v3  ;;  %28 = vst [vmem:[#allocation1 + $0x18] sm:$0x3] %v81_v4  ;;  %v83_v6 = vld [vmem:[%s127_s0 + $0x2] sm:$0x3] }
   0x5   :  { %33 = vst [vmem:[#allocation1 + $0x10] sm:$0x3] %v82_v5  ;;  %v38_v7 = vld [vmem:[%s127_s0] sm:$0x3]  ;;  %37 = vst [vmem:[#allocation1 + $0x8] sm:$0x3] %v83_v6 }
   0x6   :  { %39 = vst [vmem:[#allocation1] sm:$0x3] %v38_v7  ;;  %s86_s0 = smov 64  }
   0xb   :  { %v41_v8 = vld [vmem:[#allocation1] ss:$8 sm:$0xf0]   ;;  %v51_v9 = vld [vmem:[#allocation1 + $0x1] ss:$8 sm:$0xf0]  }
   0xd   :  { %v40_v10 = vld [vmem:[#allocation1] ss:$8 sm:$0xf]   ;;  %v49_v11 = vld [vmem:[#allocation1 + $0x1] ss:$8 sm:$0xf]  }
   0xe   :  { %v43_v12 = vsel %vm42_vm0, %v41_v8, %v40_v10  ;;  %v53_v13 = vsel %vm42_vm0, %v51_v9, %v49_v11 }
   0xf   :  { %54 = vrot.lane.b32.xlu0 %v53_v13, %s86_s0  ;;  %45 = vst.msk [vmem:[#allocation0] sm:$0xf] %vm44_vm1, %v43_v12   ;;  %47 = vst.msk [vmem:[#allocation0 + $0x4] sm:$0xf0] %vm44_vm1, %v43_v12  }
  0x81   :  { %v55_v14 = vpop.permute.xlu0 %54  }
  0x82   :  { %57 = vst.msk [vmem:[#allocation0] sm:$0xf] %vm56_vm2, %v55_v14   ;;  %59 = vst.msk [vmem:[#allocation0 + $0x4] sm:$0xf0] %vm56_vm2, %v55_v14  }
  0x89   :  { %v63_v15 = vld [vmem:[#allocation0] sm:$0xf]  ;;  %v67_v16 = vld [vmem:[#allocation0 + $0x8] sm:$0xf] }
  0x8a   :  { %65 = vst [vmem:[%s128_s1] sm:$0xf] %v63_v15  ;;  %84 = vst [vmem:[%s128_s1 + $0x4] sm:$0xf] %v67_v16 }

// kernel: forward.1
= control target key start
LH: loop header
LB: loop body
LE: loop exit
PB: predicated region body
PF: predicated region fallthrough
CT: control target
= control target key end

     0   :  { %v65_v0 = vlaneseq  ;;  %vm140_vm0 = vcmask 516096   ;;  %vm136_vm1 = vcmask 523264   ;;  %v8365_v27 = vmov 0.0   ;;  %s8337_s0 = inlined_call_operand.vmem [shape: f32[9,64], index: 0, kind: input, shape index: {}]   ;;  %s8338_s2 = inlined_call_operand.vmem [shape: f32[2,64,256], index: 2, kind: input, shape index: {}]   ;;  %s8339_s1 = inlined_call_operand.vmem [shape: f32[2,1,64], index: 1, kind: input, shape index: {}]   ;;  %s8340_s5 = inlined_call_operand.vmem [shape: f32[2,128,128], index: 5, kind: input, shape index: {}]   ;;  %s8341_s3 = inlined_call_operand.vmem [shape: f32[2,4,128], index: 3, kind: input, shape index: {}]   ;;  %s8342_s4 = inlined_call_operand.vmem [shape: f32[2,1,128], index: 4, kind: input, shape index: {}]   ;;  %s8343_s7 = inlined_call_operand.vmem [shape: f32[2,32,128], index: 7, kind: input, shape index: {}]   ;;  %s8344_s17 = inlined_call_operand.vmem [shape: f32[9,1152], index: 17, kind: input, shape index: {}]   ;;  %s8345_s15 = inlined_call_operand.vmem [shape: f32[144,9], index: 15, kind: input, shape index: {}]   ;;  %s8346_s6 = inlined_call_operand.vmem [shape: f32[2,1,128], index: 6, kind: input, shape index: {}]   ;;  %s8347_s16 = inlined_call_operand.vmem [shape: f32[9,1152], index: 16, kind: input, shape index: {}]   ;;  %s8348_s9 = inlined_call_operand.vmem [shape: f32[2,128,144], index: 9, kind: input, shape index: {}]   ;;  %s8349_s8 = inlined_call_operand.vmem [shape: f32[2,128,144], index: 8, kind: input, shape index: {}]   ;;  %s8350_s10 = inlined_call_operand.vmem [shape: f32[2,144,128], index: 10, kind: input, shape index: {}]   ;;  %s8351_s18 = inlined_call_operand.vmem [shape: f32[9,144], index: 18, kind: input, shape index: {}]   ;;  %s8352_s12 = inlined_call_operand.vmem [shape: f32[2,128,64], index: 12, kind: input, shape index: {}]   ;;  %s8353_s11 = inlined_call_operand.vmem [shape: f32[2,1,128], index: 11, kind: input, shape index: {}]   ;;  %s8354_s14 = inlined_call_operand.vmem [shape: f32[64,768], index: 14, kind: input, shape index: {}]   ;;  %s8355_s13 = inlined_call_operand.vmem [shape: f32[1,64], index: 13, kind: input, shape index: {}]   ;;  %s8356_s19 = inlined_call_operand.vmem [shape: f32[9,384], index: 19, kind: input, shape index: {}]   ;;  %s8357_s20 = inlined_call_operand.vmem [shape: f32[2,9,384], index: 20, kind: output, shape index: {}]  }
   0x1   :  { %8374 = sst [smem:[#allocation4_spill]] %s8337_s0  ;;  %256 = vmatprep.mubr.f32.mxu0 %v8365_v27  ;;  %vm288_vm3 = vcmask 1042432   ;;  %vm300_vm4 = vcmask 1041408   ;;  %vm312_vm5 = vcmask 1040384   ;;  %vm6153_vm6 = vmmov 1  }
   0x2   :  { %8375 = sst [smem:[#allocation5_spill]] %s8338_s2  ;;  %s8379_s23 = sld [smem:[#allocation4_spill]]  ;;  %v6271_v3 = vand.u32 127, %v65_v0  ;;  %vm6453_vm7 = vmpackc.low %vm312_vm5, %vm6153_vm6  ;;  %vm472_vm8 = vcmask 72704   ;;  %vm1994_vm13 = vcmask 130048  }
   0x3   :  { %8376 = sst [smem:[#allocation6_spill]] %s8339_s1  ;;  %s8380_s26 = sld [smem:[#allocation5_spill]] }
   0x4   :  { %8377 = sst [smem:[#allocation7_spill]] %s8340_s5  ;;  %vm68_vm2 = vcmp.lt.s32.totalorder %v6271_v3, 32  ;;  %s8381_s21 = sld [smem:[#allocation6_spill]]  ;;  %vm67_vm14 = vcmp.lt.s32.totalorder %v6271_v3, 64  ;;  %v4378_v3 = vld [vmem:[%s8354_s14 + $0x78] sm:$0xff] }
   0x5   :  { %8378 = sst [smem:[#allocation8_spill]] %s8341_s3  ;;  %s8382_s24 = sld [smem:[#allocation7_spill]] }
   0x6   :  { %s8384_s22 = sld [smem:[#allocation8_spill]] }
   0x8   :  { %v6263_v1 = vld [vmem:[%s8379_s23 + $0x8] sm:$0x1]  ;;  %v6268_v2 = vld [vmem:[%s8379_s23] sm:$0xff] }
   0x9   :  { %v131_v4 = vmul.f32 %v6263_v1, %v6263_v1  ;;  %v130_v5 = vmul.f32 %v6268_v2, %v6268_v2  ;;  %v171_v14 = vld [vmem:[%s8380_s26 + $0x8] sm:$0xff]  ;;  %v173_v15 = vld [vmem:[%s8380_s26 + $0x18] sm:$0xff]  ;;  %v170_v17 = vld [vmem:[%s8380_s26] sm:$0xff] }
   0xa   :  { %v5373_v16 = vpack.c.bf16 %v173_v15, %v171_v14  ;;  %v172_v18 = vld [vmem:[%s8380_s26 + $0x10] sm:$0xff]  ;;  %v175_v20 = vld [vmem:[%s8380_s26 + $0x28] sm:$0xff]  ;;  %v177_v21 = vld [vmem:[%s8380_s26 + $0x38] sm:$0xff] }
   0xb   :  { %v135_v6 = vsel %vm68_vm2, %v131_v4, 0.0  ;;  %v134_v7 = vsel %vm68_vm2, %v130_v5, 0.0  ;;  %v145_v8 = vsel %vm68_vm2, 0.0, %v131_v4  ;;  %v144_v9 = vsel %vm68_vm2, 0.0, %v130_v5  ;;  %v174_v22 = vld [vmem:[%s8380_s26 + $0x20] sm:$0xff]  ;;  %v176_v24 = vld [vmem:[%s8380_s26 + $0x30] sm:$0xff] }
   0xc   :  { %v141_v10 = vsel %vm140_vm0, %v135_v6, 0.0  ;;  %v137_v11 = vsel %vm136_vm1, %v134_v7, 0.0  ;;  %v149_v12 = vsel %vm140_vm0, %v145_v8, 0.0  ;;  %v146_v13 = vsel %vm136_vm1, %v144_v9, 0.0  ;;  %5374 = vmatprep.subr.bf16.mxu0 %v5373_v16  ;;  %v179_v25 = vld [vmem:[%s8380_s26 + $0x48] sm:$0xff]  ;;  %v181_v26 = vld [vmem:[%s8380_s26 + $0x58] sm:$0xff] }
   0xd   :  { %142 = vadd.xlane.f32.xlu1 %v141_v10  ;;  %138 = vadd.xlane.f32.xlu0 %v137_v11  ;;  %v5375_v19 = vpack.c.bf16 %v172_v18, %v170_v17  ;;  %v5377_v23 = vpack.c.bf16 %v177_v21, %v175_v20  ;;  %v5379_v28 = vpack.c.bf16 %v176_v24, %v174_v22  ;;  %v178_v30 = vld [vmem:[%s8380_s26 + $0x40] sm:$0xff]  ;;  %v180_v31 = vld [vmem:[%s8380_s26 + $0x50] sm:$0xff]  ;;  %v183_v32 = vld [vmem:[%s8380_s26 + $0x68] sm:$0xff]  ;;  %v6400_v18 = vshrl.u32 %v65_v0, 7 }
   0xe   :  { %v5381_v29 = vpack.c.bf16 %v181_v26, %v179_v25  ;;  %v185_v33 = vld [vmem:[%s8380_s26 + $0x78] sm:$0xff]  ;;  %v5383_v34 = vpack.c.bf16 %v180_v31, %v178_v30  ;;  %v182_v36 = vld [vmem:[%s8380_s26 + $0x60] sm:$0xff]  ;;  %v184_v37 = vld [vmem:[%s8380_s26 + $0x70] sm:$0xff] }
   0xf   :  { %5376 = vmatpush1.bf16.msra.mxu0 %v5375_v19  ;;  %v5385_v35 = vpack.c.bf16 %v185_v33, %v183_v32  ;;  %v5387_v38 = vpack.c.bf16 %v184_v37, %v182_v36  ;;  %v4689_v51 = vld [vmem:[%s8381_s21] ss:$0 sm:$0xff]  ;;  %v337_v57 = vld [vmem:[%s8382_s24 + $0x8] sm:$0xff]  ;;  %v338_v59 = vld [vmem:[%s8382_s24 + $0x10] sm:$0xff]  ;;  %8383 = vst [vmem:[#allocation2_spill] sm:$0xff] %v6400_v18  ;;  %v6403_v19 = vsub.s32 3, %v6400_v18 }
  0x10   :  { %5378 = vmatprep.subr.bf16.mxu0 %v5377_v23  ;;  %v336_v56 = vld [vmem:[%s8382_s24] sm:$0xff]  ;;  %v339_v60 = vld [vmem:[%s8382_s24 + $0x18] sm:$0xff]  ;;  %v341_v63 = vld [vmem:[%s8382_s24 + $0x28] sm:$0xff]  ;;  %v6409_v21 = vsub.s32 0, %v6400_v18  ;;  %v6413_v23 = vsub.s32 1, %v6400_v18  ;;  %v6420_v26 = vsub.s32 2, %v6400_v18 }
  0x11   :  { %150 = vadd.xlane.f32.xlu1 %v149_v12  ;;  %147 = vadd.xlane.f32.xlu0 %v146_v13  ;;  %v5389_v58 = vpack.c.bf16 %v337_v57, %v336_v56  ;;  %v5393_v61 = vpack.c.bf16 %v339_v60, %v338_v59  ;;  %v340_v62 = vld [vmem:[%s8382_s24 + $0x20] sm:$0xff]  ;;  %v343_v4 = vld [vmem:[%s8382_s24 + $0x38] sm:$0xff]  ;;  %v345_v7 = vld [vmem:[%s8382_s24 + $0x48] sm:$0xff] }
  0x12   :  { %v344_v6 = vld [vmem:[%s8382_s24 + $0x40] sm:$0xff]  ;;  %v346_v9 = vld [vmem:[%s8382_s24 + $0x50] sm:$0xff]  ;;  %v347_v10 = vld [vmem:[%s8382_s24 + $0x58] sm:$0xff] }
  0x13   :  { %5380 = vmatpush1.bf16.msra.mxu0 %v5379_v28  ;;  %5390 = vmatprep.subr.bf16.mxu1 %v5389_v58  ;;  %v5405_v8 = vpack.c.bf16 %v345_v7, %v344_v6  ;;  %v5409_v11 = vpack.c.bf16 %v347_v10, %v346_v9  ;;  %v348_v12 = vld [vmem:[%s8382_s24 + $0x60] sm:$0xff]  ;;  %v349_v13 = vld [vmem:[%s8382_s24 + $0x68] sm:$0xff]  ;;  %v350_v15 = vld [vmem:[%s8382_s24 + $0x70] sm:$0xff] }
  0x14   :  { %5382 = vmatprep.subr.bf16.mxu0 %v5381_v29  ;;  %5392 = vmatpush3.bf16.msra.mxu1 %v5389_v58  ;;  %v5413_v14 = vpack.c.bf16 %v349_v13, %v348_v12  ;;  %v351_v16 = vld [vmem:[%s8382_s24 + $0x78] sm:$0xff]  ;;  %v269_v20 = vld [vmem:[%s8384_s22] sm:$0xf]  ;;  %v759_v6 = vld [vmem:[%s8343_s7 + $0x10] sm:$0xff] }
  0x15   :  { %5394 = vmatprep.subr.bf16.mxu1 %v5393_v61  ;;  %v5417_v17 = vpack.c.bf16 %v351_v16, %v350_v15  ;;  %v274_v22 = vrot.slane %v269_v20, %v6403_v19  ;;  %v4692_v0 = vld [vmem:[%s8342_s4] ss:$0 sm:$0xff]  ;;  %v293_v25 = vrot.slane %v269_v20, %v6409_v21  ;;  %v305_v33 = vrot.slane %v269_v20, %v6413_v23  ;;  %v760_v7 = vld [vmem:[%s8343_s7 + $0x18] sm:$0xff]  ;;  %v110_v9 = vld [vmem:[%s8344_s17 + $0x8] sm:$0xff] }
  0x16   :  { %v119_v10 = vld [vmem:[%s8344_s17 + $0x50] sm:$0x1]  ;;  %v109_v12 = vld [vmem:[%s8344_s17] sm:$0xff]  ;;  %v118_v13 = vld [vmem:[%s8344_s17 + $0x48] sm:$0x1] }
  0x17   :  { %5384 = vmatpush1.bf16.msra.mxu0 %v5383_v34  ;;  %v112_v15 = vld [vmem:[%s8344_s17 + $0x18] sm:$0xff]  ;;  %v121_v16 = vld [vmem:[%s8344_s17 + $0x60] sm:$0x1] }
  0x18   :  { %5386 = vmatprep.subr.bf16.mxu0 %v5385_v35  ;;  %5396 = vmatpush3.bf16.msra.mxu1 %v5393_v61 }
  0x1b   :  { %5388 = vmatpush1.bf16.msra.mxu0 %v5387_v38 }
  0x9a   :  { %v143_v39 = vpop.xlane.xlu1 %142  ;;  %v139_v40 = vpop.xlane.xlu0 %138 }
  0x9e   :  { %v151_v41 = vpop.xlane.xlu1 %150  ;;  %v148_v42 = vpop.xlane.xlu0 %147 }
  0x9f   :  { %v153_v43 = vsel %vm68_vm2, %v143_v39, %v151_v41  ;;  %v152_v44 = vsel %vm68_vm2, %v139_v40, %v148_v42  ;;  %v317_v39 = vrot.slane %v269_v20, %v6420_v26  ;;  %v69_v20 = vld [vmem:[%s8345_s15] sm:$0xff] }
  0xa0   :  { %v155_v45 = vmul.f32 0.03125, %v153_v43  ;;  %v154_v46 = vmul.f32 0.03125, %v152_v44 }
  0xa2   :  { %v157_v47 = vadd.f32 1e-05, %v155_v45  ;;  %v156_v48 = vadd.f32 1e-05, %v154_v46 }
  0xa4   :  { %5996 = vrsqrt.f32 %v157_v47 }
  0xa5   :  { %5998 = vrsqrt.f32 %v156_v48 }
  0xae   :  { %v5997_v49 = vpop.eup %5996 }
  0xaf   :  { %v5999_v50 = vpop.eup %5998  ;;  %v161_v54 = vmul.f32 %v5997_v49, %v6263_v1  ;;  %v5397_v1 = vpack.c.bf16 %v341_v63, %v340_v62 }
  0xb0   :  { %v160_v52 = vmul.f32 %v5999_v50, %v6268_v2  ;;  %v342_v2 = vld [vmem:[%s8382_s24 + $0x30] sm:$0xff] }
  0xb1   :  { %v169_v55 = vmul.f32 %v4689_v51, %v161_v54  ;;  %5398 = vmatprep.subr.bf16.mxu1 %v5397_v1  ;;  %v5401_v5 = vpack.c.bf16 %v343_v4, %v342_v2  ;;  %v757_v2 = vld [vmem:[%s8343_s7] sm:$0xff] }
  0xb2   :  { %v168_v53 = vmul.f32 %v4689_v51, %v160_v52  ;;  %5400 = vmatpush3.bf16.msra.mxu1 %v5397_v1 }
  0xb3   :  { %5402 = vmatprep.subr.bf16.mxu1 %v5401_v5 }
  0xb4   :  { %4690 = vmatmul.mubr.msk.f32.vlgmr.msra.gmra.mrb[0].mxu0 %vm136_vm1, %v168_v53 }
  0xb5   :  { %262 = vmatprep.mubr.f32.mxu0 %v8365_v27 }
  0xb6   :  { %5404 = vmatpush3.bf16.msra.mxu1 %v5401_v5  ;;  %v758_v5 = vld [vmem:[%s8343_s7 + $0x8] sm:$0xff] }
  0xb7   :  { %5406 = vmatprep.subr.bf16.mxu1 %v5405_v8 }
  0xb8   :  { %4691 = vmatmul.mubr.msk.f32.gmra.mrb[2].mxu0 %vm136_vm1, %v169_v55 }
  0xb9   :  { %5162 = vmatprep.mubr.msk.f32.mxu0 %vm472_vm8, %v69_v20 }
  0xba   :  { %5408 = vmatpush3.bf16.msra.mxu1 %v5405_v8 }
  0xbb   :  { %5410 = vmatprep.subr.bf16.mxu1 %v5409_v11 }
  0xbe   :  { %5412 = vmatpush3.bf16.msra.mxu1 %v5409_v11  ;;  %v6463_v11 = vpack.c.bf16 %v119_v10, %v110_v9 }
  0xbf   :  { %5414 = vmatprep.subr.bf16.mxu1 %v5413_v14 }
  0xc2   :  { %5416 = vmatpush3.bf16.msra.mxu1 %v5413_v14  ;;  %v6471_v14 = vpack.c.bf16 %v118_v13, %v109_v12 }
  0xc3   :  { %5418 = vmatprep.subr.bf16.mxu1 %v5417_v17 }
  0xc6   :  { %5420 = vmatpush3.bf16.msra.mxu1 %v5417_v17  ;;  %v6485_v17 = vpack.c.bf16 %v121_v16, %v112_v15  ;;  %v102_v16 = vld [vmem:[%s8347_s16 + $0x58] sm:$0x1] }
 0x187   :  { %v258_v24 = vpop.f32.mrb[0].mxu0 }
 0x188   :  { %v286_v28 = vrot.slane %v258_v24, 5  ;;  %v298_v29 = vrot.slane %v258_v24, 6  ;;  %v310_v30 = vrot.slane %v258_v24, 7  ;;  %v6422_v31 = vpop.f32.mrb[1].mxu0  ;;  %v275_v32 = vmul.f32 %v274_v22, %v258_v24 }
 0x18a   :  { %v289_v34 = vsel %vm288_vm3, 0.0, %v286_v28  ;;  %v301_v35 = vsel %vm300_vm4, 0.0, %v298_v29  ;;  %v283_v36 = vadd.f32 %v4692_v0, %v275_v32  ;;  %v313_v40 = vsel %vm312_vm5, 0.0, %v310_v30 }
 0x18b   :  { %v264_v37 = vpop.f32.mrb[2].mxu0  ;;  %v294_v38 = vmul.f32 %v293_v25, %v289_v34  ;;  %v306_v44 = vmul.f32 %v305_v33, %v301_v35  ;;  %v295_v46 = vmul.f32 %v293_v25, %v286_v28  ;;  %v318_v48 = vmul.f32 %v317_v39, %v313_v40  ;;  %v116_v40 = vld [vmem:[%s8344_s17 + $0x38] sm:$0xff] }
 0x18c   :  { %v276_v41 = vmul.f32 %v274_v22, %v264_v37  ;;  %v6429_v42 = vpop.f32.mrb[3].mxu0  ;;  %v307_v50 = vmul.f32 %v305_v33, %v298_v29  ;;  %v319_v53 = vmul.f32 %v317_v39, %v310_v30  ;;  %v4695_v22 = vld [vmem:[%s8346_s6] ss:$0 sm:$0xff]  ;;  %v111_v37 = vld [vmem:[%s8344_s17 + $0x10] sm:$0xff] }
 0x18d   :  { %v296_v43 = vadd.f32 %v294_v38, %v283_v36  ;;  %v120_v38 = vld [vmem:[%s8344_s17 + $0x58] sm:$0x1] }
 0x18e   :  { %v284_v45 = vadd.f32 %v4692_v0, %v276_v41  ;;  %v125_v41 = vld [vmem:[%s8344_s17 + $0x80] sm:$0x1] }
 0x18f   :  { %v308_v47 = vadd.f32 %v306_v44, %v296_v43  ;;  %v6519_v43 = vpack.c.bf16 %v120_v38, %v111_v37 }
 0x190   :  { %v297_v49 = vadd.f32 %v295_v46, %v284_v45  ;;  %v6523_v45 = vpack.c.bf16 %v125_v41, %v116_v40  ;;  %v114_v40 = vld [vmem:[%s8344_s17 + $0x28] sm:$0xff]  ;;  %v123_v41 = vld [vmem:[%s8344_s17 + $0x70] sm:$0x1] }
 0x191   :  { %v320_v51 = vadd.f32 %v318_v48, %v308_v47  ;;  %v115_v47 = vld [vmem:[%s8344_s17 + $0x30] sm:$0xff]  ;;  %v124_v48 = vld [vmem:[%s8344_s17 + $0x78] sm:$0x1] }
 0x192   :  { %v309_v52 = vadd.f32 %v307_v50, %v297_v49  ;;  %v92_v50 = vld [vmem:[%s8347_s16 + $0x8] sm:$0xff] }
 0x193   :  { %v4693_v54 = vmul.f32 -1.442695, %v320_v51 }
 0x194   :  { %v321_v55 = vadd.f32 %v319_v53, %v309_v52 }
 0x195   :  { %6000 = vpow2.f32 %v4693_v54 }
 0x196   :  { %v4694_v56 = vmul.f32 -1.442695, %v321_v55 }
 0x198   :  { %6002 = vpow2.f32 %v4694_v56 }
 0x19f   :  { %v6001_v57 = vpop.eup %6000 }
 0x1a0   :  { %v328_v58 = vadd.f32 1.0, %v6001_v57 }
 0x1a2   :  { %6004 = vrcp.f32 %v328_v58  ;;  %v6003_v59 = vpop.eup %6002 }
 0x1a3   :  { %v329_v60 = vadd.f32 1.0, %v6003_v59  ;;  %v91_v59 = vld [vmem:[%s8347_s16] sm:$0xff] }
 0x1a5   :  { %6006 = vrcp.f32 %v329_v60  ;;  %v100_v60 = vld [vmem:[%s8347_s16 + $0x48] sm:$0x1] }
 0x1ac   :  { %v6005_v61 = vpop.eup %6004 }
 0x1ad   :  { %v6431_v62 = vmul.f32 %v6005_v61, %v320_v51  ;;  %v101_v51 = vld [vmem:[%s8347_s16 + $0x50] sm:$0x1]  ;;  %v94_v61 = vld [vmem:[%s8347_s16 + $0x18] sm:$0xff] }
 0x1ae   :  { %v6553_v56 = vpack.c.bf16 %v101_v51, %v92_v50  ;;  %v6633_v51 = vpack.c.bf16 %v123_v41, %v114_v40  ;;  %v1889_v41 = vld [vmem:[%s8348_s9 + $0x40] sm:$0xff] }
 0x1af   :  { %5155 = vmatprep.mubr.f32.mxu1 %v6431_v62  ;;  %v6007_v63 = vpop.eup %6006 }
 0x1b0   :  { %v6434_v1 = vmul.f32 %v6007_v63, %v321_v55  ;;  %v6551_v55 = vpack.c.bf16 %v124_v48, %v115_v47  ;;  %v103_v63 = vld [vmem:[%s8347_s16 + $0x60] sm:$0x1] }
 0x1b2   :  { %5156 = vmatmul.mubr.f32.vlgmr.msra.gmra.mrb[0].mxu1 %v6434_v1  ;;  %v5427_v4 = vpack.c.bf16 %v6434_v1, %v6431_v62 }
 0x1b3   :  { %5193 = vmatprep.mubr.f32.mxu1 %v757_v2 }
 0x1b4   :  { %5428 = vmatprep.subr.bf16.mxu1 %v5427_v4 }
 0x1b5   :  { %5430 = vmatpush3.bf16.xpose.msra.mxu1 %v5427_v4  ;;  %v6579_v4 = vpack.c.bf16 %v100_v60, %v91_v59  ;;  %v1882_v60 = vld [vmem:[%s8348_s9 + $0x8] sm:$0xff] }
 0x1b6   :  { %5433 = vmatprep.subr.msk.bf16.mxu1 %vm6453_vm7, %v6463_v11 }
 0x1bc   :  { %5194 = vmatmul.mubr.f32.vlgmr.msra.gmra.mrb[2].mxu1 %v758_v5 }
 0x1bd   :  { %5196 = vmatprep.mubr.f32.mxu1 %v759_v6  ;;  %5436 = vmatpush1.bf16.msk.msra.mxu1 %vm6453_vm7, %v6471_v14 }
 0x1be   :  { %5439 = vmatprep.subr.msk.bf16.mxu1 %vm6453_vm7, %v6485_v17 }
 0x1c0   :  { %5197 = vmatmul.mubr.f32.gmra.mrb[4].mxu1 %v760_v7  ;;  %v6581_v7 = vpack.c.bf16 %v103_v63, %v94_v61  ;;  %v1884_v61 = vld [vmem:[%s8348_s9 + $0x18] sm:$0xff]  ;;  %v71_v63 = vld [vmem:[%s8345_s15 + $0x10] sm:$0xff] }
 0x1c1   :  { %943 = vmatprep.mubr.f32.mxu1 %v8365_v27 }
 0x285   :  { %v5157_v24 = vpop.f32.mrb[0].mxu1 }
 0x286   :  { %v6497_v0 = vadd.f32 %v5157_v24, %v4695_v22  ;;  %v425_v25 = vpop.f32.mrb[1].mxu1 }
 0x287   :  { %v6499_v28 = vadd.f32 %v4695_v22, %v425_v25  ;;  %v93_v25 = vld [vmem:[%s8347_s16 + $0x10] sm:$0xff] }
 0x288   :  { %v441_v29 = vand.u32 2147483647, %v6497_v0  ;;  %v435_v20 = vmax.f32 %v6497_v0, 0.0  ;;  %vm437_vm11 = vcmp.ne.f32.partialorder %v6497_v0, %v6497_v0  ;;  %v6611_v38 = vpack.c.bf16 %v102_v16, %v93_v25  ;;  %v1886_v16 = vld [vmem:[%s8348_s9 + $0x28] sm:$0xff] }
 0x289   :  { %v440_v30 = vand.u32 2147483647, %v6499_v28  ;;  %vm436_vm12 = vcmp.ne.f32.partialorder %v6499_v28, %v6499_v28 }
 0x28a   :  { %v443_v32 = vsub.f32 0.0, %v441_v29 }
 0x28b   :  { %v442_v33 = vsub.f32 0.0, %v440_v30  ;;  %v434_v30 = vmax.f32 %v6499_v28, 0.0 }
 0x28c   :  { %v446_v34 = vmul.f32 1.442695, %v443_v32  ;;  %v98_v32 = vld [vmem:[%s8347_s16 + $0x38] sm:$0xff] }
 0x28d   :  { %v444_v35 = vmul.f32 1.442695, %v442_v33  ;;  %v107_v33 = vld [vmem:[%s8347_s16 + $0x80] sm:$0x1] }
 0x28e   :  { %6008 = vpow2.f32 %v446_v34  ;;  %v6624_v48 = vpack.c.bf16 %v107_v33, %v98_v32  ;;  %v76_v32 = vld [vmem:[%s8345_s15 + $0x38] sm:$0xff]  ;;  %v1890_v33 = vld [vmem:[%s8348_s9 + $0x48] sm:$0xff] }
 0x28f   :  { %6010 = vpow2.f32 %v444_v35  ;;  %v6503_v36 = vpop.f32.mrb[2].mxu1 }
 0x290   :  { %v6511_v39 = vpop.f32.mrb[3].mxu1 }
 0x293   :  { %v6521_v44 = vpop.f32.mrb[4].mxu1 }
 0x294   :  { %v6525_v46 = vpop.f32.mrb[5].mxu1 }
 0x295   :  { %4717 = vmatmul.mubr.msk.f32.vlgmr.msra.gmra.mrb[6].mxu1 %vm472_vm8, %v6525_v46 }
 0x296   :  { %949 = vmatprep.mubr.f32.mxu1 %v8365_v27  ;;  %5442 = vmatpush1.bf16.msk.msra.mxu1 %vm6453_vm7, %v6519_v43 }
 0x297   :  { %5451 = vmatprep.subr.msk.bf16.mxu1 %vm6453_vm7, %v6523_v45 }
 0x298   :  { %v6009_v49 = vpop.eup %6008 }
 0x299   :  { %v6011_v52 = vpop.eup %6010  ;;  %v457_v53 = vadd.f32 1.0, %v6009_v49  ;;  %4718 = vmatmul.mubr.msk.f32.gmra.mrb[8].mxu1 %vm472_vm8, %v6521_v44  ;;  %v460_v57 = vmul.f32 -0.5, %v6009_v49  ;;  %v463_v5 = vand.u32 2147483647, %v6009_v49 }
 0x29a   :  { %v448_v54 = vadd.f32 1.0, %v6011_v52  ;;  %1020 = vmatprep.mubr.f32.mxu1 %v8365_v27  ;;  %v451_v58 = vmul.f32 -0.5, %v6011_v52  ;;  %v454_v9 = vand.u32 2147483647, %v6011_v52 }
 0x29b   :  { %6012 = vlog2.f32 %v457_v53  ;;  %v461_v2 = vadd.f32 1.0, %v460_v57  ;;  %vm464_vm9 = vcmp.lt.f32.partialorder %v463_v5, 0.0004427343  ;;  %v126_v53 = vld [vmem:[%s8344_s17 + $0x88] sm:$0x1] }
 0x29c   :  { %6014 = vlog2.f32 %v448_v54  ;;  %v452_v6 = vadd.f32 1.0, %v451_v58  ;;  %vm455_vm10 = vcmp.lt.f32.partialorder %v454_v9, 0.0004427343  ;;  %v97_v54 = vld [vmem:[%s8347_s16 + $0x30] sm:$0xff]  ;;  %v106_v57 = vld [vmem:[%s8347_s16 + $0x78] sm:$0x1] }
 0x29d   :  { %4721 = vmatmul.mubr.msk.f32.vlgmr.msra.gmra.mrb[10].mxu1 %vm472_vm8, %v6525_v46  ;;  %v462_v15 = vmul.f32 %v6009_v49, %v461_v2  ;;  %v70_v58 = vld [vmem:[%s8345_s15 + $0x8] sm:$0xff]  ;;  %v6686_v5 = vpack.c.bf16 %v106_v57, %v97_v54  ;;  %v72_v9 = vld [vmem:[%s8345_s15 + $0x18] sm:$0xff] }
 0x29e   :  { %1026 = vmatprep.mubr.f32.mxu1 %v8365_v27  ;;  %5454 = vmatpush1.bf16.msk.msra.mxu1 %vm6453_vm7, %v6551_v55  ;;  %v453_v24 = vmul.f32 %v6011_v52, %v452_v6  ;;  %v113_v52 = vld [vmem:[%s8344_s17 + $0x20] sm:$0xff]  ;;  %v5523_v6 = vpack.c.bf16 %v1884_v61, %v1882_v60  ;;  %v1895_v60 = vld [vmem:[%s8348_s9 + $0x70] sm:$0xff]  ;;  %v80_v61 = vld [vmem:[%s8345_s15 + $0x58] sm:$0xff] }
 0x29f   :  { %5463 = vmatprep.subr.msk.bf16.mxu1 %vm6453_vm7, %v6553_v56 }
 0x2a1   :  { %4722 = vmatmul.mubr.msk.f32.gmra.mrb[12].mxu1 %vm472_vm8, %v6521_v44 }
 0x2a2   :  { %1174 = vmatprep.mubr.f32.mxu1 %v8365_v27 }
 0x2a5   :  { %v6013_v10 = vpop.eup %6012  ;;  %4729 = vmatmul.mubr.msk.f32.vlgmr.msra.gmra.mrb[14].mxu1 %vm472_vm8, %v6525_v46 }
 0x2a6   :  { %v6015_v12 = vpop.eup %6014  ;;  %v459_v13 = vmul.f32 0.6931472, %v6013_v10  ;;  %1180 = vmatprep.mubr.f32.mxu1 %v8365_v27  ;;  %5466 = vmatpush1.bf16.msk.msra.mxu1 %vm6453_vm7, %v6579_v4  ;;  %v73_v10 = vld [vmem:[%s8345_s15 + $0x20] sm:$0xff] }
 0x2a7   :  { %v450_v22 = vmul.f32 0.6931472, %v6015_v12  ;;  %5469 = vmatprep.subr.msk.bf16.mxu1 %vm6453_vm7, %v6581_v7  ;;  %v1881_v12 = vld [vmem:[%s8348_s9] sm:$0xff] }
 0x2a8   :  { %v465_v29 = vsel %vm464_vm9, %v462_v15, %v459_v13  ;;  %v1883_v13 = vld [vmem:[%s8348_s9 + $0x10] sm:$0xff]  ;;  %v74_v15 = vld [vmem:[%s8345_s15 + $0x28] sm:$0xff] }
 0x2a9   :  { %v467_v34 = vadd.f32 %v465_v29, %v435_v20  ;;  %v456_v35 = vsel %vm455_vm10, %v453_v24, %v450_v22  ;;  %4730 = vmatmul.mubr.msk.f32.gmra.mrb[16].mxu1 %vm472_vm8, %v6521_v44  ;;  %v1888_v20 = vld [vmem:[%s8348_s9 + $0x38] sm:$0xff]  ;;  %v75_v22 = vld [vmem:[%s8345_s15 + $0x30] sm:$0xff]  ;;  %v5525_v24 = vpack.c.bf16 %v1883_v13, %v1881_v12  ;;  %v1885_v29 = vld [vmem:[%s8348_s9 + $0x20] sm:$0xff] }
 0x2aa   :  { %v466_v37 = vadd.f32 %v456_v35, %v434_v30  ;;  %1359 = vmatprep.mubr.f32.mxu1 %v8365_v27  ;;  %v5527_v25 = vpack.c.bf16 %v1888_v20, %v1886_v16  ;;  %v1887_v30 = vld [vmem:[%s8348_s9 + $0x30] sm:$0xff]  ;;  %v77_v35 = vld [vmem:[%s8345_s15 + $0x40] sm:$0xff]  ;;  %v82_v16 = vld [vmem:[%s8345_s15 + $0x68] sm:$0xff] }
 0x2ab   :  { %v6622_v47 = vsel %vm437_vm11, %v6497_v0, %v467_v34  ;;  %v122_v0 = vld [vmem:[%s8344_s17 + $0x68] sm:$0x1]  ;;  %v1892_v34 = vld [vmem:[%s8348_s9 + $0x58] sm:$0xff]  ;;  %v1897_v13 = vld [vmem:[%s8348_s9 + $0x80] sm:$0xff] }
 0x2ac   :  { %v6627_v49 = vsel %vm436_vm12, %v6499_v28, %v466_v37  ;;  %v117_v28 = vld [vmem:[%s8344_s17 + $0x40] sm:$0xff]  ;;  %v6667_v59 = vpack.c.bf16 %v122_v0, %v113_v52  ;;  %v5529_v37 = vpack.c.bf16 %v1887_v30, %v1885_v29  ;;  %v5531_v40 = vpack.c.bf16 %v1892_v34, %v1890_v33  ;;  %v78_v52 = vld [vmem:[%s8345_s15 + $0x48] sm:$0xff]  ;;  %v84_v33 = vld [vmem:[%s8345_s15 + $0x78] sm:$0xff] }
 0x2ad   :  { %4736 = vmatmul.mubr.msk.f32.vlgmr.msra.gmra.mrb[6].mxu1 %vm472_vm8, %v6511_v39  ;;  %v5421_v50 = vpack.c.bf16 %v6622_v47, %v6627_v49  ;;  %v6683_v2 = vpack.c.bf16 %v126_v53, %v117_v28  ;;  %v1894_v0 = vld [vmem:[%s8348_s9 + $0x68] sm:$0xff]  ;;  %v1896_v28 = vld [vmem:[%s8348_s9 + $0x78] sm:$0xff]  ;;  %v79_v53 = vld [vmem:[%s8345_s15 + $0x50] sm:$0xff] }
 0x2ae   :  { %1365 = vmatprep.mubr.f32.mxu1 %v8365_v27  ;;  %5472 = vmatpush1.bf16.msk.msra.mxu1 %vm6453_vm7, %v6611_v38  ;;  %v5535_v57 = vpack.c.bf16 %v1896_v28, %v1894_v0  ;;  %v1902_v20 = vld [vmem:[%s8348_s9 + $0xa8] sm:$0xff]  ;;  %v1901_v30 = vld [vmem:[%s8348_s9 + $0xa0] sm:$0xff] }
 0x2af   :  { %5423 = vmatprep.subr.msk.bf16.mxu0 %vm6453_vm7, %v5421_v50  ;;  %5481 = vmatprep.subr.msk.bf16.mxu1 %vm6453_vm7, %v6624_v48  ;;  %v1906_v34 = vld [vmem:[%s8348_s9 + $0xc8] sm:$0xff] }
 0x2b0   :  { %5426 = vmatpush3.bf16.msk.msra.mxu0 %vm6453_vm7, %v5421_v50  ;;  %v1891_v50 = vld [vmem:[%s8348_s9 + $0x50] sm:$0xff]  ;;  %v86_v0 = vld [vmem:[%s8345_s15 + $0x88] sm:$0xff] }
 0x2b1   :  { %4737 = vmatmul.mubr.msk.f32.gmra.mrb[8].mxu1 %vm472_vm8, %v6503_v36  ;;  %5445 = vmatprep.subr.msk.bf16.mxu0 %vm6453_vm7, %v6633_v51  ;;  %v5533_v54 = vpack.c.bf16 %v1891_v50, %v1889_v41  ;;  %v1905_v50 = vld [vmem:[%s8348_s9 + $0xc0] sm:$0xff]  ;;  %v1910_v28 = vld [vmem:[%s8348_s9 + $0xe8] sm:$0xff] }
 0x2b2   :  { %1436 = vmatprep.mubr.f32.mxu1 %v8365_v27 }
 0x2b3   :  { %5163 = vmatmul.mubr.msk.f32.vlgmr.msra.gmra.mrb[4].mxu0 %vm472_vm8, %v70_v58  ;;  %v1893_v58 = vld [vmem:[%s8348_s9 + $0x60] sm:$0xff] }
 0x2b4   :  { %5165 = vmatprep.mubr.msk.f32.mxu0 %vm472_vm8, %v71_v63  ;;  %5448 = vmatpush1.bf16.msk.msra.mxu0 %vm6453_vm7, %v6667_v59  ;;  %v1898_v63 = vld [vmem:[%s8348_s9 + $0x88] sm:$0xff] }
 0x2b5   :  { %4740 = vmatmul.mubr.msk.f32.vlgmr.msra.gmra.mrb[10].mxu1 %vm472_vm8, %v6511_v39  ;;  %5457 = vmatprep.subr.msk.bf16.mxu0 %vm6453_vm7, %v6683_v2 }
 0x2b6   :  { %1442 = vmatprep.mubr.f32.mxu1 %v8365_v27  ;;  %5484 = vmatpush1.bf16.msk.msra.mxu1 %vm6453_vm7, %v6686_v5 }
 0x2b7   :  { %5166 = vmatmul.mubr.msk.f32.gmra.mrb[6].mxu0 %vm472_vm8, %v72_v9  ;;  %5524 = vmatprep.subr.bf16.mxu1 %v5523_v6  ;;  %v1900_v6 = vld [vmem:[%s8348_s9 + $0x98] sm:$0xff]  ;;  %v81_v9 = vld [vmem:[%s8345_s15 + $0x60] sm:$0xff] }
 0x2b8   :  { %5168 = vmatprep.mubr.msk.f32.mxu0 %vm472_vm8, %v73_v10  ;;  %v5537_v10 = vpack.c.bf16 %v1895_v60, %v1893_v58  ;;  %v5539_v12 = vpack.c.bf16 %v1900_v6, %v1898_v63  ;;  %v105_v58 = vld [vmem:[%s8347_s16 + $0x70] sm:$0x1] }
 0x2b9   :  { %4741 = vmatmul.mubr.msk.f32.gmra.mrb[12].mxu1 %vm472_vm8, %v6503_v36  ;;  %v1911_v63 = vld [vmem:[%s8348_s9 + $0xf0] sm:$0xff] }
 0x2ba   :  { %1590 = vmatprep.mubr.f32.mxu1 %v8365_v27 }
 0x2bb   :  { %5169 = vmatmul.mubr.msk.f32.gmra.mrb[8].mxu0 %vm472_vm8, %v74_v15  ;;  %v1899_v15 = vld [vmem:[%s8348_s9 + $0x90] sm:$0xff] }
 0x2bc   :  { %5171 = vmatprep.mubr.msk.f32.mxu0 %vm472_vm8, %v75_v22  ;;  %v1904_v22 = vld [vmem:[%s8348_s9 + $0xb8] sm:$0xff] }
 0x2bd   :  { %4748 = vmatmul.mubr.msk.f32.vlgmr.msra.gmra.mrb[14].mxu1 %vm472_vm8, %v6511_v39  ;;  %v5543_v29 = vpack.c.bf16 %v1904_v22, %v1902_v20  ;;  %v1769_v22 = vld [vmem:[%s8349_s8 + $0x8] sm:$0xff] }
 0x2be   :  { %5526 = vmatpush1.bf16.msra.mxu1 %v5525_v24  ;;  %1596 = vmatprep.mubr.f32.mxu1 %v8365_v27  ;;  %v83_v24 = vld [vmem:[%s8345_s15 + $0x70] sm:$0xff] }
 0x2bf   :  { %5172 = vmatmul.mubr.msk.f32.gmra.mrb[10].mxu0 %vm472_vm8, %v76_v32  ;;  %5528 = vmatprep.subr.bf16.mxu1 %v5527_v25  ;;  %v5541_v25 = vpack.c.bf16 %v1899_v15, %v1897_v13  ;;  %v1903_v32 = vld [vmem:[%s8348_s9 + $0xb0] sm:$0xff]  ;;  %v99_v13 = vld [vmem:[%s8347_s16 + $0x40] sm:$0xff]  ;;  %v108_v15 = vld [vmem:[%s8347_s16 + $0x88] sm:$0x1] }
 0x2c0   :  { %5174 = vmatprep.mubr.msk.f32.mxu0 %vm472_vm8, %v77_v35  ;;  %v1908_v35 = vld [vmem:[%s8348_s9 + $0xd8] sm:$0xff]  ;;  %v6898_v20 = vpack.c.bf16 %v108_v15, %v99_v13 }
 0x2c1   :  { %4749 = vmatmul.mubr.msk.f32.gmra.mrb[16].mxu1 %vm472_vm8, %v6503_v36  ;;  %v5547_v41 = vpack.c.bf16 %v1908_v35, %v1906_v34  ;;  %v1772_v34 = vld [vmem:[%s8349_s8 + $0x20] sm:$0xff]  ;;  %v1774_v35 = vld [vmem:[%s8349_s8 + $0x30] sm:$0xff]  ;;  %v1791_v13 = vld [vmem:[%s8349_s8 + $0xb8] sm:$0xff] }
 0x2c2   :  { %5530 = vmatpush1.bf16.msra.mxu1 %v5529_v37  ;;  %1977 = vmatprep.mubr.f32.mxu1 %v8365_v27  ;;  %v85_v37 = vld [vmem:[%s8345_s15 + $0x80] sm:$0xff]  ;;  %8387 = vst [vmem:[#allocation3_spill] sm:$0xff] %v6898_v20 }
 0x2c3   :  { %5175 = vmatmul.mubr.msk.f32.gmra.mrb[12].mxu0 %vm472_vm8, %v78_v52  ;;  %5532 = vmatprep.subr.bf16.mxu1 %v5531_v40  ;;  %v5545_v40 = vpack.c.bf16 %v1903_v32, %v1901_v30  ;;  %v1907_v52 = vld [vmem:[%s8348_s9 + $0xd0] sm:$0xff]  ;;  %v1775_v30 = vld [vmem:[%s8349_s8 + $0x38] sm:$0xff] }
 0x2c4   :  { %5177 = vmatprep.mubr.msk.f32.mxu0 %vm472_vm8, %v79_v53  ;;  %v1912_v53 = vld [vmem:[%s8348_s9 + $0xf8] sm:$0xff] }
 0x2c5   :  { %v5551_v60 = vpack.c.bf16 %v1912_v53, %v1910_v28 }
 0x2c6   :  { %5534 = vmatpush1.bf16.msra.mxu1 %v5533_v54  ;;  %v5549_v54 = vpack.c.bf16 %v1907_v52, %v1905_v50  ;;  %v1776_v50 = vld [vmem:[%s8349_s8 + $0x40] sm:$0xff]  ;;  %v1778_v52 = vld [vmem:[%s8349_s8 + $0x50] sm:$0xff] }
 0x2c7   :  { %5178 = vmatmul.mubr.msk.f32.gmra.mrb[14].mxu0 %vm472_vm8, %v80_v61  ;;  %5536 = vmatprep.subr.bf16.mxu1 %v5535_v57  ;;  %v96_v57 = vld [vmem:[%s8347_s16 + $0x28] sm:$0xff]  ;;  %v1909_v61 = vld [vmem:[%s8348_s9 + $0xe0] sm:$0xff]  ;;  %v5501_v28 = vpack.c.bf16 %v1778_v52, %v1776_v50  ;;  %v8367_v52 = vmov 0.0|0.0  }
 0x2c8   :  { %5180 = vmatprep.mubr.msk.f32.mxu0 %vm472_vm8, %v81_v9  ;;  %v6868_v6 = vpack.c.bf16 %v105_v58, %v96_v57  ;;  %v5553_v9 = vpack.c.bf16 %v1911_v63, %v1909_v61  ;;  %v1782_v57 = vld [vmem:[%s8349_s8 + $0x70] sm:$0xff]  ;;  %v1785_v58 = vld [vmem:[%s8349_s8 + $0x88] sm:$0xff] }
 0x2ca   :  { %5538 = vmatpush1.bf16.msra.mxu1 %v5537_v10  ;;  %v95_v10 = vld [vmem:[%s8347_s16 + $0x20] sm:$0xff] }
 0x2cb   :  { %5181 = vmatmul.mubr.msk.f32.gmra.mrb[16].mxu0 %vm472_vm8, %v82_v16  ;;  %5540 = vmatprep.subr.bf16.mxu1 %v5539_v12  ;;  %v104_v12 = vld [vmem:[%s8347_s16 + $0x68] sm:$0x1] }
 0x2cc   :  { %5183 = vmatprep.mubr.msk.f32.mxu0 %vm472_vm8, %v83_v24  ;;  %v6895_v16 = vpack.c.bf16 %v104_v12, %v95_v10  ;;  %v1771_v24 = vld [vmem:[%s8349_s8 + $0x18] sm:$0xff]  ;;  %v1786_v10 = vld [vmem:[%s8349_s8 + $0x90] sm:$0xff]  ;;  %v1789_v12 = vld [vmem:[%s8349_s8 + $0xa8] sm:$0xff] }
 0x2ce   :  { %5542 = vmatpush1.bf16.msra.mxu1 %v5541_v25  ;;  %v1770_v25 = vld [vmem:[%s8349_s8 + $0x10] sm:$0xff] }
 0x2cf   :  { %5184 = vmatmul.mubr.msk.f32.gmra.mrb[18].mxu0 %vm472_vm8, %v84_v33  ;;  %5544 = vmatprep.subr.bf16.mxu1 %v5543_v29  ;;  %v1773_v29 = vld [vmem:[%s8349_s8 + $0x28] sm:$0xff] }
 0x2d0   :  { %5186 = vmatprep.mubr.msk.f32.mxu0 %vm472_vm8, %v85_v37  ;;  %v5495_v33 = vpack.c.bf16 %v1775_v30, %v1773_v29  ;;  %v1777_v37 = vld [vmem:[%s8349_s8 + $0x48] sm:$0xff] }
 0x2d2   :  { %5546 = vmatpush1.bf16.msra.mxu1 %v5545_v40  ;;  %v1779_v40 = vld [vmem:[%s8349_s8 + $0x58] sm:$0xff] }
 0x2d3   :  { %5187 = vmatmul.mubr.msk.f32.gmra.mrb[20].mxu0 %vm472_vm8, %v86_v0  ;;  %5548 = vmatprep.subr.bf16.mxu1 %v5547_v41  ;;  %v5499_v41 = vpack.c.bf16 %v1779_v40, %v1777_v37  ;;  %v1781_v0 = vld [vmem:[%s8349_s8 + $0x68] sm:$0xff] }
 0x2d4   :  { %1097 = vmatprep.mubr.f32.mxu0 %v8365_v27 }
 0x2d6   :  { %5550 = vmatpush1.bf16.msra.mxu1 %v5549_v54  ;;  %v1780_v54 = vld [vmem:[%s8349_s8 + $0x60] sm:$0xff] }
 0x2d7   :  { %4725 = vmatmul.mubr.msk.f32.vlgmr.msra.gmra.mrb[22].mxu0 %vm472_vm8, %v6525_v46  ;;  %5552 = vmatprep.subr.bf16.mxu1 %v5551_v60  ;;  %v1787_v60 = vld [vmem:[%s8349_s8 + $0x98] sm:$0xff]  ;;  %v5505_v61 = vpack.c.bf16 %v1782_v57, %v1780_v54 }
 0x2d8   :  { %1103 = vmatprep.mubr.f32.mxu0 %v8365_v27  ;;  %5460 = vmatpush3.bf16.msk.msra.mxu0 %vm6453_vm7, %v6683_v2  ;;  %v5507_v63 = vpack.c.bf16 %v1787_v60, %v1785_v58 }
 0x2d9   :  { %5475 = vmatprep.subr.msk.bf16.mxu0 %vm6453_vm7, %v6868_v6 }
 0x2da   :  { %5554 = vmatpush1.bf16.msra.mxu1 %v5553_v9  ;;  %v1784_v9 = vld [vmem:[%s8349_s8 + $0x80] sm:$0xff] }
 0x2db   :  { %4726 = vmatmul.mubr.msk.f32.gmra.mrb[24].mxu0 %vm472_vm8, %v6521_v44  ;;  %v5509_v15 = vpack.c.bf16 %v1786_v10, %v1784_v9  ;;  %5582 = vmatprep.subr.bf16.mxu1 %v8367_v52  ;;  %v685_v9 = vld [vmem:[%s8350_s10] sm:$0xff] }
 0x2dc   :  { %5203 = vmatprep.mubr.msk.f32.mxu0 %vm472_vm8, %v6525_v46  ;;  %v5491_v46 = vpack.c.bf16 %v1771_v24, %v1769_v22  ;;  %v5511_v22 = vpack.c.bf16 %v1791_v13, %v1789_v12  ;;  %v1788_v24 = vld [vmem:[%s8349_s8 + $0xa0] sm:$0xff] }
 0x2dd   :  { %1978 = vmatmul.mubr.f32.vlgmr.msra.gmra.mrb[18].mxu1 %v6431_v62 }
 0x2de   :  { %1983 = vmatprep.mubr.f32.mxu1 %v8365_v27 }
 0x2df   :  { %5204 = vmatmul.mubr.msk.f32.vlgmr.msra.gmra.mrb[26].mxu0 %vm472_vm8, %v6521_v44  ;;  %v1768_v44 = vld [vmem:[%s8349_s8] sm:$0xff] }
 0x2e0   :  { %5478 = vmatpush1.bf16.msk.msra.mxu0 %vm6453_vm7, %v6895_v16  ;;  %1513 = vmatprep.mubr.f32.mxu0 %v8365_v27  ;;  %v5493_v32 = vpack.c.bf16 %v1770_v25, %v1768_v44  ;;  %v1793_v44 = vld [vmem:[%s8349_s8 + $0xc8] sm:$0xff]  ;;  %v1795_v25 = vld [vmem:[%s8349_s8 + $0xd8] sm:$0xff] }
 0x2e1   :  { %1984 = vmatmul.mubr.f32.gmra.mrb[20].mxu1 %v6434_v1  ;;  %5487 = vmatprep.subr.msk.bf16.mxu0 %vm6453_vm7, %v6898_v20  ;;  %v5515_v30 = vpack.c.bf16 %v1795_v25, %v1793_v44  ;;  %v688_v25 = vld [vmem:[%s8350_s10 + $0x18] sm:$0xff] }
 0x2e3   :  { %4744 = vmatmul.mubr.msk.f32.vlgmr.msra.gmra.mrb[22].mxu0 %vm472_vm8, %v6511_v39 }
 0x2e4   :  { %1519 = vmatprep.mubr.f32.mxu0 %v8365_v27  ;;  %5490 = vmatpush3.bf16.msk.msra.mxu0 %vm6453_vm7, %v6898_v20 }
 0x2e5   :  { %5492 = vmatprep.subr.bf16.mxu0 %v5491_v46  ;;  %v1790_v46 = vld [vmem:[%s8349_s8 + $0xb0] sm:$0xff] }
 0x2e6   :  { %v5513_v29 = vpack.c.bf16 %v1790_v46, %v1788_v24 }
 0x2e7   :  { %4745 = vmatmul.mubr.msk.f32.gmra.mrb[24].mxu0 %vm472_vm8, %v6503_v36 }
 0x2e8   :  { %5210 = vmatprep.mubr.msk.f32.mxu0 %vm472_vm8, %v6511_v39  ;;  %v5497_v39 = vpack.c.bf16 %v1774_v35, %v1772_v34  ;;  %v1797_v34 = vld [vmem:[%s8349_s8 + $0xe8] sm:$0xff]  ;;  %v1799_v35 = vld [vmem:[%s8349_s8 + $0xf8] sm:$0xff] }
 0x2e9   :  { %v5519_v40 = vpack.c.bf16 %v1799_v35, %v1797_v34 }
 0x2eb   :  { %5211 = vmatmul.mubr.msk.f32.vlgmr.msra.gmra.mrb[26].mxu0 %vm472_vm8, %v6503_v36  ;;  %v1783_v36 = vld [vmem:[%s8349_s8 + $0x78] sm:$0xff] }
 0x2ec   :  { %5494 = vmatpush1.bf16.msra.mxu0 %v5493_v32  ;;  %1864 = vmatprep.mubr.f32.mxu0 %v8365_v27  ;;  %v5503_v53 = vpack.c.bf16 %v1783_v36, %v1781_v0  ;;  %v1792_v32 = vld [vmem:[%s8349_s8 + $0xc0] sm:$0xff]  ;;  %v7027_v0 = vmul.f32 %v6627_v49, %v6431_v62 }
 0x2ed   :  { %5496 = vmatprep.subr.bf16.mxu0 %v5495_v33  ;;  %v1794_v33 = vld [vmem:[%s8349_s8 + $0xd0] sm:$0xff] }
 0x2ee   :  { %v5517_v37 = vpack.c.bf16 %v1794_v33, %v1792_v32  ;;  %v1681_v36 = vrot.slane %v7027_v0, %v6409_v21  ;;  %v1711_v44 = vrot.slane %v7027_v0, %v6403_v19  ;;  %v687_v33 = vld [vmem:[%s8350_s10 + $0x10] sm:$0xff] }
 0x2f0   :  { %5498 = vmatpush1.bf16.msra.mxu0 %v5497_v39  ;;  %v1796_v39 = vld [vmem:[%s8349_s8 + $0xe0] sm:$0xff] }
 0x2f1   :  { %5500 = vmatprep.subr.bf16.mxu0 %v5499_v41  ;;  %v1798_v41 = vld [vmem:[%s8349_s8 + $0xf0] sm:$0xff] }
 0x2f2   :  { %v5521_v50 = vpack.c.bf16 %v1798_v41, %v1796_v39  ;;  %v8364_v41 = vsub.s32 6, %v6400_v18 }
 0x2f4   :  { %5502 = vmatpush1.bf16.msra.mxu0 %v5501_v28 }
 0x2f5   :  { %5504 = vmatprep.subr.bf16.mxu0 %v5503_v53  ;;  %v1691_v53 = vrot.slane %v7027_v0, %v6413_v23 }
 0x2f8   :  { %5506 = vmatpush1.bf16.msra.mxu0 %v5505_v61  ;;  %v686_v61 = vld [vmem:[%s8350_s10 + $0x8] sm:$0xff] }
 0x2f9   :  { %5508 = vmatprep.subr.bf16.mxu0 %v5507_v63 }
 0x2fc   :  { %5510 = vmatpush1.bf16.msra.mxu0 %v5509_v15 }
 0x2fd   :  { %5512 = vmatprep.subr.bf16.mxu0 %v5511_v22  ;;  %v1701_v22 = vrot.slane %v7027_v0, %v6420_v26 }
 0x300   :  { %5514 = vmatpush1.bf16.msra.mxu0 %v5513_v29 }
 0x301   :  { %5516 = vmatprep.subr.bf16.mxu0 %v5515_v30 }
 0x304   :  { %5518 = vmatpush1.bf16.msra.mxu0 %v5517_v37 }
 0x305   :  { %5520 = vmatprep.subr.bf16.mxu0 %v5519_v40 }
 0x308   :  { %5522 = vmatpush1.bf16.msra.mxu0 %v5521_v50 }
 0x309   :  { %5555 = vmatprep.subr.bf16.mxu0 %v8367_v52 }
 0x30b   :  { %1865 = vmatmul.mubr.f32.vlgmr.msra.gmra.mrb[28].mxu0 %v6431_v62 }
 0x30c   :  { %1870 = vmatprep.mubr.f32.mxu0 %v8365_v27 }
 0x30f   :  { %1871 = vmatmul.mubr.f32.gmra.mrb[30].mxu0 %v6434_v1 }
 0x380   :  { %v1361_v28 = vpop.f32.mrb[6].mxu1 }
 0x381   :  { %v7033_v54 = vmul.f32 %v1681_v36, %v1361_v28  ;;  %v1363_v57 = vpop.f32.mrb[7].mxu1  ;;  %v690_v28 = vld [vmem:[%s8350_s10 + $0x28] sm:$0xff] }
 0x382   :  { %v7035_v58 = vmul.f32 %v1691_v53, %v1363_v57 }
 0x384   :  { %v1367_v60 = vpop.f32.mrb[8].mxu1 }
 0x385   :  { %v7040_v63 = vmul.f32 %v1681_v36, %v1367_v60  ;;  %v1369_v49 = vpop.f32.mrb[9].mxu1 }
 0x386   :  { %v7045_v10 = vmul.f32 %v1691_v53, %v1369_v49  ;;  %v5164_v12 = vpop.f32.mrb[4].mxu0  ;;  %v8363_v53 = vsub.s32 7, %v6400_v18  ;;  %v689_v49 = vld [vmem:[%s8350_s10 + $0x20] sm:$0xff] }
 0x387   :  { %v704_v13 = vmul.f32 %v5164_v12, %v686_v61  ;;  %v596_v15 = vpop.f32.mrb[5].mxu0 }
 0x388   :  { %v703_v24 = vmul.f32 %v685_v9, %v596_v15  ;;  %v1438_v46 = vpop.f32.mrb[10].mxu1 }
 0x389   :  { %v723_v29 = vmul.f32 1.442695, %v704_v13  ;;  %v7054_v30 = vmul.f32 %v1701_v22, %v1438_v46  ;;  %v1440_v32 = vpop.f32.mrb[11].mxu1  ;;  %v1741_v46 = vrot.slane %v7027_v0, %v8364_v41 }
 0x38a   :  { %v721_v34 = vmul.f32 1.442695, %v703_v24  ;;  %v7059_v35 = vmul.f32 %v1711_v44, %v1440_v32  ;;  %v5167_v37 = vpop.f32.mrb[6].mxu0 }
 0x38b   :  { %6016 = vpow2.f32 %v723_v29  ;;  %v706_v40 = vmul.f32 %v5167_v37, %v688_v25  ;;  %v606_v39 = vpop.f32.mrb[7].mxu0  ;;  %v1751_v29 = vrot.slane %v7027_v0, %v8363_v53  ;;  %v691_v37 = vld [vmem:[%s8350_s10 + $0x30] sm:$0xff] }
 0x38c   :  { %6018 = vpow2.f32 %v721_v34  ;;  %v705_v50 = vmul.f32 %v687_v33, %v606_v39  ;;  %v1444_v36 = vpop.f32.mrb[12].mxu1 }
 0x38d   :  { %v727_v57 = vmul.f32 1.442695, %v706_v40  ;;  %v7066_v60 = vmul.f32 %v1701_v22, %v1444_v36  ;;  %v1446_v61 = vpop.f32.mrb[13].mxu1 }
 0x38e   :  { %v725_v9 = vmul.f32 1.442695, %v705_v50  ;;  %v7071_v12 = vmul.f32 %v1711_v44, %v1446_v61  ;;  %v5170_v13 = vpop.f32.mrb[8].mxu0  ;;  %v692_v44 = vld [vmem:[%s8350_s10 + $0x38] sm:$0xff] }
 0x38f   :  { %6020 = vpow2.f32 %v727_v57  ;;  %v708_v15 = vmul.f32 %v5170_v13, %v690_v28  ;;  %v616_v24 = vpop.f32.mrb[9].mxu0 }
 0x390   :  { %6022 = vpow2.f32 %v725_v9  ;;  %v707_v25 = vmul.f32 %v689_v49, %v616_v24  ;;  %v1592_v22 = vpop.f32.mrb[14].mxu1  ;;  %v694_v49 = vld [vmem:[%s8350_s10 + $0x48] sm:$0xff] }
 0x391   :  { %v731_v32 = vmul.f32 1.442695, %v708_v15  ;;  %v7082_v33 = vmul.f32 %v1741_v46, %v1592_v22  ;;  %v1594_v34 = vpop.f32.mrb[15].mxu1 }
 0x392   :  { %v729_v40 = vmul.f32 1.442695, %v707_v25  ;;  %v7087_v39 = vmul.f32 %v1751_v29, %v1594_v34  ;;  %v5173_v50 = vpop.f32.mrb[10].mxu0  ;;  %v693_v25 = vld [vmem:[%s8350_s10 + $0x40] sm:$0xff] }
 0x393   :  { %6024 = vpow2.f32 %v731_v32  ;;  %v710_v36 = vmul.f32 %v5173_v50, %v692_v44  ;;  %v626_v28 = vpop.f32.mrb[11].mxu0 }
 0x394   :  { %6026 = vpow2.f32 %v729_v40  ;;  %v709_v57 = vmul.f32 %v691_v37, %v626_v28  ;;  %v1598_v61 = vpop.f32.mrb[16].mxu1 }
 0x395   :  { %v6017_v9 = vpop.eup %6016  ;;  %v735_v13 = vmul.f32 1.442695, %v710_v36  ;;  %v7092_v15 = vmul.f32 %v1741_v46, %v1598_v61  ;;  %v1600_v24 = vpop.f32.mrb[17].mxu1 }
 0x396   :  { %v6019_v22 = vpop.eup %6018  ;;  %v1685_v32 = vmul.f32 0.0, %v6017_v9  ;;  %v733_v44 = vmul.f32 1.442695, %v709_v57  ;;  %v7097_v34 = vmul.f32 %v1751_v29, %v1600_v24  ;;  %v5176_v37 = vpop.f32.mrb[12].mxu0 }
 0x397   :  { %v1684_v40 = vmul.f32 0.0, %v6019_v22  ;;  %6028 = vpow2.f32 %v735_v13  ;;  %v712_v50 = vmul.f32 %v5176_v37, %v694_v49  ;;  %v636_v28 = vpop.f32.mrb[13].mxu0  ;;  %v8388_v22 = vmov 0.0|0.0  }
 0x398   :  { %v1687_v53 = vadd.f32 %v1685_v32, %v7040_v63  ;;  %6030 = vpow2.f32 %v733_v44  ;;  %v711_v46 = vmul.f32 %v693_v25, %v636_v28 }
 0x399   :  { %v6021_v36 = vpop.eup %6020  ;;  %v1686_v61 = vadd.f32 %v1684_v40, %v7033_v54  ;;  %v739_v41 = vmul.f32 1.442695, %v712_v50 }
 0x39a   :  { %v6023_v27 = vpop.eup %6022  ;;  %v737_v52 = vmul.f32 1.442695, %v711_v46  ;;  %v5179_v20 = vpop.f32.mrb[14].mxu0  ;;  %v1695_v9 = vmul.f32 %v6021_v36, %v1687_v53 }
 0x39b   :  { %6032 = vpow2.f32 %v739_v41  ;;  %v5556_v29 = vpack.c.bf16 %v1687_v53, %v1686_v61  ;;  %v646_v57 = vpop.f32.mrb[15].mxu0  ;;  %v1694_v24 = vmul.f32 %v6023_v27, %v1686_v61 }
 0x39c   :  { %6034 = vpow2.f32 %v737_v52  ;;  %v1697_v49 = vadd.f32 %v1695_v9, %v7045_v10 }
 0x39d   :  { %v6025_v13 = vpop.eup %6024  ;;  %5557 = vmatpush1.bf16.msra.mxu0 %v5556_v29  ;;  %5584 = vmatpush1.bf16.msra.mxu1 %v5556_v29  ;;  %v1696_v63 = vadd.f32 %v1694_v24, %v7035_v58 }
 0x39e   :  { %v6027_v25 = vpop.eup %6026  ;;  %5558 = vmatprep.subr.bf16.mxu0 %v8388_v22  ;;  %5585 = vmatprep.subr.bf16.mxu1 %v8388_v22  ;;  %v5182_v54 = vpop.f32.mrb[16].mxu0  ;;  %v1705_v32 = vmul.f32 %v6025_v13, %v1697_v49 }
 0x39f   :  { %v5559_v44 = vpack.c.bf16 %v1697_v49, %v1696_v63  ;;  %v656_v41 = vpop.f32.mrb[17].mxu0  ;;  %v1704_v53 = vmul.f32 %v6027_v25, %v1696_v63  ;;  %v696_v63 = vld [vmem:[%s8350_s10 + $0x58] sm:$0xff] }
 0x3a0   :  { %v1707_v27 = vadd.f32 %v1705_v32, %v7066_v60  ;;  %v695_v60 = vld [vmem:[%s8350_s10 + $0x50] sm:$0xff]  ;;  %v714_v32 = vmul.f32 %v5179_v20, %v696_v63  ;;  %v700_v20 = vld [vmem:[%s8350_s10 + $0x78] sm:$0xff] }
 0x3a1   :  { %v6029_v52 = vpop.eup %6028  ;;  %5560 = vmatpush1.bf16.msra.mxu0 %v5559_v44  ;;  %5587 = vmatpush1.bf16.msra.mxu1 %v5559_v44  ;;  %v1706_v10 = vadd.f32 %v1704_v53, %v7054_v30  ;;  %v713_v25 = vmul.f32 %v695_v60, %v646_v57  ;;  %v698_v53 = vld [vmem:[%s8350_s10 + $0x68] sm:$0xff]  ;;  %v699_v57 = vld [vmem:[%s8350_s10 + $0x70] sm:$0xff]  ;;  %v1730_v60 = vsub.s32 5, %v6400_v18 }
 0x3a2   :  { %v6031_v37 = vpop.eup %6030  ;;  %5561 = vmatprep.subr.bf16.mxu0 %v8388_v22  ;;  %5588 = vmatprep.subr.bf16.mxu1 %v8388_v22  ;;  %v5185_v58 = vpop.f32.mrb[18].mxu0  ;;  %v1715_v40 = vmul.f32 %v6029_v52, %v1707_v27  ;;  %v743_v52 = vmul.f32 1.442695, %v714_v32 }
 0x3a3   :  { %v5562_v50 = vpack.c.bf16 %v1707_v27, %v1706_v10  ;;  %v666_v28 = vpop.f32.mrb[19].mxu0  ;;  %v1714_v46 = vmul.f32 %v6031_v37, %v1706_v10  ;;  %v741_v44 = vmul.f32 1.442695, %v713_v25  ;;  %v716_v10 = vmul.f32 %v5182_v54, %v698_v53  ;;  %v7135_v37 = vld [vmem:[%s8351_s18 + $0x8] sm:$0xff] }
 0x3a4   :  { %v1717_v36 = vadd.f32 %v1715_v40, %v7071_v12  ;;  %v8371_v54 = vsub.s32 4, %v6400_v18  ;;  %v702_v25 = vld [vmem:[%s8350_s10 + $0x88] sm:$0xff] }
 0x3a5   :  { %v6033_v61 = vpop.eup %6032  ;;  %5563 = vmatpush1.bf16.msra.mxu0 %v5562_v50  ;;  %5590 = vmatpush1.bf16.msra.mxu1 %v5562_v50  ;;  %v1716_v30 = vadd.f32 %v1714_v46, %v7059_v35  ;;  %v697_v35 = vld [vmem:[%s8350_s10 + $0x60] sm:$0xff]  ;;  %6036 = vpow2.f32 %v741_v44  ;;  %v717_v50 = vmul.f32 %v699_v57, %v666_v28 }
 0x3a6   :  { %v6035_v9 = vpop.eup %6034  ;;  %5564 = vmatprep.subr.bf16.mxu0 %v8388_v22  ;;  %5591 = vmatprep.subr.bf16.mxu1 %v8388_v22  ;;  %v5188_v29 = vpop.f32.mrb[20].mxu0  ;;  %v7116_v24 = vmul.f32 %v6033_v61, %v1717_v36  ;;  %v715_v27 = vmul.f32 %v697_v35, %v656_v41  ;;  %v701_v41 = vld [vmem:[%s8350_s10 + $0x80] sm:$0xff]  ;;  %6038 = vpow2.f32 %v743_v52  ;;  %v1721_v32 = vrot.slane %v7027_v0, %v8371_v54 }
 0x3a7   :  { %v5565_v49 = vpack.c.bf16 %v1717_v36, %v1716_v30  ;;  %v676_v13 = vpop.f32.mrb[21].mxu0  ;;  %v1724_v12 = vmul.f32 %v6035_v9, %v1716_v30  ;;  %v747_v30 = vmul.f32 1.442695, %v716_v10  ;;  %v718_v9 = vmul.f32 %v5185_v58, %v700_v20 }
 0x3a8   :  { %v745_v40 = vmul.f32 1.442695, %v715_v27  ;;  %v719_v28 = vmul.f32 %v701_v41, %v676_v13  ;;  %v1731_v58 = vrot.slane %v7027_v0, %v1730_v60  ;;  %v720_v57 = vmul.f32 %v5188_v29, %v702_v25 }
 0x3a9   :  { %5566 = vmatpush1.bf16.msra.mxu0 %v5565_v49  ;;  %5593 = vmatpush1.bf16.msra.mxu1 %v5565_v49  ;;  %v749_v49 = vmul.f32 1.442695, %v717_v50  ;;  %v751_v13 = vmul.f32 1.442695, %v718_v9  ;;  %v471_v20 = vmul.f32 %v6622_v47, %v6434_v1 }
 0x3aa   :  { %5567 = vmatprep.subr.bf16.mxu0 %v8388_v22  ;;  %5594 = vmatprep.subr.bf16.mxu1 %v8388_v22  ;;  %6040 = vpow2.f32 %v745_v40  ;;  %v753_v52 = vmul.f32 1.442695, %v719_v28  ;;  %v755_v18 = vmul.f32 1.442695, %v720_v57 }
 0x3ab   :  { %6042 = vpow2.f32 %v747_v30  ;;  %v1761_v29 = vrot.slane %v471_v20, %v6409_v21 }
 0x3ac   :  { %6044 = vpow2.f32 %v749_v49 }
 0x3ad   :  { %6046 = vpow2.f32 %v751_v13 }
 0x3ae   :  { %6048 = vpow2.f32 %v753_v52 }
 0x3af   :  { %v6037_v50 = vpop.eup %6036  ;;  %6050 = vpow2.f32 %v755_v18 }
 0x3b0   :  { %v7140_v46 = vpop.f32.mrb[18].mxu1  ;;  %v6039_v30 = vpop.eup %6038 }
 0x3b1   :  { %v1981_v36 = vpop.f32.mrb[19].mxu1 }
 0x3b2   :  { %v1991_v61 = vmul.f32 %v1981_v36, %v7135_v37 }
 0x3b4   :  { %v7148_v63 = vpop.f32.mrb[20].mxu1  ;;  %4755 = vmatprep.mubr.msk.f32.mxu1 %vm1994_vm13, %v1991_v61  ;;  %v6041_v28 = vpop.eup %6040 }
 0x3b5   :  { %v7154_v35 = vpop.f32.mrb[21].mxu1 }
 0x3b6   :  { %v1515_v44 = vpop.f32.mrb[22].mxu0 }
 0x3b7   :  { %v1722_v53 = vmul.f32 %v1721_v32, %v1515_v44  ;;  %v1517_v27 = vpop.f32.mrb[23].mxu0 }
 0x3b8   :  { %v1732_v10 = vmul.f32 %v1731_v58, %v1517_v27 }
 0x3b9   :  { %v1726_v40 = vadd.f32 %v1724_v12, %v1722_v53 }
 0x3ba   :  { %v1521_v41 = vpop.f32.mrb[24].mxu0 }
 0x3bb   :  { %v1734_v36 = vmul.f32 %v6037_v50, %v1726_v40  ;;  %v1723_v61 = vmul.f32 %v1721_v32, %v1521_v41  ;;  %v1523_v54 = vpop.f32.mrb[25].mxu0  ;;  %v6043_v32 = vpop.eup %6042 }
 0x3bc   :  { %v1733_v0 = vmul.f32 %v1731_v58, %v1523_v54  ;;  %v6045_v54 = vpop.eup %6044 }
 0x3bd   :  { %v1736_v9 = vadd.f32 %v1734_v36, %v1732_v10  ;;  %v1727_v49 = vadd.f32 %v7116_v24, %v1723_v61 }
 0x3be   :  { %v5212_v12 = vpop.f32.mrb[26].mxu0 }
 0x3bf   :  { %v1744_v25 = vmul.f32 %v6041_v28, %v1736_v9  ;;  %v5568_v44 = vpack.c.bf16 %v1727_v49, %v1726_v40  ;;  %v1735_v47 = vmul.f32 %v6039_v30, %v1727_v49  ;;  %v1763_v53 = vmul.f32 %v5212_v12, %v1761_v29  ;;  %v1669_v27 = vpop.f32.mrb[27].mxu0  ;;  %v6047_v40 = vpop.eup %6046  ;;  %v2189_v49 = vld [vmem:[%s8352_s12 + $0x8] sm:$0xff]  ;;  %v87_v28 = vld [vmem:[%s8351_s18] sm:$0xff] }
 0x3c0   :  { %v1762_v13 = vmul.f32 %v1761_v29, %v1669_v27  ;;  %v6049_v50 = vpop.eup %6048 }
 0x3c1   :  { %v1746_v57 = vadd.f32 %v1744_v25, %v7082_v33  ;;  %v1737_v52 = vadd.f32 %v1735_v47, %v1733_v0  ;;  %5569 = vmatpush1.bf16.msra.mxu0 %v5568_v44  ;;  %5596 = vmatpush1.bf16.msra.mxu1 %v5568_v44  ;;  %v6051_v30 = vpop.eup %6050  ;;  %v90_v25 = vld [vmem:[%s8351_s18 + $0x18] sm:$0x1]  ;;  %v1990_v44 = vmul.f32 %v7140_v46, %v87_v28  ;;  %v89_v47 = vld [vmem:[%s8351_s18 + $0x10] sm:$0x1] }
 0x3c2   :  { %5570 = vmatprep.subr.bf16.mxu0 %v8388_v22  ;;  %5597 = vmatprep.subr.bf16.mxu1 %v8388_v22  ;;  %v1992_v27 = vmul.f32 %v7148_v63, %v89_v47  ;;  %v2190_v46 = vld [vmem:[%s8352_s12 + $0x10] sm:$0xff] }
 0x3c3   :  { %v1745_v24 = vmul.f32 %v6043_v32, %v1737_v52  ;;  %v5571_v58 = vpack.c.bf16 %v1737_v52, %v1736_v9  ;;  %v1754_v10 = vmul.f32 %v6045_v54, %v1746_v57  ;;  %v2188_v9 = vld [vmem:[%s8352_s12] sm:$0xff] }
 0x3c5   :  { %v1747_v20 = vadd.f32 %v1745_v24, %v7092_v15  ;;  %v1756_v18 = vadd.f32 %v1754_v10, %v7087_v39  ;;  %5572 = vmatpush1.bf16.msra.mxu0 %v5571_v58  ;;  %5599 = vmatpush1.bf16.msra.mxu1 %v5571_v58 }
 0x3c6   :  { %5573 = vmatprep.subr.bf16.mxu0 %v8388_v22  ;;  %5600 = vmatprep.subr.bf16.mxu1 %v8388_v22 }
 0x3c7   :  { %v1755_v33 = vmul.f32 %v6047_v40, %v1747_v20  ;;  %v1764_v41 = vmul.f32 %v6049_v50, %v1756_v18  ;;  %v5574_v36 = vpack.c.bf16 %v1747_v20, %v1746_v57  ;;  %v2191_v57 = vld [vmem:[%s8352_s12 + $0x18] sm:$0xff]  ;;  %v2192_v20 = vld [vmem:[%s8352_s12 + $0x20] sm:$0xff]  ;;  %v2194_v50 = vld [vmem:[%s8352_s12 + $0x30] sm:$0xff] }
 0x3c8   :  { %v5613_v24 = vpack.c.bf16 %v2191_v57, %v2190_v46 }
 0x3c9   :  { %v1757_v61 = vadd.f32 %v1755_v33, %v7097_v34  ;;  %v1766_v0 = vadd.f32 %v1764_v41, %v1762_v13  ;;  %5575 = vmatpush1.bf16.msra.mxu0 %v5574_v36  ;;  %5602 = vmatpush1.bf16.msra.mxu1 %v5574_v36  ;;  %v5609_v34 = vpack.c.bf16 %v2189_v49, %v2188_v9  ;;  %v8389_v13 = vmov 0.0   ;;  %v2195_v33 = vld [vmem:[%s8352_s12 + $0x38] sm:$0xff]  ;;  %v2196_v36 = vld [vmem:[%s8352_s12 + $0x40] sm:$0xff]  ;;  %v2201_v49 = vld [vmem:[%s8352_s12 + $0x68] sm:$0xff] }
 0x3ca   :  { %5576 = vmatprep.subr.bf16.mxu0 %v8388_v22  ;;  %5603 = vmatprep.subr.bf16.mxu1 %v8388_v22  ;;  %v5621_v41 = vpack.c.bf16 %v2195_v33, %v2194_v50  ;;  %v2200_v9 = vld [vmem:[%s8352_s12 + $0x60] sm:$0xff] }
 0x3cb   :  { %v1765_v39 = vmul.f32 %v6051_v30, %v1757_v61  ;;  %v5577_v15 = vpack.c.bf16 %v1757_v61, %v1756_v18  ;;  %v2197_v61 = vld [vmem:[%s8352_s12 + $0x48] sm:$0xff] }
 0x3cc   :  { %v5625_v30 = vpack.c.bf16 %v2197_v61, %v2196_v36 }
 0x3cd   :  { %v1767_v29 = vadd.f32 %v1765_v39, %v1763_v53  ;;  %5578 = vmatpush1.bf16.msra.mxu0 %v5577_v15  ;;  %5605 = vmatpush1.bf16.msra.mxu1 %v5577_v15  ;;  %v1993_v53 = vmul.f32 %v7154_v35, %v90_v25  ;;  %v2199_v39 = vld [vmem:[%s8352_s12 + $0x58] sm:$0xff] }
 0x3ce   :  { %5579 = vmatprep.subr.bf16.mxu0 %v8388_v22  ;;  %5606 = vmatprep.subr.bf16.mxu1 %v8388_v22 }
 0x3cf   :  { %v5580_v12 = vpack.c.bf16 %v1767_v29, %v1766_v0  ;;  %v2198_v0 = vld [vmem:[%s8352_s12 + $0x50] sm:$0xff]  ;;  %v5633_v29 = vpack.c.bf16 %v2201_v49, %v2200_v9 }
 0x3d0   :  { %v5629_v15 = vpack.c.bf16 %v2199_v39, %v2198_v0 }
 0x3d1   :  { %5581 = vmatpush1.bf16.msra.mxu0 %v5580_v12  ;;  %5608 = vmatpush1.bf16.msra.mxu1 %v5580_v12 }
 0x3d2   :  { %5610 = vmatprep.subr.bf16.mxu0 %v5609_v34 }
 0x3d4   :  { %2147 = vmatmul.mubr.f32.vlgmr.msra.gmra.mrb[22].mxu1 %v1990_v44  ;;  %v4759_v44 = vmul.f32 -1.442695, %v6429_v42 }
 0x3d5   :  { %4756 = vmatprep.mubr.msk.f32.mxu1 %vm1994_vm13, %v1993_v53 }
 0x3d8   :  { %2152 = vmatmul.mubr.f32.gmra.mrb[24].mxu1 %v1992_v27 }
 0x3d9   :  { %2406 = vmatprep.mubr.f32.mxu1 %v8389_v13 }
 0x3de   :  { %v1866_v32 = vpop.f32.mrb[28].mxu0 }
 0x3df   :  { %v1868_v52 = vpop.f32.mrb[29].mxu0  ;;  %v1877_v54 = vmul.f32 %v1866_v32, %v87_v28  ;;  %v2203_v28 = vld [vmem:[%s8352_s12 + $0x78] sm:$0xff] }
 0x3e0   :  { %v1878_v35 = vmul.f32 %v1868_v52, %v7135_v37  ;;  %v2193_v37 = vld [vmem:[%s8352_s12 + $0x28] sm:$0xff] }
 0x3e1   :  { %v5617_v18 = vpack.c.bf16 %v2193_v37, %v2192_v20 }
 0x3e2   :  { %v1872_v58 = vpop.f32.mrb[30].mxu0  ;;  %4753 = vmatprep.mubr.msk.f32.mxu0 %vm1994_vm13, %v1878_v35 }
 0x3e3   :  { %v1874_v63 = vpop.f32.mrb[31].mxu0  ;;  %2066 = vmatmul.mubr.f32.vlgmr.msra.gmra.mrb[32].mxu0 %v1877_v54  ;;  %v1879_v40 = vmul.f32 %v1872_v58, %v89_v47  ;;  %v4757_v54 = vld [vmem:[%s8353_s11] ss:$0 sm:$0xff] }
 0x3e4   :  { %v1880_v10 = vmul.f32 %v1874_v63, %v90_v25  ;;  %5612 = vmatpush3.bf16.msra.mxu0 %v5609_v34  ;;  %v2202_v34 = vld [vmem:[%s8352_s12 + $0x70] sm:$0xff]  ;;  %v4758_v25 = vmul.f32 -1.442695, %v6422_v31  ;;  %v2168_v63 = vmul.f32 %v4757_v54, %v6431_v62  ;;  %v2169_v33 = vmul.f32 %v4757_v54, %v6434_v1  ;;  %v6129_v1 = vld [vmem:[%s8379_s23 + $0x8] sm:$0x1] }
 0x3e5   :  { %5614 = vmatprep.subr.bf16.mxu0 %v5613_v24  ;;  %v5637_v12 = vpack.c.bf16 %v2203_v28, %v2202_v34  ;;  %v4764_v54 = vld [vmem:[%s8380_s26 + $0x90] sm:$0xff] }
 0x3e6   :  { %4754 = vmatprep.mubr.msk.f32.mxu0 %vm1994_vm13, %v1880_v10  ;;  %6052 = vpow2.f32 %v4758_v25 }
 0x3e7   :  { %2071 = vmatmul.mubr.f32.gmra.mrb[34].mxu0 %v1879_v40  ;;  %6054 = vpow2.f32 %v4759_v44 }
 0x3e8   :  { %5616 = vmatpush3.bf16.msra.mxu0 %v5613_v24 }
 0x3e9   :  { %5618 = vmatprep.subr.bf16.mxu0 %v5617_v18 }
 0x3ec   :  { %5620 = vmatpush3.bf16.msra.mxu0 %v5617_v18 }
 0x3ed   :  { %5622 = vmatprep.subr.bf16.mxu0 %v5621_v41 }
 0x3f0   :  { %5624 = vmatpush3.bf16.msra.mxu0 %v5621_v41  ;;  %v6053_v47 = vpop.eup %6052 }
 0x3f1   :  { %5626 = vmatprep.subr.bf16.mxu0 %v5625_v30  ;;  %v2178_v53 = vadd.f32 1.0, %v6053_v47  ;;  %v6055_v32 = vpop.eup %6054 }
 0x3f2   :  { %v2179_v57 = vadd.f32 1.0, %v6055_v32 }
 0x3f3   :  { %6056 = vrcp.f32 %v2178_v53 }
 0x3f4   :  { %5628 = vmatpush3.bf16.msra.mxu0 %v5625_v30  ;;  %6058 = vrcp.f32 %v2179_v57  ;;  %v4765_v57 = vld [vmem:[%s8380_s26 + $0x98] sm:$0xff] }
 0x3f5   :  { %5630 = vmatprep.subr.bf16.mxu0 %v5629_v15 }
 0x3f8   :  { %5632 = vmatpush3.bf16.msra.mxu0 %v5629_v15 }
 0x3f9   :  { %5634 = vmatprep.subr.bf16.mxu0 %v5633_v29 }
 0x3fc   :  { %5636 = vmatpush3.bf16.msra.mxu0 %v5633_v29 }
 0x3fd   :  { %5638 = vmatprep.subr.bf16.mxu0 %v5637_v12  ;;  %v6057_v24 = vpop.eup %6056 }
 0x3fe   :  { %v2184_v20 = vmul.f32 %v6057_v24, %v6422_v31  ;;  %v6059_v18 = vpop.eup %6058  ;;  %v6128_v31 = vld [vmem:[%s8345_s15] sm:$0xff] }
 0x3ff   :  { %v2185_v0 = vmul.f32 %v6059_v18, %v6429_v42  ;;  %v6130_v42 = vld [vmem:[%s8379_s23] sm:$0xff]  ;;  %v4771_v18 = vld [vmem:[%s8380_s26 + $0xc8] sm:$0xff] }
 0x400   :  { %5640 = vmatpush3.bf16.msra.mxu0 %v5637_v12 }
 0x4a7   :  { %v2148_v27 = vpop.f32.mrb[22].mxu1 }
 0x4a8   :  { %v2150_v46 = vpop.f32.mrb[23].mxu1 }
 0x4a9   :  { %v4763_v46 = vld [vmem:[%s8380_s26 + $0x88] sm:$0xff] }
 0x4ab   :  { %v2153_v52 = vpop.f32.mrb[24].mxu1 }
 0x4ac   :  { %v2155_v35 = vpop.f32.mrb[25].mxu1 }
 0x4ad   :  { %v4762_v35 = vld [vmem:[%s8380_s26 + $0x80] sm:$0xff] }
 0x4ae   :  { %v5643_v24 = vpack.c.bf16 %v4764_v54, %v4762_v35 }
 0x4b6   :  { %v2067_v58 = vpop.f32.mrb[32].mxu0 }
 0x4b7   :  { %v2159_v10 = vsel %vm67_vm14, %v2067_v58, %v2148_v27  ;;  %v2069_v40 = vpop.f32.mrb[33].mxu0  ;;  %v4767_v58 = vld [vmem:[%s8380_s26 + $0xa8] sm:$0xff] }
 0x4b8   :  { %v2170_v37 = vadd.f32 %v2168_v63, %v2159_v10  ;;  %v4769_v63 = vld [vmem:[%s8380_s26 + $0xb8] sm:$0xff]  ;;  %v4766_v40 = vld [vmem:[%s8380_s26 + $0xa0] sm:$0xff] }
 0x4b9   :  { %v5645_v10 = vpack.c.bf16 %v4769_v63, %v4767_v58  ;;  %v4786_v58 = vld [vmem:[%s8382_s24 + $0x88] sm:$0xff] }
 0x4ba   :  { %v2072_v50 = vpop.f32.mrb[34].mxu0  ;;  %v2186_v41 = vmul.f32 %v2184_v20, %v2170_v37  ;;  %v4768_v20 = vld [vmem:[%s8380_s26 + $0xb0] sm:$0xff] }
 0x4bb   :  { %v2160_v36 = vsel %vm67_vm14, %v2072_v50, %v2153_v52  ;;  %v2074_v61 = vpop.f32.mrb[35].mxu0  ;;  %v5641_v52 = vpack.c.bf16 %v4765_v57, %v4763_v46  ;;  %v5647_v37 = vpack.c.bf16 %v4768_v20, %v4766_v40  ;;  %v4773_v50 = vld [vmem:[%s8380_s26 + $0xd8] sm:$0xff] }
 0x4bc   :  { %v2171_v30 = vadd.f32 %v2169_v33, %v2160_v36  ;;  %5245 = vmatprep.mubr.f32.mxu0 %v2186_v41  ;;  %v5649_v33 = vpack.c.bf16 %v4773_v50, %v4771_v18  ;;  %v4770_v41 = vld [vmem:[%s8380_s26 + $0xc0] sm:$0xff]  ;;  %v4772_v36 = vld [vmem:[%s8380_s26 + $0xd0] sm:$0xff]  ;;  %v4788_v40 = vld [vmem:[%s8382_s24 + $0x98] sm:$0xff] }
 0x4bd   :  { %5642 = vmatprep.subr.bf16.mxu1 %v5641_v52  ;;  %v5651_v61 = vpack.c.bf16 %v4772_v36, %v4770_v41  ;;  %v4790_v18 = vld [vmem:[%s8382_s24 + $0xa8] sm:$0xff]  ;;  %v4792_v41 = vld [vmem:[%s8382_s24 + $0xb8] sm:$0xff] }
 0x4be   :  { %v2187_v62 = vmul.f32 %v2185_v0, %v2171_v30  ;;  %5644 = vmatpush1.bf16.msra.mxu1 %v5643_v24  ;;  %v4775_v0 = vld [vmem:[%s8380_s26 + $0xe8] sm:$0xff]  ;;  %v4777_v30 = vld [vmem:[%s8380_s26 + $0xf8] sm:$0xff]  ;;  %v4785_v24 = vld [vmem:[%s8382_s24 + $0x80] sm:$0xff] }
 0x4bf   :  { %5646 = vmatprep.subr.bf16.mxu1 %v5645_v10  ;;  %v5657_v63 = vpack.c.bf16 %v4786_v58, %v4785_v24  ;;  %v4787_v10 = vld [vmem:[%s8382_s24 + $0x90] sm:$0xff] }
 0x4c0   :  { %5246 = vmatmul.mubr.f32.vlgmr.msra.gmra.mrb[36].mxu0 %v2187_v62  ;;  %v5653_v62 = vpack.c.bf16 %v4777_v30, %v4775_v0  ;;  %v5661_v20 = vpack.c.bf16 %v4788_v40, %v4787_v10  ;;  %v4794_v0 = vld [vmem:[%s8382_s24 + $0xc8] sm:$0xff] }
 0x4c1   :  { %5287 = vmatprep.mubr.msk.f32.mxu0 %vm472_vm8, %v6128_v31  ;;  %v4774_v31 = vld [vmem:[%s8380_s26 + $0xe0] sm:$0xff] }
 0x4c2   :  { %5648 = vmatpush1.bf16.msra.mxu1 %v5647_v37  ;;  %v4789_v37 = vld [vmem:[%s8382_s24 + $0xa0] sm:$0xff] }
 0x4c3   :  { %5650 = vmatprep.subr.bf16.mxu1 %v5649_v33  ;;  %v5665_v50 = vpack.c.bf16 %v4790_v18, %v4789_v37  ;;  %v4791_v33 = vld [vmem:[%s8382_s24 + $0xb0] sm:$0xff] }
 0x4c4   :  { %v5669_v36 = vpack.c.bf16 %v4792_v41, %v4791_v33 }
 0x4c6   :  { %5652 = vmatpush1.bf16.msra.mxu1 %v5651_v61  ;;  %v4793_v61 = vld [vmem:[%s8382_s24 + $0xc0] sm:$0xff] }
 0x4c7   :  { %5654 = vmatprep.subr.bf16.mxu1 %v5653_v62  ;;  %v5673_v30 = vpack.c.bf16 %v4794_v0, %v4793_v61  ;;  %v4795_v62 = vld [vmem:[%s8382_s24 + $0xd0] sm:$0xff] }
 0x593   :  { %v5247_v39 = vpop.f32.mrb[36].mxu0 }
 0x594   :  { %v7264_v15 = vadd.f32 %v6129_v1, %v5247_v39  ;;  %v2270_v9 = vpop.f32.mrb[37].mxu0  ;;  %v4776_v39 = vld [vmem:[%s8380_s26 + $0xf0] sm:$0xff] }
 0x595   :  { %v7269_v49 = vadd.f32 %v6130_v42, %v2270_v9  ;;  %v5655_v1 = vpack.c.bf16 %v4776_v39, %v4774_v31  ;;  %v4796_v31 = vld [vmem:[%s8382_s24 + $0xd8] sm:$0xff] }
 0x596   :  { %v2284_v34 = vmul.f32 %v7264_v15, %v7264_v15  ;;  %v5677_v39 = vpack.c.bf16 %v4796_v31, %v4795_v62 }
 0x597   :  { %v2283_v29 = vmul.f32 %v7269_v49, %v7269_v49  ;;  %5656 = vmatpush1.bf16.msra.mxu1 %v5655_v1  ;;  %v4797_v1 = vld [vmem:[%s8382_s24 + $0xe0] sm:$0xff] }
 0x598   :  { %v2294_v47 = vsel %vm68_vm2, 0.0, %v2284_v34  ;;  %v2286_v53 = vsel %vm68_vm2, %v2284_v34, 0.0  ;;  %5658 = vmatprep.subr.bf16.mxu1 %v5657_v63 }
 0x599   :  { %v2293_v28 = vsel %vm68_vm2, 0.0, %v2283_v29  ;;  %v2285_v12 = vsel %vm68_vm2, %v2283_v29, 0.0  ;;  %v2298_v27 = vsel %vm140_vm0, %v2294_v47, 0.0  ;;  %v2290_v32 = vsel %vm140_vm0, %v2286_v53, 0.0 }
 0x59a   :  { %v2295_v25 = vsel %vm136_vm1, %v2293_v28, 0.0  ;;  %v2287_v44 = vsel %vm136_vm1, %v2285_v12, 0.0 }
 0x59b   :  { %2296 = vadd.xlane.f32.xlu1 %v2295_v25  ;;  %2288 = vadd.xlane.f32.xlu0 %v2287_v44 }
 0x59f   :  { %2299 = vadd.xlane.f32.xlu1 %v2298_v27  ;;  %2291 = vadd.xlane.f32.xlu0 %v2290_v32  ;;  %v4761_v32 = vld [vmem:[%s8381_s21 + $0x1] ss:$0 sm:$0xff] }
 0x628   :  { %v2297_v9 = vpop.xlane.xlu1 %2296  ;;  %v2289_v42 = vpop.xlane.xlu0 %2288 }
 0x629   :  { %v2301_v29 = vsel %vm68_vm2, %v2289_v42, %v2297_v9  ;;  %v4798_v9 = vld [vmem:[%s8382_s24 + $0xe8] sm:$0xff] }
 0x62a   :  { %v2303_v34 = vmul.f32 0.03125, %v2301_v29  ;;  %v5681_v42 = vpack.c.bf16 %v4798_v9, %v4797_v1  ;;  %v4799_v29 = vld [vmem:[%s8382_s24 + $0xf0] sm:$0xff] }
 0x62c   :  { %v2305_v28 = vadd.f32 1e-05, %v2303_v34  ;;  %v2300_v12 = vpop.xlane.xlu1 %2299  ;;  %v2292_v25 = vpop.xlane.xlu0 %2291  ;;  %v4800_v34 = vld [vmem:[%s8382_s24 + $0xf8] sm:$0xff] }
 0x62d   :  { %v2302_v44 = vsel %vm68_vm2, %v2292_v25, %v2300_v12  ;;  %v4780_v12 = vld [vmem:[%s8384_s22 + $0x4] sm:$0xf] }
 0x62e   :  { %6060 = vrsqrt.f32 %v2305_v28  ;;  %v2304_v47 = vmul.f32 0.03125, %v2302_v44  ;;  %v5685_v28 = vpack.c.bf16 %v4800_v34, %v4799_v29  ;;  %v2426_v25 = vrot.slane %v4780_v12, %v6403_v19 }
 0x62f   :  { %v2466_v40 = vrot.slane %v4780_v12, %v6420_v26 }
 0x630   :  { %v2306_v53 = vadd.f32 1e-05, %v2304_v47  ;;  %v4782_v47 = vld [vmem:[%s8342_s4 + $0x1] ss:$0 sm:$0xff] }
 0x632   :  { %6062 = vrsqrt.f32 %v2306_v53  ;;  %v2444_v53 = vrot.slane %v4780_v12, %v6409_v21 }
 0x638   :  { %v6061_v27 = vpop.eup %6060 }
 0x639   :  { %v2309_v46 = vmul.f32 %v6061_v27, %v7269_v49 }
 0x63b   :  { %v2317_v57 = vmul.f32 %v4761_v32, %v2309_v46 }
 0x63c   :  { %v6063_v52 = vpop.eup %6062 }
 0x63d   :  { %4778 = vmatmul.mubr.msk.f32.vlgmr.msra.gmra.mrb[26].mxu1 %vm136_vm1, %v2317_v57  ;;  %v2310_v35 = vmul.f32 %v6063_v52, %v7264_v15 }
 0x63e   :  { %2412 = vmatprep.mubr.f32.mxu1 %v8389_v13  ;;  %5660 = vmatpush3.bf16.msra.mxu1 %v5657_v63 }
 0x63f   :  { %v2318_v54 = vmul.f32 %v4761_v32, %v2310_v35  ;;  %5662 = vmatprep.subr.bf16.mxu1 %v5661_v20  ;;  %v2455_v35 = vrot.slane %v4780_v12, %v6413_v23 }
 0x641   :  { %4779 = vmatmul.mubr.msk.f32.gmra.mrb[28].mxu1 %vm136_vm1, %v2318_v54 }
 0x642   :  { %5664 = vmatpush3.bf16.msra.mxu1 %v5661_v20 }
 0x643   :  { %5666 = vmatprep.subr.bf16.mxu1 %v5665_v50 }
 0x646   :  { %5668 = vmatpush3.bf16.msra.mxu1 %v5665_v50 }
 0x647   :  { %5670 = vmatprep.subr.bf16.mxu1 %v5669_v36 }
 0x64a   :  { %5672 = vmatpush3.bf16.msra.mxu1 %v5669_v36 }
 0x64b   :  { %5674 = vmatprep.subr.bf16.mxu1 %v5673_v30 }
 0x64e   :  { %5676 = vmatpush3.bf16.msra.mxu1 %v5673_v30 }
 0x64f   :  { %5678 = vmatprep.subr.bf16.mxu1 %v5677_v39 }
 0x652   :  { %5680 = vmatpush3.bf16.msra.mxu1 %v5677_v39 }
 0x653   :  { %5682 = vmatprep.subr.bf16.mxu1 %v5681_v42 }
 0x656   :  { %5684 = vmatpush3.bf16.msra.mxu1 %v5681_v42 }
 0x657   :  { %5686 = vmatprep.subr.bf16.mxu1 %v5685_v28 }
 0x65a   :  { %5688 = vmatpush3.bf16.msra.mxu1 %v5685_v28 }
 0x710   :  { %v2408_v44 = vpop.f32.mrb[26].mxu1 }
 0x711   :  { %v2438_v27 = vrot.slane %v2408_v44, 5  ;;  %v2449_v32 = vrot.slane %v2408_v44, 6  ;;  %v2460_v46 = vrot.slane %v2408_v44, 7  ;;  %v7403_v57 = vpop.f32.mrb[27].mxu1  ;;  %v2427_v52 = vmul.f32 %v2426_v25, %v2408_v44 }
 0x713   :  { %v2440_v54 = vsel %vm288_vm3, 0.0, %v2438_v27  ;;  %v2451_v24 = vsel %vm300_vm4, 0.0, %v2449_v32  ;;  %v2435_v58 = vadd.f32 %v4782_v47, %v2427_v52  ;;  %v2462_v20 = vsel %vm312_vm5, 0.0, %v2460_v46  ;;  %v4841_v52 = vld [vmem:[%s8343_s7 + $0x28] sm:$0xff] }
 0x714   :  { %v2414_v63 = vpop.f32.mrb[28].mxu1  ;;  %v2445_v10 = vmul.f32 %v2444_v53, %v2440_v54  ;;  %v2456_v33 = vmul.f32 %v2455_v35, %v2451_v24  ;;  %v2446_v36 = vmul.f32 %v2444_v53, %v2438_v27  ;;  %v2467_v0 = vmul.f32 %v2466_v40, %v2462_v20  ;;  %v4843_v54 = vld [vmem:[%s8343_s7 + $0x38] sm:$0xff] }
 0x715   :  { %v2428_v37 = vmul.f32 %v2426_v25, %v2414_v63  ;;  %v7410_v18 = vpop.f32.mrb[29].mxu1  ;;  %v2457_v62 = vmul.f32 %v2455_v35, %v2449_v32  ;;  %v2468_v1 = vmul.f32 %v2466_v40, %v2460_v46  ;;  %v4840_v32 = vld [vmem:[%s8343_s7 + $0x20] sm:$0xff]  ;;  %v4842_v35 = vld [vmem:[%s8343_s7 + $0x30] sm:$0xff] }
 0x716   :  { %v2447_v50 = vadd.f32 %v2445_v10, %v2435_v58 }
 0x717   :  { %v2436_v41 = vadd.f32 %v4782_v47, %v2428_v37 }
 0x718   :  { %v2458_v61 = vadd.f32 %v2456_v33, %v2447_v50 }
 0x719   :  { %v2448_v30 = vadd.f32 %v2446_v36, %v2436_v41 }
 0x71a   :  { %v2469_v31 = vadd.f32 %v2467_v0, %v2458_v61 }
 0x71b   :  { %v2459_v39 = vadd.f32 %v2457_v62, %v2448_v30 }
 0x71c   :  { %v4783_v9 = vmul.f32 -1.442695, %v2469_v31 }
 0x71d   :  { %v2470_v42 = vadd.f32 %v2468_v1, %v2459_v39  ;;  %v4885_v1 = vld [vmem:[%s8349_s8 + $0x118] sm:$0xff] }
 0x71e   :  { %6064 = vpow2.f32 %v4783_v9 }
 0x71f   :  { %v4784_v29 = vmul.f32 -1.442695, %v2470_v42 }
 0x721   :  { %6066 = vpow2.f32 %v4784_v29 }
 0x728   :  { %v6065_v34 = vpop.eup %6064 }
 0x729   :  { %v2477_v28 = vadd.f32 1.0, %v6065_v34 }
 0x72b   :  { %6068 = vrcp.f32 %v2477_v28  ;;  %v6067_v12 = vpop.eup %6066 }
 0x72c   :  { %v2478_v25 = vadd.f32 1.0, %v6067_v12 }
 0x72e   :  { %6070 = vrcp.f32 %v2478_v25 }
 0x735   :  { %v6069_v44 = vpop.eup %6068 }
 0x736   :  { %v7412_v47 = vmul.f32 %v6069_v44, %v2469_v31  ;;  %v4882_v44 = vld [vmem:[%s8349_s8 + $0x100] sm:$0xff] }
 0x738   :  { %5280 = vmatprep.mubr.f32.mxu1 %v7412_v47  ;;  %v6071_v53 = vpop.eup %6070 }
 0x739   :  { %v7415_v27 = vmul.f32 %v6071_v53, %v2470_v42 }
 0x73b   :  { %5281 = vmatmul.mubr.f32.vlgmr.msra.gmra.mrb[30].mxu1 %v7415_v27  ;;  %v5695_v46 = vpack.c.bf16 %v7415_v27, %v7412_v47 }
 0x73c   :  { %5318 = vmatprep.mubr.f32.mxu1 %v4840_v32 }
 0x73d   :  { %5696 = vmatprep.subr.bf16.mxu1 %v5695_v46 }
 0x73e   :  { %5698 = vmatpush3.bf16.xpose.msra.mxu1 %v5695_v46 }
 0x73f   :  { %5707 = vmatprep.subr.msk.bf16.mxu1 %vm6453_vm7, %v6485_v17  ;;  %v4802_v17 = vld [vmem:[%s8346_s6 + $0x1] ss:$0 sm:$0xff] }
 0x745   :  { %5319 = vmatmul.mubr.f32.vlgmr.msra.gmra.mrb[32].mxu1 %v4841_v52  ;;  %v4884_v52 = vld [vmem:[%s8349_s8 + $0x110] sm:$0xff] }
 0x746   :  { %5321 = vmatprep.mubr.f32.mxu1 %v4842_v35  ;;  %5710 = vmatpush1.bf16.msk.msra.mxu1 %vm6453_vm7, %v6519_v43 }
 0x747   :  { %5719 = vmatprep.subr.msk.bf16.mxu1 %vm6453_vm7, %v6523_v45 }
 0x749   :  { %5322 = vmatmul.mubr.f32.gmra.mrb[34].mxu1 %v4843_v54 }
 0x74a   :  { %3091 = vmatprep.mubr.f32.mxu1 %v8389_v13 }
 0x80e   :  { %v5282_v24 = vpop.f32.mrb[30].mxu1 }
 0x80f   :  { %v7445_v58 = vadd.f32 %v5282_v24, %v4802_v17  ;;  %v2576_v63 = vpop.f32.mrb[31].mxu1 }
 0x810   :  { %v7447_v10 = vadd.f32 %v4802_v17, %v2576_v63  ;;  %v4889_v17 = vld [vmem:[%s8349_s8 + $0x138] sm:$0xff] }
 0x811   :  { %v2592_v40 = vand.u32 2147483647, %v7445_v58  ;;  %v2586_v53 = vmax.f32 %v7445_v58, 0.0  ;;  %vm2588_vm4 = vcmp.ne.f32.partialorder %v7445_v58, %v7445_v58 }
 0x812   :  { %v2591_v43 = vand.u32 2147483647, %v7447_v10  ;;  %v2585_v54 = vmax.f32 %v7447_v10, 0.0  ;;  %vm2587_vm5 = vcmp.ne.f32.partialorder %v7447_v10, %v7447_v10 }
 0x813   :  { %v2594_v20 = vsub.f32 0.0, %v2592_v40 }
 0x814   :  { %v2593_v37 = vsub.f32 0.0, %v2591_v43  ;;  %v5761_v43 = vpack.c.bf16 %v4884_v52, %v4882_v44  ;;  %v4898_v44 = vld [vmem:[%s8349_s8 + $0x180] sm:$0xff] }
 0x815   :  { %v2597_v45 = vmul.f32 1.442695, %v2594_v20 }
 0x816   :  { %v2595_v50 = vmul.f32 1.442695, %v2593_v37 }
 0x817   :  { %6072 = vpow2.f32 %v2597_v45  ;;  %v4886_v45 = vld [vmem:[%s8349_s8 + $0x120] sm:$0xff] }
 0x818   :  { %6074 = vpow2.f32 %v2595_v50  ;;  %v7451_v33 = vpop.f32.mrb[32].mxu1  ;;  %v4888_v50 = vld [vmem:[%s8349_s8 + $0x130] sm:$0xff] }
 0x819   :  { %v7453_v41 = vpop.f32.mrb[33].mxu1 }
 0x81c   :  { %v7455_v36 = vpop.f32.mrb[34].mxu1 }
 0x81d   :  { %v7457_v61 = vpop.f32.mrb[35].mxu1 }
 0x81e   :  { %4850 = vmatmul.mubr.msk.f32.vlgmr.msra.gmra.mrb[36].mxu1 %vm472_vm8, %v7457_v61 }
 0x81f   :  { %3097 = vmatprep.mubr.f32.mxu1 %v8389_v13  ;;  %5722 = vmatpush1.bf16.msk.msra.mxu1 %vm6453_vm7, %v6551_v55 }
 0x820   :  { %5737 = vmatprep.subr.msk.bf16.mxu1 %vm6453_vm7, %v6581_v7  ;;  %v4883_v7 = vld [vmem:[%s8349_s8 + $0x108] sm:$0xff] }
 0x821   :  { %v6073_v0 = vpop.eup %6072  ;;  %v5759_v29 = vpack.c.bf16 %v4885_v1, %v4883_v7  ;;  %v4895_v7 = vld [vmem:[%s8349_s8 + $0x168] sm:$0xff]  ;;  %v4897_v1 = vld [vmem:[%s8349_s8 + $0x178] sm:$0xff] }
 0x822   :  { %v6075_v30 = vpop.eup %6074  ;;  %v2608_v62 = vadd.f32 1.0, %v6073_v0  ;;  %4851 = vmatmul.mubr.msk.f32.gmra.mrb[38].mxu1 %vm472_vm8, %v7455_v36  ;;  %v2611_v39 = vmul.f32 -0.5, %v6073_v0 }
 0x823   :  { %v2599_v31 = vadd.f32 1.0, %v6075_v30  ;;  %3245 = vmatprep.mubr.f32.mxu1 %v8389_v13  ;;  %v2602_v55 = vmul.f32 -0.5, %v6075_v30  ;;  %v2605_v34 = vand.u32 2147483647, %v6075_v30 }
 0x824   :  { %6076 = vlog2.f32 %v2608_v62  ;;  %v2612_v9 = vadd.f32 1.0, %v2611_v39  ;;  %v4890_v39 = vld [vmem:[%s8349_s8 + $0x140] sm:$0xff] }
 0x825   :  { %6078 = vlog2.f32 %v2599_v31  ;;  %v2603_v42 = vadd.f32 1.0, %v2602_v55  ;;  %vm2606_vm3 = vcmp.lt.f32.partialorder %v2605_v34, 0.0004427343  ;;  %v5765_v31 = vpack.c.bf16 %v4888_v50, %v4886_v45  ;;  %v4892_v55 = vld [vmem:[%s8349_s8 + $0x150] sm:$0xff]  ;;  %v4906_v50 = vld [vmem:[%s8349_s8 + $0x1c0] sm:$0xff] }
 0x826   :  { %4858 = vmatmul.mubr.msk.f32.vlgmr.msra.gmra.mrb[40].mxu1 %vm472_vm8, %v7457_v61  ;;  %v2613_v25 = vmul.f32 %v6073_v0, %v2612_v9  ;;  %v5769_v9 = vpack.c.bf16 %v4892_v55, %v4890_v39  ;;  %v6132_v34 = vld [vmem:[%s8345_s15 + $0x10] sm:$0xff]  ;;  %v6139_v39 = vld [vmem:[%s8345_s15 + $0x48] sm:$0xff] }
 0x827   :  { %3251 = vmatprep.mubr.f32.mxu1 %v8389_v13  ;;  %5740 = vmatpush1.bf16.msk.msra.mxu1 %vm6453_vm7, %v6611_v38  ;;  %v2614_v38 = vand.u32 2147483647, %v6073_v0  ;;  %v2604_v46 = vmul.f32 %v6075_v30, %v2603_v42  ;;  %v4891_v30 = vld [vmem:[%s8349_s8 + $0x148] sm:$0xff]  ;;  %v5771_v42 = vpack.c.bf16 %v4897_v1, %v4895_v7  ;;  %v4910_v7 = vld [vmem:[%s8349_s8 + $0x1e0] sm:$0xff]  ;;  %v4912_v1 = vld [vmem:[%s8349_s8 + $0x1f0] sm:$0xff] }
 0x828   :  { %5749 = vmatprep.subr.msk.bf16.mxu1 %vm6453_vm7, %v6624_v48 }
 0x829   :  { %vm2615_vm15 = vcmp.lt.f32.partialorder %v2614_v38, 0.0004427343  ;;  %v6131_v38 = vld [vmem:[%s8345_s15 + $0x8] sm:$0xff] }
 0x82a   :  { %4859 = vmatmul.mubr.msk.f32.gmra.mrb[42].mxu1 %vm472_vm8, %v7455_v36 }
 0x82b   :  { %3480 = vmatprep.mubr.f32.mxu1 %v8389_v13 }
 0x82e   :  { %v6077_v28 = vpop.eup %6076  ;;  %4869 = vmatmul.mubr.msk.f32.vlgmr.msra.gmra.mrb[36].mxu1 %vm472_vm8, %v7453_v41 }
 0x82f   :  { %v6079_v48 = vpop.eup %6078  ;;  %v2610_v12 = vmul.f32 0.6931472, %v6077_v28  ;;  %3486 = vmatprep.mubr.f32.mxu1 %v8389_v13  ;;  %5752 = vmatpush1.bf16.msk.msra.mxu1 %vm6453_vm7, %v6686_v5  ;;  %v4887_v5 = vld [vmem:[%s8349_s8 + $0x128] sm:$0xff] }
 0x830   :  { %v2601_v32 = vmul.f32 0.6931472, %v6079_v48  ;;  %5760 = vmatprep.subr.bf16.mxu1 %v5759_v29  ;;  %v5763_v37 = vpack.c.bf16 %v4889_v17, %v4887_v5  ;;  %v4894_v29 = vld [vmem:[%s8349_s8 + $0x160] sm:$0xff]  ;;  %v4899_v28 = vld [vmem:[%s8349_s8 + $0x188] sm:$0xff]  ;;  %v4901_v48 = vld [vmem:[%s8349_s8 + $0x198] sm:$0xff] }
 0x831   :  { %v2616_v35 = vsel %vm2615_vm15, %v2613_v25, %v2610_v12  ;;  %v6133_v25 = vld [vmem:[%s8345_s15 + $0x18] sm:$0xff]  ;;  %v4902_v5 = vld [vmem:[%s8349_s8 + $0x1a0] sm:$0xff]  ;;  %v4904_v17 = vld [vmem:[%s8349_s8 + $0x1b0] sm:$0xff] }
 0x832   :  { %v2618_v24 = vadd.f32 %v2616_v35, %v2586_v53  ;;  %v2607_v63 = vsel %vm2606_vm3, %v2604_v46, %v2601_v32  ;;  %4870 = vmatmul.mubr.msk.f32.gmra.mrb[38].mxu1 %vm472_vm8, %v7451_v33  ;;  %v4900_v53 = vld [vmem:[%s8349_s8 + $0x190] sm:$0xff]  ;;  %v4903_v32 = vld [vmem:[%s8349_s8 + $0x1a8] sm:$0xff]  ;;  %v4905_v46 = vld [vmem:[%s8349_s8 + $0x1b8] sm:$0xff] }
 0x833   :  { %v2617_v40 = vadd.f32 %v2607_v63, %v2585_v54  ;;  %3634 = vmatprep.mubr.f32.mxu1 %v8389_v13  ;;  %v5777_v52 = vpack.c.bf16 %v4900_v53, %v4898_v44  ;;  %v6135_v35 = vld [vmem:[%s8345_s15 + $0x28] sm:$0xff]  ;;  %v5779_v54 = vpack.c.bf16 %v4905_v46, %v4903_v32  ;;  %v4920_v44 = vld [vmem:[%s8348_s9 + $0x130] sm:$0xff]  ;;  %v4922_v46 = vld [vmem:[%s8348_s9 + $0x140] sm:$0xff] }
 0x834   :  { %v7517_v20 = vsel %vm2588_vm4, %v7445_v58, %v2618_v24  ;;  %v4893_v58 = vld [vmem:[%s8349_s8 + $0x158] sm:$0xff]  ;;  %v6136_v24 = vld [vmem:[%s8345_s15 + $0x30] sm:$0xff]  ;;  %v4907_v63 = vld [vmem:[%s8349_s8 + $0x1c8] sm:$0xff] }
 0x835   :  { %v7526_v0 = vsel %vm2587_vm5, %v7447_v10, %v2617_v40  ;;  %v5767_v10 = vpack.c.bf16 %v4893_v58, %v4891_v30  ;;  %v4909_v40 = vld [vmem:[%s8349_s8 + $0x1d8] sm:$0xff]  ;;  %v4908_v30 = vld [vmem:[%s8349_s8 + $0x1d0] sm:$0xff]  ;;  %v6138_v58 = vld [vmem:[%s8345_s15 + $0x40] sm:$0xff] }
 0x836   :  { %4877 = vmatmul.mubr.msk.f32.vlgmr.msra.gmra.mrb[40].mxu1 %vm472_vm8, %v7453_v41  ;;  %v5689_v62 = vpack.c.bf16 %v7517_v20, %v7526_v0  ;;  %v5783_v45 = vpack.c.bf16 %v4909_v40, %v4907_v63  ;;  %v4923_v53 = vld [vmem:[%s8348_s9 + $0x148] sm:$0xff]  ;;  %v4933_v40 = vld [vmem:[%s8348_s9 + $0x198] sm:$0xff] }
 0x837   :  { %5762 = vmatpush1.bf16.msra.mxu1 %v5761_v43  ;;  %3640 = vmatprep.mubr.f32.mxu1 %v8389_v13  ;;  %v5781_v43 = vpack.c.bf16 %v4904_v17, %v4902_v5  ;;  %v4926_v17 = vld [vmem:[%s8348_s9 + $0x160] sm:$0xff]  ;;  %v4931_v63 = vld [vmem:[%s8348_s9 + $0x188] sm:$0xff] }
 0x838   :  { %5691 = vmatprep.subr.msk.bf16.mxu0 %vm6453_vm7, %v5689_v62  ;;  %5764 = vmatprep.subr.bf16.mxu1 %v5763_v37  ;;  %v6137_v37 = vld [vmem:[%s8345_s15 + $0x38] sm:$0xff] }
 0x839   :  { %5694 = vmatpush3.bf16.msk.msra.mxu0 %vm6453_vm7, %v5689_v62  ;;  %v4911_v62 = vld [vmem:[%s8349_s8 + $0x1e8] sm:$0xff] }
 0x83a   :  { %4878 = vmatmul.mubr.msk.f32.gmra.mrb[42].mxu1 %vm472_vm8, %v7451_v33  ;;  %5701 = vmatprep.subr.msk.bf16.mxu0 %vm6453_vm7, %v6463_v11  ;;  %v4896_v11 = vld [vmem:[%s8349_s8 + $0x170] sm:$0xff] }
 0x83b   :  { %5766 = vmatpush1.bf16.msra.mxu1 %v5765_v31  ;;  %3909 = vmatprep.mubr.f32.mxu1 %v8389_v13  ;;  %v5773_v12 = vpack.c.bf16 %v4896_v11, %v4894_v29  ;;  %v4913_v31 = vld [vmem:[%s8349_s8 + $0x1f8] sm:$0xff]  ;;  %v6142_v29 = vld [vmem:[%s8345_s15 + $0x60] sm:$0xff]  ;;  %v6143_v11 = vld [vmem:[%s8345_s15 + $0x68] sm:$0xff] }
 0x83c   :  { %5288 = vmatmul.mubr.msk.f32.vlgmr.msra.gmra.mrb[38].mxu0 %vm472_vm8, %v6131_v38  ;;  %5768 = vmatprep.subr.bf16.mxu1 %v5767_v10  ;;  %v5785_v10 = vpack.c.bf16 %v4908_v30, %v4906_v50  ;;  %v5787_v55 = vpack.c.bf16 %v4913_v31, %v4911_v62  ;;  %v5789_v38 = vpack.c.bf16 %v4912_v1, %v4910_v7  ;;  %v4932_v50 = vld [vmem:[%s8348_s9 + $0x190] sm:$0xff]  ;;  %v4935_v30 = vld [vmem:[%s8348_s9 + $0x1a8] sm:$0xff]  ;;  %v4941_v7 = vld [vmem:[%s8348_s9 + $0x1d8] sm:$0xff] }
 0x83d   :  { %5290 = vmatprep.mubr.msk.f32.mxu0 %vm472_vm8, %v6132_v34  ;;  %5704 = vmatpush1.bf16.msk.msra.mxu0 %vm6453_vm7, %v6471_v14  ;;  %v5775_v14 = vpack.c.bf16 %v4901_v48, %v4899_v28  ;;  %v6144_v34 = vld [vmem:[%s8345_s15 + $0x70] sm:$0xff]  ;;  %v6145_v28 = vld [vmem:[%s8345_s15 + $0x78] sm:$0xff]  ;;  %v6146_v48 = vld [vmem:[%s8345_s15 + $0x80] sm:$0xff] }
 0x83e   :  { %5713 = vmatprep.subr.msk.bf16.mxu0 %vm6453_vm7, %v6633_v51  ;;  %v6134_v51 = vld [vmem:[%s8345_s15 + $0x20] sm:$0xff] }
 0x83f   :  { %5770 = vmatpush1.bf16.msra.mxu1 %v5769_v9  ;;  %v6140_v9 = vld [vmem:[%s8345_s15 + $0x50] sm:$0xff] }
 0x840   :  { %5291 = vmatmul.mubr.msk.f32.gmra.mrb[40].mxu0 %vm472_vm8, %v6133_v25  ;;  %5772 = vmatprep.subr.bf16.mxu1 %v5771_v42  ;;  %v6141_v42 = vld [vmem:[%s8345_s15 + $0x58] sm:$0xff] }
 0x841   :  { %5293 = vmatprep.mubr.msk.f32.mxu0 %vm472_vm8, %v6134_v51  ;;  %v4925_v51 = vld [vmem:[%s8348_s9 + $0x158] sm:$0xff] }
 0x842   :  { %v5799_v32 = vpack.c.bf16 %v4925_v51, %v4923_v53 }
 0x843   :  { %5774 = vmatpush1.bf16.msra.mxu1 %v5773_v12  ;;  %v6147_v12 = vld [vmem:[%s8345_s15 + $0x88] sm:$0xff] }
 0x844   :  { %5294 = vmatmul.mubr.msk.f32.gmra.mrb[42].mxu0 %vm472_vm8, %v6135_v35  ;;  %5776 = vmatprep.subr.bf16.mxu1 %v5775_v14  ;;  %v4918_v14 = vld [vmem:[%s8348_s9 + $0x120] sm:$0xff]  ;;  %v4927_v35 = vld [vmem:[%s8348_s9 + $0x168] sm:$0xff] }
 0x845   :  { %5296 = vmatprep.mubr.msk.f32.mxu0 %vm472_vm8, %v6136_v24  ;;  %v4928_v24 = vld [vmem:[%s8348_s9 + $0x170] sm:$0xff] }
 0x847   :  { %5778 = vmatpush1.bf16.msra.mxu1 %v5777_v52  ;;  %v4924_v52 = vld [vmem:[%s8348_s9 + $0x150] sm:$0xff] }
 0x848   :  { %5297 = vmatmul.mubr.msk.f32.gmra.mrb[44].mxu0 %vm472_vm8, %v6137_v37  ;;  %5780 = vmatprep.subr.bf16.mxu1 %v5779_v54  ;;  %v5801_v54 = vpack.c.bf16 %v4924_v52, %v4922_v46  ;;  %v5807_v37 = vpack.c.bf16 %v4933_v40, %v4931_v63 }
 0x849   :  { %5299 = vmatprep.mubr.msk.f32.mxu0 %vm472_vm8, %v6138_v58  ;;  %v4937_v58 = vld [vmem:[%s8348_s9 + $0x1b8] sm:$0xff] }
 0x84a   :  { %v5811_v31 = vpack.c.bf16 %v4937_v58, %v4935_v30 }
 0x84b   :  { %5782 = vmatpush1.bf16.msra.mxu1 %v5781_v43  ;;  %v5805_v43 = vpack.c.bf16 %v4928_v24, %v4926_v17 }
 0x84c   :  { %5300 = vmatmul.mubr.msk.f32.gmra.mrb[46].mxu0 %vm472_vm8, %v6139_v39  ;;  %5784 = vmatprep.subr.bf16.mxu1 %v5783_v45  ;;  %v4930_v45 = vld [vmem:[%s8348_s9 + $0x180] sm:$0xff]  ;;  %v4936_v39 = vld [vmem:[%s8348_s9 + $0x1b0] sm:$0xff] }
 0x84d   :  { %5302 = vmatprep.mubr.msk.f32.mxu0 %vm472_vm8, %v6140_v9  ;;  %v5809_v62 = vpack.c.bf16 %v4932_v50, %v4930_v45 }
 0x84f   :  { %5786 = vmatpush1.bf16.msra.mxu1 %v5785_v10  ;;  %v4934_v10 = vld [vmem:[%s8348_s9 + $0x1a0] sm:$0xff] }
 0x850   :  { %5303 = vmatmul.mubr.msk.f32.gmra.mrb[48].mxu0 %vm472_vm8, %v6141_v42  ;;  %5788 = vmatprep.subr.bf16.mxu1 %v5787_v55  ;;  %v4939_v55 = vld [vmem:[%s8348_s9 + $0x1c8] sm:$0xff]  ;;  %v5813_v1 = vpack.c.bf16 %v4936_v39, %v4934_v10  ;;  %v4940_v42 = vld [vmem:[%s8348_s9 + $0x1d0] sm:$0xff] }
 0x851   :  { %5305 = vmatprep.mubr.msk.f32.mxu0 %vm472_vm8, %v6142_v29  ;;  %v5815_v9 = vpack.c.bf16 %v4941_v7, %v4939_v55  ;;  %v4943_v29 = vld [vmem:[%s8348_s9 + $0x1e8] sm:$0xff] }
 0x853   :  { %5790 = vmatpush1.bf16.msra.mxu1 %v5789_v38  ;;  %v4938_v38 = vld [vmem:[%s8348_s9 + $0x1c0] sm:$0xff] }
 0x854   :  { %5306 = vmatmul.mubr.msk.f32.gmra.mrb[50].mxu0 %vm472_vm8, %v6143_v11  ;;  %5823 = vmatprep.subr.bf16.mxu1 %v8388_v22  ;;  %v4945_v11 = vld [vmem:[%s8348_s9 + $0x1f8] sm:$0xff] }
 0x855   :  { %5308 = vmatprep.mubr.msk.f32.mxu0 %vm472_vm8, %v6144_v34  ;;  %v5817_v34 = vpack.c.bf16 %v4940_v42, %v4938_v38 }
 0x856   :  { %3910 = vmatmul.mubr.f32.vlgmr.msra.gmra.mrb[44].mxu1 %v7412_v47 }
 0x857   :  { %3915 = vmatprep.mubr.f32.mxu1 %v8389_v13 }
 0x858   :  { %5309 = vmatmul.mubr.msk.f32.gmra.mrb[52].mxu0 %vm472_vm8, %v6145_v28  ;;  %v5819_v28 = vpack.c.bf16 %v4945_v11, %v4943_v29 }
 0x859   :  { %5311 = vmatprep.mubr.msk.f32.mxu0 %vm472_vm8, %v6146_v48  ;;  %v4942_v48 = vld [vmem:[%s8348_s9 + $0x1e0] sm:$0xff] }
 0x85a   :  { %3916 = vmatmul.mubr.f32.gmra.mrb[46].mxu1 %v7415_v27 }
 0x85c   :  { %5312 = vmatmul.mubr.msk.f32.gmra.mrb[54].mxu0 %vm472_vm8, %v6147_v12  ;;  %v4944_v12 = vld [vmem:[%s8348_s9 + $0x1f0] sm:$0xff] }
 0x85d   :  { %3014 = vmatprep.mubr.f32.mxu0 %v8389_v13 }
 0x860   :  { %4846 = vmatmul.mubr.msk.f32.vlgmr.msra.gmra.mrb[56].mxu0 %vm472_vm8, %v7457_v61 }
 0x861   :  { %3020 = vmatprep.mubr.f32.mxu0 %v8389_v13  ;;  %5716 = vmatpush1.bf16.msk.msra.mxu0 %vm6453_vm7, %v6667_v59  ;;  %v4917_v59 = vld [vmem:[%s8348_s9 + $0x118] sm:$0xff] }
 0x862   :  { %5725 = vmatprep.subr.msk.bf16.mxu0 %vm6453_vm7, %v6683_v2 }
 0x864   :  { %4847 = vmatmul.mubr.msk.f32.gmra.mrb[58].mxu0 %vm472_vm8, %v7455_v36 }
 0x865   :  { %3168 = vmatprep.mubr.f32.mxu0 %v8389_v13 }
 0x868   :  { %4854 = vmatmul.mubr.msk.f32.vlgmr.msra.gmra.mrb[60].mxu0 %vm472_vm8, %v7457_v61 }
 0x869   :  { %3174 = vmatprep.mubr.f32.mxu0 %v8389_v13  ;;  %5728 = vmatpush3.bf16.msk.msra.mxu0 %vm6453_vm7, %v6683_v2 }
 0x86a   :  { %5731 = vmatprep.subr.msk.bf16.mxu0 %vm6453_vm7, %v6553_v56  ;;  %v8390_v56 = vld [vmem:[#allocation3_spill] sm:$0xff] }
 0x86c   :  { %4855 = vmatmul.mubr.msk.f32.gmra.mrb[62].mxu0 %vm472_vm8, %v7455_v36 }
 0x86d   :  { %5328 = vmatprep.mubr.msk.f32.mxu0 %vm472_vm8, %v7457_v61  ;;  %v4921_v61 = vld [vmem:[%s8348_s9 + $0x138] sm:$0xff] }
 0x870   :  { %5329 = vmatmul.mubr.msk.f32.vlgmr.msra.gmra.mrb[64].mxu0 %vm472_vm8, %v7455_v36  ;;  %v4919_v36 = vld [vmem:[%s8348_s9 + $0x128] sm:$0xff] }
 0x871   :  { %5734 = vmatpush1.bf16.msk.msra.mxu0 %vm6453_vm7, %v6579_v4  ;;  %3403 = vmatprep.mubr.f32.mxu0 %v8389_v13  ;;  %v4915_v4 = vld [vmem:[%s8348_s9 + $0x108] sm:$0xff]  ;;  %v5795_v25 = vpack.c.bf16 %v4921_v61, %v4919_v36 }
 0x872   :  { %5743 = vmatprep.subr.msk.bf16.mxu0 %vm6453_vm7, %v6868_v6  ;;  %v5791_v2 = vpack.c.bf16 %v4917_v59, %v4915_v4  ;;  %v4914_v6 = vld [vmem:[%s8348_s9 + $0x100] sm:$0xff]  ;;  %v7855_v4 = vmul.f32 %v7526_v0, %v7412_v47 }
 0x873   :  { %v8391_v0 = vld [vmem:[#allocation2_spill] sm:$0xff] }
 0x874   :  { %4865 = vmatmul.mubr.msk.f32.vlgmr.msra.gmra.mrb[56].mxu0 %vm472_vm8, %v7453_v41  ;;  %v3745_v59 = vrot.slane %v7855_v4, %v6420_v26  ;;  %v8392_v53 = vsub.s32 6, %v8391_v0 }
 0x875   :  { %3409 = vmatprep.mubr.f32.mxu0 %v8389_v13  ;;  %5746 = vmatpush1.bf16.msk.msra.mxu0 %vm6453_vm7, %v6895_v16  ;;  %v4916_v16 = vld [vmem:[%s8348_s9 + $0x110] sm:$0xff] }
 0x876   :  { %5755 = vmatprep.subr.msk.bf16.mxu0 %vm6453_vm7, %v8390_v56  ;;  %v5793_v8 = vpack.c.bf16 %v4916_v16, %v4914_v6  ;;  %v3755_v6 = vrot.slane %v7855_v4, %v6403_v19  ;;  %v3785_v51 = vrot.slane %v7855_v4, %v8392_v53 }
 0x878   :  { %4866 = vmatmul.mubr.msk.f32.gmra.mrb[58].mxu0 %vm472_vm8, %v7451_v33 }
 0x879   :  { %3557 = vmatprep.mubr.f32.mxu0 %v8389_v13 }
 0x87c   :  { %4873 = vmatmul.mubr.msk.f32.vlgmr.msra.gmra.mrb[60].mxu0 %vm472_vm8, %v7453_v41 }
 0x87d   :  { %3563 = vmatprep.mubr.f32.mxu0 %v8389_v13  ;;  %5758 = vmatpush3.bf16.msk.msra.mxu0 %vm6453_vm7, %v8390_v56  ;;  %v5821_v56 = vpack.c.bf16 %v4944_v12, %v4942_v48 }
 0x87e   :  { %5792 = vmatprep.subr.bf16.mxu0 %v5791_v2 }
 0x880   :  { %4874 = vmatmul.mubr.msk.f32.gmra.mrb[62].mxu0 %vm472_vm8, %v7451_v33 }
 0x881   :  { %5335 = vmatprep.mubr.msk.f32.mxu0 %vm472_vm8, %v7453_v41  ;;  %v5797_v41 = vpack.c.bf16 %v4920_v44, %v4918_v14 }
 0x884   :  { %5336 = vmatmul.mubr.msk.f32.vlgmr.msra.gmra.mrb[64].mxu0 %vm472_vm8, %v7451_v33  ;;  %v4929_v33 = vld [vmem:[%s8348_s9 + $0x178] sm:$0xff] }
 0x885   :  { %5794 = vmatpush1.bf16.msra.mxu0 %v5793_v8  ;;  %4023 = vmatprep.mubr.f32.mxu0 %v8389_v13  ;;  %v5803_v5 = vpack.c.bf16 %v4929_v33, %v4927_v35 }
 0x886   :  { %5796 = vmatprep.subr.bf16.mxu0 %v5795_v25 }
 0x889   :  { %5798 = vmatpush1.bf16.msra.mxu0 %v5797_v41  ;;  %v8393_v41 = vsub.s32 7, %v8391_v0 }
 0x88a   :  { %5800 = vmatprep.subr.bf16.mxu0 %v5799_v32 }
 0x88b   :  { %v3795_v19 = vrot.slane %v7855_v4, %v8393_v41  ;;  %v4827_v41 = vld [vmem:[%s8350_s10 + $0xb8] sm:$0xff] }
 0x88d   :  { %5802 = vmatpush1.bf16.msra.mxu0 %v5801_v54 }
 0x88e   :  { %5804 = vmatprep.subr.bf16.mxu0 %v5803_v5 }
 0x891   :  { %5806 = vmatpush1.bf16.msra.mxu0 %v5805_v43 }
 0x892   :  { %5808 = vmatprep.subr.bf16.mxu0 %v5807_v37 }
 0x895   :  { %5810 = vmatpush1.bf16.msra.mxu0 %v5809_v62 }
 0x896   :  { %5812 = vmatprep.subr.bf16.mxu0 %v5811_v31 }
 0x899   :  { %5814 = vmatpush1.bf16.msra.mxu0 %v5813_v1  ;;  %v7894_v1 = vld [vmem:[%s8351_s18 + $0x8] sm:$0xff] }
 0x89a   :  { %5816 = vmatprep.subr.bf16.mxu0 %v5815_v9 }
 0x89d   :  { %5818 = vmatpush1.bf16.msra.mxu0 %v5817_v34 }
 0x89e   :  { %5820 = vmatprep.subr.bf16.mxu0 %v5819_v28  ;;  %v4822_v28 = vld [vmem:[%s8350_s10 + $0x90] sm:$0xff] }
 0x8a1   :  { %5822 = vmatpush1.bf16.msra.mxu0 %v5821_v56  ;;  %v4823_v56 = vld [vmem:[%s8350_s10 + $0x98] sm:$0xff] }
 0x8a2   :  { %5850 = vmatprep.subr.bf16.mxu0 %v8388_v22 }
 0x8a4   :  { %4024 = vmatmul.mubr.f32.vlgmr.msra.gmra.mrb[66].mxu0 %v7412_v47 }
 0x8a5   :  { %4029 = vmatprep.mubr.f32.mxu0 %v8389_v13 }
 0x8a8   :  { %4030 = vmatmul.mubr.f32.gmra.mrb[68].mxu0 %v7415_v27 }
 0x901   :  { %v3482_v2 = vpop.f32.mrb[36].mxu1 }
 0x902   :  { %v7861_v16 = vmul.f32 %v3745_v59, %v3482_v2  ;;  %v3484_v36 = vpop.f32.mrb[37].mxu1 }
 0x903   :  { %v7863_v61 = vmul.f32 %v3755_v6, %v3484_v36  ;;  %v4825_v36 = vld [vmem:[%s8350_s10 + $0xa8] sm:$0xff] }
 0x905   :  { %v3488_v8 = vpop.f32.mrb[38].mxu1 }
 0x906   :  { %v7865_v25 = vmul.f32 %v3745_v59, %v3488_v8  ;;  %v3490_v14 = vpop.f32.mrb[39].mxu1  ;;  %v4824_v59 = vld [vmem:[%s8350_s10 + $0xa0] sm:$0xff] }
 0x907   :  { %v7867_v44 = vmul.f32 %v3755_v6, %v3490_v14  ;;  %v4826_v14 = vld [vmem:[%s8350_s10 + $0xb0] sm:$0xff] }
 0x909   :  { %v3636_v26 = vpop.f32.mrb[40].mxu1 }
 0x90a   :  { %v7875_v32 = vmul.f32 %v3785_v51, %v3636_v26  ;;  %v3638_v46 = vpop.f32.mrb[41].mxu1 }
 0x90b   :  { %v7877_v52 = vmul.f32 %v3795_v19, %v3638_v46  ;;  %v4828_v46 = vld [vmem:[%s8350_s10 + $0xc0] sm:$0xff] }
 0x90d   :  { %v3642_v35 = vpop.f32.mrb[42].mxu1 }
 0x90e   :  { %v7879_v33 = vmul.f32 %v3785_v51, %v3642_v35  ;;  %v3644_v54 = vpop.f32.mrb[43].mxu1 }
 0x90f   :  { %v7881_v5 = vmul.f32 %v3795_v19, %v3644_v54  ;;  %v5289_v17 = vpop.f32.mrb[38].mxu0 }
 0x910   :  { %v2692_v24 = vpop.f32.mrb[39].mxu0  ;;  %v2801_v2 = vmul.f32 %v5289_v17, %v4823_v56  ;;  %v4832_v56 = vld [vmem:[%s8350_s10 + $0xe0] sm:$0xff] }
 0x911   :  { %v2800_v12 = vmul.f32 %v4822_v28, %v2692_v24  ;;  %v4829_v24 = vld [vmem:[%s8350_s10 + $0xc8] sm:$0xff] }
 0x912   :  { %v2820_v53 = vmul.f32 1.442695, %v2801_v2 }
 0x913   :  { %v5292_v63 = vpop.f32.mrb[40].mxu0  ;;  %v2818_v6 = vmul.f32 1.442695, %v2800_v12 }
 0x914   :  { %v2702_v40 = vpop.f32.mrb[41].mxu0  ;;  %v2803_v51 = vmul.f32 %v5292_v63, %v4825_v36 }
 0x915   :  { %v2802_v8 = vmul.f32 %v4824_v59, %v2702_v40  ;;  %6080 = vpow2.f32 %v2818_v6  ;;  %v4830_v40 = vld [vmem:[%s8350_s10 + $0xd0] sm:$0xff] }
 0x916   :  { %6082 = vpow2.f32 %v2820_v53  ;;  %v2824_v35 = vmul.f32 1.442695, %v2803_v51 }
 0x917   :  { %v5295_v43 = vpop.f32.mrb[42].mxu0  ;;  %v2822_v26 = vmul.f32 1.442695, %v2802_v8  ;;  %v4833_v8 = vld [vmem:[%s8350_s10 + $0xe8] sm:$0xff] }
 0x918   :  { %v2712_v37 = vpop.f32.mrb[43].mxu0  ;;  %v2805_v54 = vmul.f32 %v5295_v43, %v4827_v41 }
 0x919   :  { %v2804_v19 = vmul.f32 %v4826_v14, %v2712_v37  ;;  %6084 = vpow2.f32 %v2822_v26 }
 0x91a   :  { %6086 = vpow2.f32 %v2824_v35  ;;  %v2828_v37 = vmul.f32 1.442695, %v2805_v54 }
 0x91b   :  { %v5298_v45 = vpop.f32.mrb[44].mxu0  ;;  %v2826_v17 = vmul.f32 1.442695, %v2804_v19 }
 0x91c   :  { %v2722_v50 = vpop.f32.mrb[45].mxu0 }
 0x91d   :  { %v2806_v63 = vmul.f32 %v4828_v46, %v2722_v50  ;;  %6088 = vpow2.f32 %v2826_v17  ;;  %v3725_v50 = vrot.slane %v7855_v4, %v6409_v21 }
 0x91e   :  { %6090 = vpow2.f32 %v2828_v37 }
 0x91f   :  { %v5301_v30 = vpop.f32.mrb[46].mxu0  ;;  %v6081_v28 = vpop.eup %6080  ;;  %v2830_v43 = vmul.f32 1.442695, %v2806_v63 }
 0x920   :  { %v2732_v58 = vpop.f32.mrb[47].mxu0  ;;  %v3728_v6 = vmul.f32 0.0, %v6081_v28  ;;  %v6083_v53 = vpop.eup %6082 }
 0x921   :  { %v2808_v12 = vmul.f32 %v4830_v40, %v2732_v58  ;;  %6092 = vpow2.f32 %v2830_v43  ;;  %v3729_v17 = vmul.f32 0.0, %v6083_v53 }
 0x923   :  { %v7883_v62 = vpop.f32.mrb[48].mxu0  ;;  %v2834_v51 = vmul.f32 1.442695, %v2808_v12 }
 0x924   :  { %v2742_v31 = vpop.f32.mrb[49].mxu0  ;;  %v2811_v35 = vmul.f32 %v7883_v62, %v4833_v8  ;;  %v4836_v62 = vld [vmem:[%s8350_s10 + $0x100] sm:$0xff] }
 0x925   :  { %v2810_v26 = vmul.f32 %v4832_v56, %v2742_v31  ;;  %v8394_v56 = vsub.s32 4, %v8391_v0  ;;  %v4838_v0 = vld [vmem:[%s8350_s10 + $0x110] sm:$0xff] }
 0x927   :  { %v7885_v10 = vpop.f32.mrb[50].mxu0  ;;  %v2838_v37 = vmul.f32 1.442695, %v2810_v26 }
 0x928   :  { %v7887_v39 = vpop.f32.mrb[51].mxu0 }
 0x929   :  { %v7889_v55 = vpop.f32.mrb[44].mxu1 }
 0x92a   :  { %v3913_v7 = vpop.f32.mrb[45].mxu1 }
 0x92b   :  { %v3923_v9 = vmul.f32 %v7894_v1, %v3913_v7  ;;  %v7897_v38 = vpop.f32.mrb[52].mxu0  ;;  %v2807_v7 = vmul.f32 %v5298_v45, %v4829_v24  ;;  %v3735_v45 = vrot.slane %v7855_v4, %v6413_v23  ;;  %v6085_v23 = vpop.eup %6084  ;;  %v4835_v24 = vld [vmem:[%s8350_s10 + $0xf8] sm:$0xff] }
 0x92c   :  { %v7899_v42 = vpop.f32.mrb[53].mxu0  ;;  %v6087_v28 = vpop.eup %6086 }
 0x92d   :  { %v7901_v29 = vpop.f32.mrb[46].mxu1  ;;  %4946 = vmatprep.mubr.msk.f32.mxu1 %vm1994_vm13, %v3923_v9  ;;  %v4831_v9 = vld [vmem:[%s8350_s10 + $0xd8] sm:$0xff]  ;;  %v2832_v36 = vmul.f32 1.442695, %v2807_v7 }
 0x92e   :  { %v7904_v11 = vpop.f32.mrb[47].mxu1  ;;  %v2809_v59 = vmul.f32 %v5301_v30, %v4831_v9  ;;  %v4834_v30 = vld [vmem:[%s8350_s10 + $0xf0] sm:$0xff] }
 0x92f   :  { %v7906_v34 = vpop.f32.mrb[54].mxu0  ;;  %6094 = vpow2.f32 %v2832_v36  ;;  %v2812_v7 = vmul.f32 %v4834_v30, %v7887_v39  ;;  %v3775_v39 = vrot.slane %v7855_v4, %v1730_v60 }
 0x930   :  { %v7911_v48 = vpop.f32.mrb[55].mxu0  ;;  %v2836_v46 = vmul.f32 1.442695, %v2809_v59  ;;  %6096 = vpow2.f32 %v2834_v51  ;;  %v3765_v59 = vrot.slane %v7855_v4, %v8394_v56 }
 0x931   :  { %v2842_v26 = vmul.f32 1.442695, %v2812_v7 }
 0x932   :  { %6098 = vpow2.f32 %v2836_v46 }
 0x933   :  { %6100 = vpow2.f32 %v2838_v37 }
 0x947   :  { %v3405_v2 = vpop.f32.mrb[56].mxu0 }
 0x948   :  { %v3726_v58 = vmul.f32 %v3725_v50, %v3405_v2  ;;  %v3407_v14 = vpop.f32.mrb[57].mxu0  ;;  %v6089_v2 = vpop.eup %6088 }
 0x949   :  { %v3736_v41 = vmul.f32 %v3735_v45, %v3407_v14 }
 0x94a   :  { %v3730_v19 = vadd.f32 %v3728_v6, %v3726_v58  ;;  %v2813_v6 = vmul.f32 %v7885_v10, %v4835_v24  ;;  %v6091_v10 = vpop.eup %6090 }
 0x94b   :  { %v3411_v54 = vpop.f32.mrb[58].mxu0 }
 0x94c   :  { %v3738_v63 = vmul.f32 %v6085_v23, %v3730_v19  ;;  %v3727_v40 = vmul.f32 %v3725_v50, %v3411_v54  ;;  %v3413_v31 = vpop.f32.mrb[59].mxu0  ;;  %v2840_v50 = vmul.f32 1.442695, %v2811_v35  ;;  %v6093_v23 = vpop.eup %6092  ;;  %v2844_v46 = vmul.f32 1.442695, %v2813_v6 }
 0x94d   :  { %v3737_v9 = vmul.f32 %v3735_v45, %v3413_v31  ;;  %v4837_v45 = vld [vmem:[%s8350_s10 + $0x108] sm:$0xff]  ;;  %v2816_v31 = vmul.f32 %v4838_v0, %v7911_v48  ;;  %v6095_v37 = vpop.eup %6094 }
 0x94e   :  { %v3740_v43 = vadd.f32 %v3738_v63, %v3736_v41  ;;  %v3731_v12 = vadd.f32 %v3729_v17, %v3727_v40  ;;  %v2814_v41 = vmul.f32 %v4836_v62, %v7899_v42  ;;  %6102 = vpow2.f32 %v2840_v50  ;;  %v6097_v62 = vpop.eup %6096 }
 0x94f   :  { %v3559_v36 = vpop.f32.mrb[60].mxu0  ;;  %v2815_v35 = vmul.f32 %v7897_v38, %v4837_v45  ;;  %6104 = vpow2.f32 %v2842_v26  ;;  %v4839_v38 = vld [vmem:[%s8350_s10 + $0x118] sm:$0xff]  ;;  %v6099_v50 = vpop.eup %6098  ;;  %v2850_v6 = vmul.f32 1.442695, %v2816_v31 }
 0x950   :  { %v3748_v8 = vmul.f32 %v6089_v2, %v3740_v43  ;;  %v5824_v58 = vpack.c.bf16 %v3731_v12, %v3730_v19  ;;  %v3739_v14 = vmul.f32 %v6087_v28, %v3731_v12  ;;  %v3766_v53 = vmul.f32 %v3765_v59, %v3559_v36  ;;  %v3561_v51 = vpop.f32.mrb[61].mxu0  ;;  %v6101_v45 = vpop.eup %6100 }
 0x951   :  { %v3776_v30 = vmul.f32 %v3775_v39, %v3561_v51  ;;  %v2622_v19 = vmul.f32 %v7517_v20, %v7415_v27  ;;  %v2846_v40 = vmul.f32 1.442695, %v2814_v41  ;;  %6106 = vpow2.f32 %v2844_v46 }
 0x952   :  { %v3750_v60 = vadd.f32 %v3748_v8, %v7861_v16  ;;  %v3741_v4 = vadd.f32 %v3739_v14, %v3737_v9  ;;  %5825 = vmatpush1.bf16.msra.mxu1 %v5824_v58  ;;  %5852 = vmatpush1.bf16.msra.mxu0 %v5824_v58 }
 0x953   :  { %v3565_v42 = vpop.f32.mrb[62].mxu0  ;;  %5826 = vmatprep.subr.bf16.mxu1 %v8388_v22  ;;  %5853 = vmatprep.subr.bf16.mxu0 %v8388_v22  ;;  %v3805_v28 = vrot.slane %v2622_v19, %v6409_v21  ;;  %6108 = vpow2.f32 %v2846_v40 }
 0x954   :  { %v3749_v54 = vmul.f32 %v6091_v10, %v3741_v4  ;;  %v5827_v17 = vpack.c.bf16 %v3741_v4, %v3740_v43  ;;  %v3758_v24 = vmul.f32 %v6093_v23, %v3750_v60  ;;  %v3767_v16 = vmul.f32 %v3765_v59, %v3565_v42  ;;  %v3567_v63 = vpop.f32.mrb[63].mxu0 }
 0x955   :  { %v3777_v20 = vmul.f32 %v3775_v39, %v3567_v63  ;;  %v2848_v43 = vmul.f32 1.442695, %v2815_v35 }
 0x956   :  { %v3751_v7 = vadd.f32 %v3749_v54, %v7865_v25  ;;  %v3760_v9 = vadd.f32 %v3758_v24, %v7863_v61  ;;  %5828 = vmatpush1.bf16.msra.mxu1 %v5827_v17  ;;  %5855 = vmatpush1.bf16.msra.mxu0 %v5827_v17  ;;  %v2817_v61 = vmul.f32 %v7906_v34, %v4839_v38  ;;  %v4955_v38 = vld [vmem:[%s8352_s12 + $0x88] sm:$0xff] }
 0x957   :  { %v5337_v12 = vpop.f32.mrb[64].mxu0  ;;  %5829 = vmatprep.subr.bf16.mxu1 %v8388_v22  ;;  %5856 = vmatprep.subr.bf16.mxu0 %v8388_v22  ;;  %6110 = vpow2.f32 %v2848_v43  ;;  %v6149_v43 = vld [vmem:[%s8351_s18] sm:$0xff] }
 0x958   :  { %v3768_v48 = vmul.f32 %v6097_v62, %v3760_v9  ;;  %v3759_v56 = vmul.f32 %v6095_v37, %v3751_v7  ;;  %v7990_v59 = vmul.f32 %v5337_v12, %v3805_v28  ;;  %v3713_v2 = vpop.f32.mrb[65].mxu0  ;;  %v5830_v25 = vpack.c.bf16 %v3751_v7, %v3750_v60  ;;  %v6103_v51 = vpop.eup %6102  ;;  %v4954_v37 = vld [vmem:[%s8352_s12 + $0x80] sm:$0xff]  ;;  %v4957_v62 = vld [vmem:[%s8352_s12 + $0x98] sm:$0xff] }
 0x959   :  { %v3806_v21 = vmul.f32 %v3805_v28, %v3713_v2  ;;  %v2852_v26 = vmul.f32 1.442695, %v2817_v61  ;;  %6112 = vpow2.f32 %v2850_v6  ;;  %v5877_v7 = vpack.c.bf16 %v4955_v38, %v4954_v37  ;;  %v4956_v28 = vld [vmem:[%s8352_s12 + $0x90] sm:$0xff]  ;;  %v4959_v2 = vld [vmem:[%s8352_s12 + $0xa8] sm:$0xff] }
 0x95a   :  { %v3770_v36 = vadd.f32 %v3768_v48, %v3766_v53  ;;  %v3761_v39 = vadd.f32 %v3759_v56, %v7867_v44  ;;  %5831 = vmatpush1.bf16.msra.mxu1 %v5830_v25  ;;  %5858 = vmatpush1.bf16.msra.mxu0 %v5830_v25  ;;  %v6105_v53 = vpop.eup %6104  ;;  %v3922_v12 = vmul.f32 %v6149_v43, %v7889_v55  ;;  %v6150_v48 = vld [vmem:[%s8351_s18 + $0x18] sm:$0x1]  ;;  %v6151_v55 = vld [vmem:[%s8351_s18 + $0x10] sm:$0x1] }
 0x95b   :  { %5832 = vmatprep.subr.bf16.mxu1 %v8388_v22  ;;  %5859 = vmatprep.subr.bf16.mxu0 %v8388_v22  ;;  %v6107_v60 = vpop.eup %6106  ;;  %6114 = vpow2.f32 %v2852_v26  ;;  %v3925_v56 = vmul.f32 %v6150_v48, %v7904_v11  ;;  %v3924_v25 = vmul.f32 %v6151_v55, %v7901_v29  ;;  %v4960_v6 = vld [vmem:[%s8352_s12 + $0xb0] sm:$0xff] }
 0x95c   :  { %v3778_v8 = vmul.f32 %v6101_v45, %v3770_v36  ;;  %v3769_v58 = vmul.f32 %v6099_v50, %v3761_v39  ;;  %v5833_v14 = vpack.c.bf16 %v3761_v39, %v3760_v9 }
 0x95d   :  { %v6109_v23 = vpop.eup %6108 }
 0x95e   :  { %v3780_v34 = vadd.f32 %v3778_v8, %v3776_v30  ;;  %v3771_v41 = vadd.f32 %v3769_v58, %v3767_v16  ;;  %5834 = vmatpush1.bf16.msra.mxu1 %v5833_v14  ;;  %5861 = vmatpush1.bf16.msra.mxu0 %v5833_v14 }
 0x95f   :  { %5835 = vmatprep.subr.bf16.mxu1 %v8388_v22  ;;  %5862 = vmatprep.subr.bf16.mxu0 %v8388_v22 }
 0x960   :  { %v3788_v44 = vmul.f32 %v6105_v53, %v3780_v34  ;;  %v5836_v10 = vpack.c.bf16 %v3771_v41, %v3770_v36  ;;  %v3779_v0 = vmul.f32 %v6103_v51, %v3771_v41  ;;  %v4963_v51 = vld [vmem:[%s8352_s12 + $0xc8] sm:$0xff]  ;;  %v4965_v41 = vld [vmem:[%s8352_s12 + $0xd8] sm:$0xff] }
 0x961   :  { %v6111_v42 = vpop.eup %6110 }
 0x962   :  { %v3790_v4 = vadd.f32 %v3788_v44, %v7875_v32  ;;  %v3781_v19 = vadd.f32 %v3779_v0, %v3777_v20  ;;  %5837 = vmatpush1.bf16.msra.mxu1 %v5836_v10  ;;  %5864 = vmatpush1.bf16.msra.mxu0 %v5836_v10  ;;  %v4966_v44 = vld [vmem:[%s8352_s12 + $0xe0] sm:$0xff]  ;;  %v4967_v10 = vld [vmem:[%s8352_s12 + $0xe8] sm:$0xff] }
 0x963   :  { %5838 = vmatprep.subr.bf16.mxu1 %v8388_v22  ;;  %5865 = vmatprep.subr.bf16.mxu0 %v8388_v22  ;;  %v6113_v24 = vpop.eup %6112  ;;  %v5901_v0 = vpack.c.bf16 %v4967_v10, %v4966_v44  ;;  %v4375_v44 = vld [vmem:[%s8354_s14 + $0x60] sm:$0xff]  ;;  %v4381_v10 = vld [vmem:[%s8354_s14 + $0x90] sm:$0xff] }
 0x964   :  { %v3789_v30 = vmul.f32 %v6107_v60, %v3781_v19  ;;  %v5839_v46 = vpack.c.bf16 %v3781_v19, %v3780_v34  ;;  %v3798_v35 = vmul.f32 %v6109_v23, %v3790_v4  ;;  %v4964_v34 = vld [vmem:[%s8352_s12 + $0xd0] sm:$0xff]  ;;  %v4952_v23 = vmul.f32 -1.442695, %v7403_v57 }
 0x965   :  { %v6115_v20 = vpop.eup %6114  ;;  %v5897_v53 = vpack.c.bf16 %v4965_v41, %v4964_v34  ;;  %v4968_v60 = vld [vmem:[%s8352_s12 + $0xf0] sm:$0xff]  ;;  %v4376_v34 = vld [vmem:[%s8354_s14 + $0x68] sm:$0xff]  ;;  %v4382_v41 = vld [vmem:[%s8354_s14 + $0x98] sm:$0xff] }
 0x966   :  { %v3791_v54 = vadd.f32 %v3789_v30, %v7879_v33  ;;  %v3800_v17 = vadd.f32 %v3798_v35, %v7877_v52  ;;  %5840 = vmatpush1.bf16.msra.mxu1 %v5839_v46  ;;  %5867 = vmatpush1.bf16.msra.mxu0 %v5839_v46  ;;  %6116 = vpow2.f32 %v4952_v23  ;;  %v4953_v30 = vmul.f32 -1.442695, %v7410_v18  ;;  %v4385_v23 = vld [vmem:[%s8354_s14 + $0xb0] sm:$0xff] }
 0x967   :  { %5841 = vmatprep.subr.bf16.mxu1 %v8388_v22  ;;  %5868 = vmatprep.subr.bf16.mxu0 %v8388_v22 }
 0x968   :  { %v3799_v32 = vmul.f32 %v6111_v42, %v3791_v54  ;;  %v3808_v16 = vmul.f32 %v6113_v24, %v3800_v17  ;;  %v5842_v63 = vpack.c.bf16 %v3791_v54, %v3790_v4  ;;  %v4969_v4 = vld [vmem:[%s8352_s12 + $0xf8] sm:$0xff]  ;;  %6118 = vpow2.f32 %v4953_v30 }
 0x969   :  { %v5905_v19 = vpack.c.bf16 %v4969_v4, %v4968_v60  ;;  %v5915_v60 = vpack.c.bf16 %v4381_v10, %v4375_v44  ;;  %v4386_v4 = vld [vmem:[%s8354_s14 + $0xb8] sm:$0xff] }
 0x96a   :  { %v3801_v40 = vadd.f32 %v3799_v32, %v7881_v5  ;;  %v3810_v31 = vadd.f32 %v3808_v16, %v3806_v21  ;;  %5843 = vmatpush1.bf16.msra.mxu1 %v5842_v63  ;;  %5870 = vmatpush1.bf16.msra.mxu0 %v5842_v63  ;;  %v4961_v21 = vld [vmem:[%s8352_s12 + $0xb8] sm:$0xff]  ;;  %v4951_v16 = vld [vmem:[%s8353_s11 + $0x1] ss:$0 sm:$0xff] }
 0x96b   :  { %5844 = vmatprep.subr.bf16.mxu1 %v8388_v22  ;;  %5871 = vmatprep.subr.bf16.mxu0 %v8388_v22  ;;  %v5889_v29 = vpack.c.bf16 %v4961_v21, %v4960_v6  ;;  %v4364_v6 = vld [vmem:[%s8354_s14 + $0x8] sm:$0xff]  ;;  %v4370_v21 = vld [vmem:[%s8354_s14 + $0x38] sm:$0xff] }
 0x96c   :  { %v3809_v52 = vmul.f32 %v6115_v20, %v3801_v40  ;;  %v5845_v33 = vpack.c.bf16 %v3801_v40, %v3800_v17  ;;  %v4212_v20 = vmul.f32 %v4951_v16, %v7412_v47 }
 0x96e   :  { %v3811_v5 = vadd.f32 %v3809_v52, %v7990_v59  ;;  %5846 = vmatpush1.bf16.msra.mxu1 %v5845_v33  ;;  %5873 = vmatpush1.bf16.msra.mxu0 %v5845_v33  ;;  %v4958_v59 = vld [vmem:[%s8352_s12 + $0xa0] sm:$0xff] }
 0x96f   :  { %5847 = vmatprep.subr.bf16.mxu1 %v8388_v22  ;;  %5874 = vmatprep.subr.bf16.mxu0 %v8388_v22  ;;  %v5881_v22 = vpack.c.bf16 %v4957_v62, %v4956_v28  ;;  %v5885_v11 = vpack.c.bf16 %v4959_v2, %v4958_v59 }
 0x970   :  { %v5848_v9 = vpack.c.bf16 %v3811_v5, %v3810_v31  ;;  %v6117_v46 = vpop.eup %6116 }
 0x971   :  { %v4222_v35 = vadd.f32 1.0, %v6117_v46 }
 0x972   :  { %5849 = vmatpush1.bf16.msra.mxu1 %v5848_v9  ;;  %5876 = vmatpush1.bf16.msra.mxu0 %v5848_v9  ;;  %v6119_v42 = vpop.eup %6118  ;;  %v4213_v9 = vmul.f32 %v4951_v16, %v7415_v27 }
 0x973   :  { %5878 = vmatprep.subr.bf16.mxu1 %v5877_v7  ;;  %6120 = vrcp.f32 %v4222_v35  ;;  %v4223_v54 = vadd.f32 1.0, %v6119_v42  ;;  %v4388_v35 = vld [vmem:[%s8354_s14 + $0xc8] sm:$0xff]  ;;  %v4394_v42 = vld [vmem:[%s8354_s14 + $0xf8] sm:$0xff] }
 0x975   :  { %4111 = vmatmul.mubr.f32.vlgmr.msra.gmra.mrb[48].mxu1 %v3922_v12  ;;  %6122 = vrcp.f32 %v4223_v54  ;;  %v5917_v54 = vpack.c.bf16 %v4394_v42, %v4388_v35  ;;  %v4407_v35 = vld [vmem:[%s8354_s14 + $0x160] sm:$0xff] }
 0x976   :  { %4947 = vmatprep.mubr.msk.f32.mxu1 %vm1994_vm13, %v3925_v56  ;;  %5880 = vmatpush3.bf16.msra.mxu1 %v5877_v7 }
 0x977   :  { %v4025_v50 = vpop.f32.mrb[66].mxu0  ;;  %5882 = vmatprep.subr.bf16.mxu1 %v5881_v22 }
 0x978   :  { %v4027_v61 = vpop.f32.mrb[67].mxu0  ;;  %v4036_v39 = vmul.f32 %v6149_v43, %v4025_v50 }
 0x979   :  { %v4037_v36 = vmul.f32 %v7894_v1, %v4027_v61  ;;  %4116 = vmatmul.mubr.f32.gmra.mrb[50].mxu1 %v3924_v25  ;;  %v4962_v1 = vld [vmem:[%s8352_s12 + $0xc0] sm:$0xff] }
 0x97a   :  { %5884 = vmatpush3.bf16.msra.mxu1 %v5881_v22  ;;  %v5893_v26 = vpack.c.bf16 %v4963_v51, %v4962_v1  ;;  %v4373_v1 = vld [vmem:[%s8354_s14 + $0x50] sm:$0xff] }
 0x97b   :  { %v4031_v45 = vpop.f32.mrb[68].mxu0  ;;  %4948 = vmatprep.mubr.msk.f32.mxu0 %vm1994_vm13, %v4037_v36  ;;  %5886 = vmatprep.subr.bf16.mxu1 %v5885_v11  ;;  %v5909_v36 = vpack.c.bf16 %v4370_v21, %v4364_v6  ;;  %v4365_v21 = vld [vmem:[%s8354_s14 + $0x10] sm:$0xff] }
 0x97c   :  { %v4033_v8 = vpop.f32.mrb[69].mxu0  ;;  %4192 = vmatmul.mubr.f32.vlgmr.msra.gmra.mrb[70].mxu0 %v4036_v39  ;;  %v4038_v14 = vmul.f32 %v6151_v55, %v4031_v45  ;;  %v4363_v39 = vld [vmem:[%s8354_s14] sm:$0xff]  ;;  %v4369_v45 = vld [vmem:[%s8354_s14 + $0x30] sm:$0xff] }
 0x97d   :  { %v4039_v58 = vmul.f32 %v6150_v48, %v4033_v8  ;;  %v6121_v40 = vpop.eup %6120  ;;  %v5911_v8 = vpack.c.bf16 %v4369_v45, %v4363_v39  ;;  %5910 = vmatprep.subr.bf16.mxu0 %v5909_v36  ;;  %v4371_v36 = vld [vmem:[%s8354_s14 + $0x40] sm:$0xff] }
 0x97e   :  { %5888 = vmatpush3.bf16.msra.mxu1 %v5885_v11  ;;  %v4228_v37 = vmul.f32 %v6121_v40, %v7403_v57  ;;  %v4391_v40 = vld [vmem:[%s8354_s14 + $0xe0] sm:$0xff] }
 0x97f   :  { %4949 = vmatprep.mubr.msk.f32.mxu0 %vm1994_vm13, %v4039_v58  ;;  %5890 = vmatprep.subr.bf16.mxu1 %v5889_v29  ;;  %v6123_v5 = vpop.eup %6122  ;;  %v4374_v58 = vld [vmem:[%s8354_s14 + $0x58] sm:$0xff]  ;;  %v4970_v45 = vld [vmem:[%s8355_s13] ss:$0 sm:$0xff] }
 0x980   :  { %4197 = vmatmul.mubr.f32.gmra.mrb[72].mxu0 %v4038_v14  ;;  %v4229_v12 = vmul.f32 %v6123_v5, %v7410_v18  ;;  %v4367_v14 = vld [vmem:[%s8354_s14 + $0x20] sm:$0xff] }
 0x981   :  { %4481 = vmatprep.mubr.f32.mxu0 %v8389_v13  ;;  %5912 = vmatpush1.bf16.msra.mxu0 %v5911_v8  ;;  %v4399_v5 = vld [vmem:[%s8354_s14 + $0x120] sm:$0xff] }
 0x982   :  { %5892 = vmatpush3.bf16.msra.mxu1 %v5889_v29  ;;  %v4368_v29 = vld [vmem:[%s8354_s14 + $0x28] sm:$0xff] }
 0x983   :  { %5894 = vmatprep.subr.bf16.mxu1 %v5893_v26  ;;  %v5941_v51 = vpack.c.bf16 %v4374_v58, %v4368_v29  ;;  %v4384_v29 = vld [vmem:[%s8354_s14 + $0xa8] sm:$0xff]  ;;  %v5927_v58 = vpack.c.bf16 %v4371_v36, %v4365_v21 }
 0x986   :  { %5896 = vmatpush3.bf16.msra.mxu1 %v5893_v26  ;;  %v5943_v26 = vpack.c.bf16 %v4373_v1, %v4367_v14  ;;  %v5929_v1 = vpack.c.bf16 %v4384_v29, %v4378_v3 }
 0x987   :  { %5898 = vmatprep.subr.bf16.mxu1 %v5897_v53 }
 0x98a   :  { %5900 = vmatpush3.bf16.msra.mxu1 %v5897_v53  ;;  %v5913_v53 = vpack.c.bf16 %v4382_v41, %v4376_v34  ;;  %v4390_v41 = vld [vmem:[%s8354_s14 + $0xd8] sm:$0xff] }
 0x98b   :  { %5902 = vmatprep.subr.bf16.mxu1 %v5901_v0 }
 0x98c   :  { %5914 = vmatprep.subr.bf16.mxu0 %v5913_v53 }
 0x98d   :  { %5916 = vmatpush1.bf16.msra.mxu0 %v5915_v60  ;;  %v4389_v60 = vld [vmem:[%s8354_s14 + $0xd0] sm:$0xff] }
 0x98e   :  { %5904 = vmatpush3.bf16.msra.mxu1 %v5901_v0  ;;  %v4380_v0 = vld [vmem:[%s8354_s14 + $0x88] sm:$0xff]  ;;  %5918 = vmatprep.subr.bf16.mxu0 %v5917_v54  ;;  %v4648_v54 = vld [vmem:[%s8356_s19] sm:$0xff] }
 0x98f   :  { %5906 = vmatprep.subr.bf16.mxu1 %v5905_v19  ;;  %v5945_v30 = vpack.c.bf16 %v4386_v4, %v4380_v0  ;;  %v4395_v4 = vld [vmem:[%s8354_s14 + $0x100] sm:$0xff] }
 0x992   :  { %5908 = vmatpush3.bf16.msra.mxu1 %v5905_v19  ;;  %v4379_v19 = vld [vmem:[%s8354_s14 + $0x80] sm:$0xff] }
 0x993   :  { %5942 = vmatprep.subr.bf16.mxu1 %v5941_v51  ;;  %v5947_v46 = vpack.c.bf16 %v4385_v23, %v4379_v19  ;;  %v4377_v51 = vld [vmem:[%s8354_s14 + $0x70] sm:$0xff]  ;;  %v4408_v19 = vld [vmem:[%s8354_s14 + $0x168] sm:$0xff]  ;;  %v5935_v23 = vpack.c.bf16 %v4395_v4, %v4389_v60 }
 0xa48   :  { %v4112_v17 = vpop.f32.mrb[48].mxu1 }
 0xa49   :  { %v4114_v24 = vpop.f32.mrb[49].mxu1 }
 0xa4a   :  { %v4393_v24 = vld [vmem:[%s8354_s14 + $0xf0] sm:$0xff] }
 0xa4c   :  { %v4117_v32 = vpop.f32.mrb[50].mxu1 }
 0xa4d   :  { %v4119_v63 = vpop.f32.mrb[51].mxu1 }
 0xa4e   :  { %v4398_v63 = vld [vmem:[%s8354_s14 + $0x118] sm:$0xff] }
 0xa4f   :  { %v4193_v31 = vpop.f32.mrb[70].mxu0 }
 0xa50   :  { %v4202_v52 = vsel %vm67_vm14, %v4112_v17, %v4193_v31  ;;  %v4195_v33 = vpop.f32.mrb[71].mxu0  ;;  %v4387_v17 = vld [vmem:[%s8354_s14 + $0xc0] sm:$0xff]  ;;  %v4397_v31 = vld [vmem:[%s8354_s14 + $0x110] sm:$0xff] }
 0xa51   :  { %v4214_v38 = vadd.f32 %v4212_v20, %v4202_v52  ;;  %v5919_v16 = vpack.c.bf16 %v4393_v24, %v4387_v17  ;;  %v5951_v52 = vpack.c.bf16 %v4397_v31, %v4391_v40  ;;  %v4400_v33 = vld [vmem:[%s8354_s14 + $0x128] sm:$0xff]  ;;  %v4650_v24 = vld [vmem:[%s8356_s19 + $0x10] sm:$0xff] }
 0xa52   :  { %v4649_v17 = vld [vmem:[%s8356_s19 + $0x8] sm:$0xff]  ;;  %vm4656_vm6 = vcmp.gt.f32.partialorder %v4650_v24, 0.5 }
 0xa53   :  { %v4198_v7 = vpop.f32.mrb[72].mxu0  ;;  %v4230_v28 = vmul.f32 %v4228_v37, %v4214_v38  ;;  %5920 = vmatpush1.bf16.msra.mxu0 %v5919_v16  ;;  %v4406_v37 = vld [vmem:[%s8354_s14 + $0x158] sm:$0xff]  ;;  %v4653_v40 = vld [vmem:[%s8356_s19 + $0x28] sm:$0x1] }
 0xa54   :  { %v4203_v62 = vsel %vm67_vm14, %v4117_v32, %v4198_v7  ;;  %v4200_v43 = vpop.f32.mrb[73].mxu0  ;;  %v4392_v32 = vld [vmem:[%s8354_s14 + $0xe8] sm:$0xff]  ;;  %v5921_v38 = vpack.c.bf16 %v4406_v37, %v4400_v33  ;;  %v4405_v7 = vld [vmem:[%s8354_s14 + $0x150] sm:$0xff]  ;;  %vm4659_vm8 = vcmp.gt.f32.partialorder %v4653_v40, 0.5 }
 0xa55   :  { %v4215_v22 = vadd.f32 %v4213_v9, %v4203_v62  ;;  %5370 = vmatprep.mubr.f32.mxu1 %v4230_v28  ;;  %v5949_v20 = vpack.c.bf16 %v4398_v63, %v4392_v32  ;;  %v4404_v9 = vld [vmem:[%s8354_s14 + $0x148] sm:$0xff]  ;;  %v5923_v28 = vpack.c.bf16 %v4405_v7, %v4399_v5  ;;  %v4410_v62 = vld [vmem:[%s8354_s14 + $0x178] sm:$0xff]  ;;  %v4403_v43 = vld [vmem:[%s8354_s14 + $0x140] sm:$0xff] }
 0xa56   :  { %5922 = vmatprep.subr.bf16.mxu0 %v5921_v38  ;;  %v4652_v32 = vld [vmem:[%s8356_s19 + $0x20] sm:$0x1] }
 0xa57   :  { %v4231_v47 = vmul.f32 %v4229_v12, %v4215_v22  ;;  %v4409_v12 = vld [vmem:[%s8354_s14 + $0x170] sm:$0xff]  ;;  %v5953_v22 = vpack.c.bf16 %v4410_v62, %v4404_v9  ;;  %5924 = vmatpush1.bf16.msra.mxu0 %v5923_v28  ;;  %vm4658_vm7 = vcmp.gt.f32.partialorder %v4652_v32, 0.5 }
 0xa59   :  { %5371 = vmatmul.mubr.f32.vlgmr.msra.gmra.mrb[52].mxu1 %v4231_v47  ;;  %v5955_v47 = vpack.c.bf16 %v4409_v12, %v4403_v43 }
 0xa5a   :  { %4635 = vmatprep.mubr.f32.mxu1 %v8389_v13  ;;  %5944 = vmatpush1.bf16.msra.mxu1 %v5943_v26  ;;  %v4383_v26 = vld [vmem:[%s8354_s14 + $0xa0] sm:$0xff] }
 0xa5b   :  { %5946 = vmatprep.subr.bf16.mxu1 %v5945_v30  ;;  %v5931_v44 = vpack.c.bf16 %v4383_v26, %v4377_v51 }
 0xa5e   :  { %5948 = vmatpush1.bf16.msra.mxu1 %v5947_v46  ;;  %v4401_v46 = vld [vmem:[%s8354_s14 + $0x130] sm:$0xff] }
 0xa5f   :  { %5950 = vmatprep.subr.bf16.mxu1 %v5949_v20  ;;  %v5939_v42 = vpack.c.bf16 %v4407_v35, %v4401_v46 }
 0xa62   :  { %5952 = vmatpush1.bf16.msra.mxu1 %v5951_v52 }
 0xa63   :  { %5954 = vmatprep.subr.bf16.mxu1 %v5953_v22 }
 0xa66   :  { %5956 = vmatpush1.bf16.msra.mxu1 %v5955_v47 }
 0xb2c   :  { %v5372_v48 = vpop.f32.mrb[52].mxu1 }
 0xb2d   :  { %v8091_v57 = vadd.f32 %v5372_v48, %v7264_v15  ;;  %v4315_v56 = vpop.f32.mrb[53].mxu1  ;;  %v4366_v48 = vld [vmem:[%s8354_s14 + $0x18] sm:$0xff] }
 0xb2e   :  { %v8094_v27 = vadd.f32 %v4315_v56, %v7269_v49  ;;  %v4372_v56 = vld [vmem:[%s8354_s14 + $0x48] sm:$0xff] }
 0xb2f   :  { %v4328_v59 = vmul.f32 %v8091_v57, %v8091_v57 }
 0xb30   :  { %v4327_v18 = vmul.f32 %v8094_v27, %v8094_v27 }
 0xb31   :  { %v4338_v49 = vsel %vm68_vm2, 0.0, %v4328_v59  ;;  %v4330_v50 = vsel %vm68_vm2, %v4328_v59, 0.0  ;;  %v5925_v59 = vpack.c.bf16 %v4372_v56, %v4366_v48 }
 0xb32   :  { %v4337_v2 = vsel %vm68_vm2, 0.0, %v4327_v18  ;;  %v4329_v55 = vsel %vm68_vm2, %v4327_v18, 0.0  ;;  %v4342_v11 = vsel %vm140_vm0, %v4338_v49, 0.0  ;;  %v4334_v61 = vsel %vm140_vm0, %v4330_v50, 0.0 }
 0xb33   :  { %v4339_v25 = vsel %vm136_vm1, %v4337_v2, 0.0  ;;  %v4331_v15 = vsel %vm136_vm1, %v4329_v55, 0.0  ;;  %5926 = vmatprep.subr.bf16.mxu0 %v5925_v59  ;;  %vm4654_vm0 = vcmp.gt.f32.partialorder %v4648_v54, 0.5 }
 0xb34   :  { %4340 = vadd.xlane.f32.xlu1 %v4339_v25  ;;  %4332 = vadd.xlane.f32.xlu0 %v4331_v15 }
 0xb38   :  { %4343 = vadd.xlane.f32.xlu1 %v4342_v11  ;;  %4335 = vadd.xlane.f32.xlu0 %v4334_v61 }
 0xbc1   :  { %v4341_v18 = vpop.xlane.xlu1 %4340  ;;  %v4333_v2 = vpop.xlane.xlu0 %4332 }
 0xbc2   :  { %v4345_v55 = vsel %vm68_vm2, %v4333_v2, %v4341_v18 }
 0xbc3   :  { %v4347_v25 = vmul.f32 0.03125, %v4345_v55 }
 0xbc5   :  { %v4349_v15 = vadd.f32 1e-05, %v4347_v25  ;;  %v4344_v49 = vpop.xlane.xlu1 %4343  ;;  %v4336_v50 = vpop.xlane.xlu0 %4335 }
 0xbc6   :  { %v4346_v11 = vsel %vm68_vm2, %v4336_v50, %v4344_v49  ;;  %vm4655_vm2 = vcmp.gt.f32.partialorder %v4649_v17, 0.5 }
 0xbc7   :  { %6124 = vrsqrt.f32 %v4349_v15  ;;  %v4348_v61 = vmul.f32 0.03125, %v4346_v11 }
 0xbc9   :  { %v4350_v6 = vadd.f32 1e-05, %v4348_v61 }
 0xbcb   :  { %6126 = vrsqrt.f32 %v4350_v6 }
 0xbd1   :  { %v6125_v39 = vpop.eup %6124 }
 0xbd2   :  { %v4353_v8 = vmul.f32 %v6125_v39, %v8094_v27  ;;  %v4396_v27 = vld [vmem:[%s8354_s14 + $0x108] sm:$0xff] }
 0xbd3   :  { %v5933_v0 = vpack.c.bf16 %v4396_v27, %v4390_v41 }
 0xbd4   :  { %v4361_v14 = vmul.f32 %v4970_v45, %v4353_v8 }
 0xbd5   :  { %v6127_v34 = vpop.eup %6126 }
 0xbd6   :  { %4971 = vmatmul.mubr.msk.f32.vlgmr.msra.gmra.mrb[74].mxu0 %vm136_vm1, %v4361_v14  ;;  %4975 = vmatmul.mubr.msk.f32.vlgmr.msra.gmra.mrb[54].mxu1 %vm136_vm1, %v4361_v14  ;;  %v4354_v53 = vmul.f32 %v6127_v34, %v8091_v57  ;;  %v4402_v57 = vld [vmem:[%s8354_s14 + $0x138] sm:$0xff] }
 0xbd7   :  { %5928 = vmatpush1.bf16.msra.mxu0 %v5927_v58  ;;  %4487 = vmatprep.mubr.f32.mxu0 %v8389_v13  ;;  %v5937_v30 = vpack.c.bf16 %v4408_v19, %v4402_v57 }
 0xbd8   :  { %5930 = vmatprep.subr.bf16.mxu0 %v5929_v1  ;;  %4641 = vmatprep.mubr.f32.mxu1 %v8389_v13  ;;  %v4362_v10 = vmul.f32 %v4970_v45, %v4354_v53 }
 0xbda   :  { %4972 = vmatmul.mubr.msk.f32.gmra.mrb[76].mxu0 %vm136_vm1, %v4362_v10  ;;  %4976 = vmatmul.mubr.msk.f32.gmra.mrb[56].mxu1 %vm136_vm1, %v4362_v10 }
 0xbdb   :  { %5932 = vmatpush1.bf16.msra.mxu0 %v5931_v44  ;;  %4558 = vmatprep.mubr.f32.mxu0 %v8389_v13 }
 0xbdc   :  { %5934 = vmatprep.subr.bf16.mxu0 %v5933_v0 }
 0xbdf   :  { %5936 = vmatpush1.bf16.msra.mxu0 %v5935_v23 }
 0xbe0   :  { %5938 = vmatprep.subr.bf16.mxu0 %v5937_v30 }
 0xbe3   :  { %5940 = vmatpush1.bf16.msra.mxu0 %v5939_v42 }
 0xbe6   :  { %4973 = vmatmul.mubr.msk.f32.vlgmr.msra.gmra.mrb[78].mxu0 %vm136_vm1, %v4361_v14 }
 0xbe7   :  { %4564 = vmatprep.mubr.f32.mxu0 %v8389_v13  ;;  %v4651_v13 = vld [vmem:[%s8356_s19 + $0x18] sm:$0x1] }
 0xbea   :  { %4974 = vmatmul.mubr.msk.f32.gmra.mrb[80].mxu0 %vm136_vm1, %v4362_v10  ;;  %vm4657_vm1 = vcmp.gt.f32.partialorder %v4651_v13, 0.5 }
 0xca9   :  { %v4483_v16 = vpop.f32.mrb[74].mxu0  ;;  %v4637_v63 = vpop.f32.mrb[54].mxu1 }
 0xcaa   :  { %v4660_v31 = vsel %vm4654_vm0, %v4483_v16, -1e+09  ;;  %v4673_v20 = vsel %vm4655_vm2, %v4637_v63, -1e+09  ;;  %v4485_v52 = vpop.f32.mrb[75].mxu0  ;;  %v4639_v33 = vpop.f32.mrb[55].mxu1 }
 0xcab   :  { %4666 = vst [vmem:[%s8357_s20] sm:$0xff] %v4660_v31  ;;  %4978 = vst [vmem:[%s8357_s20 + $0x38] sm:$0xff] %v4673_v20  ;;  %v4661_v37 = vsel %vm4655_vm2, %v4485_v52, -1e+09  ;;  %v4674_v38 = vsel %vm4656_vm6, %v4639_v33, -1e+09 }
 0xcac   :  { %4667 = vst [vmem:[%s8357_s20 + $0x8] sm:$0xff] %v4661_v37  ;;  %4979 = vst [vmem:[%s8357_s20 + $0x40] sm:$0xff] %v4674_v38 }
 0xcad   :  { %v4489_v5 = vpop.f32.mrb[76].mxu0  ;;  %v4643_v7 = vpop.f32.mrb[56].mxu1 }
 0xcae   :  { %v4663_v9 = vsel %vm4657_vm1, %v4489_v5, -1e+09  ;;  %v4676_v28 = vsel %vm4658_vm7, %v4643_v7, -1e+09  ;;  %v4491_v62 = vpop.f32.mrb[77].mxu0  ;;  %v4645_v43 = vpop.f32.mrb[57].mxu1 }
 0xcaf   :  { %4669 = vst [vmem:[%s8357_s20 + $0x18] sm:$0x1] %v4663_v9  ;;  %4981 = vst [vmem:[%s8357_s20 + $0x50] sm:$0x1] %v4676_v28  ;;  %v4664_v12 = vsel %vm4658_vm7, %v4491_v62, -1e+09 }
 0xcb0   :  { %v4677_v22 = vsel %vm4659_vm8, %v4645_v43, -1e+09  ;;  %4670 = vst [vmem:[%s8357_s20 + $0x20] sm:$0x1] %v4664_v12 }
 0xcb1   :  { %4982 = vst [vmem:[%s8357_s20 + $0x58] sm:$0x1] %v4677_v22 }
 0xcb9   :  { %v4560_v47 = vpop.f32.mrb[78].mxu0 }
 0xcba   :  { %v4662_v48 = vsel %vm4656_vm6, %v4560_v47, -1e+09  ;;  %v4562_v56 = vpop.f32.mrb[79].mxu0 }
 0xcbb   :  { %4668 = vst [vmem:[%s8357_s20 + $0x10] sm:$0xff] %v4662_v48  ;;  %v4672_v59 = vsel %vm4654_vm0, %v4562_v56, -1e+09 }
 0xcbc   :  { %4977 = vst [vmem:[%s8357_s20 + $0x30] sm:$0xff] %v4672_v59 }
 0xcbd   :  { %v4566_v18 = vpop.f32.mrb[80].mxu0 }
 0xcbe   :  { %v4665_v2 = vsel %vm4659_vm8, %v4566_v18, -1e+09  ;;  %v4568_v55 = vpop.f32.mrb[81].mxu0 }
 0xcbf   :  { %4671 = vst [vmem:[%s8357_s20 + $0x28] sm:$0x1] %v4665_v2  ;;  %v4675_v25 = vsel %vm4657_vm1, %v4568_v55, -1e+09 }
 0xcc0   :  { %4980 = vst [vmem:[%s8357_s20 + $0x48] sm:$0x1] %v4675_v25 }

</bundles_post_ra>
